<compile_context>
chip_gen: v7x
topology: tpu7x:2x2x1
jax: 0.10.0
libtpu: 0.0.40
codegen_flags: <defaults>
</compile_context>

<pallas_src>
import jax
import jax.numpy as jnp
from jax.experimental import pallas as pl
from jax.experimental.pallas import tpu as pltpu


def vae_kernel(x_ref, eps_ref,
               w1_ref, b1_ref,
               wmv_ref, bmv_ref,
               w3_ref, b3_ref,
               w4_ref, b4_ref,
               out_ref, mv_ref):
    """Fused encoder -> reparameterize -> decoder for one batch tile."""
    lp = mv_ref.shape[-1] // 2          # padded latent width (multiple of 128)

    # --- encoder trunk: relu(x @ W1 + b1) ----------------------------------
    x = x_ref[...]                                                   # bf16 [TB, Din]
    h = jnp.dot(x, w1_ref[...], preferred_element_type=jnp.float32)  # f32 acc
    h = jnp.maximum(h + b1_ref[...], 0.0)                            # f32 [TB, H]

    # --- fused mean / log_var heads: single lane-dense matmul --------------
    mv = jnp.dot(h.astype(jnp.bfloat16), wmv_ref[...],
                 preferred_element_type=jnp.float32) + bmv_ref[...]  # [TB, 2*Lp]
    mean = mv[:, :lp]                   # 128-lane aligned slice (free)
    log_var = mv[:, lp:]                # 128-lane aligned slice (free)

    # --- sample_latent_noise (reparameterization trick, f32 elementwise) ----
    std = jnp.exp(0.5 * log_var)
    z = mean + eps_ref[...] * std                                    # f32 [TB, Lp]

    # --- decoder: sigmoid(relu(z @ W3 + b3) @ W4 + b4) ----------------------
    h2 = jnp.dot(z.astype(jnp.bfloat16), w3_ref[...],
                 preferred_element_type=jnp.float32)                 # K padded to Lp
    h2 = jnp.maximum(h2 + b3_ref[...], 0.0)                          # f32 [TB, H]
    logits = jnp.dot(h2.astype(jnp.bfloat16), w4_ref[...],
                     preferred_element_type=jnp.float32) + b4_ref[...]

    out_ref[...] = jax.nn.sigmoid(logits).astype(out_ref.dtype)      # bf16 writeback
    mv_ref[...] = mv                                                 # f32 mean||log_var


def _round_up(n, m):
    return ((n + m - 1) // m) * m


def vae_forward(x_nchw, eps, params, *, batch_tile=256):
    """Flatten NCHW -> fused Pallas kernel over batch tiles -> reshape back."""
    B, C, H, W = x_nchw.shape
    Din = C * H * W
    (w1, b1, wm, bm, wv, bv, w3, b3, w4, b4) = params
    hidden = w1.shape[1]
    latent = wm.shape[1]
    Lp = _round_up(latent, 128)          # lane-dense padded latent

    # Pad each head to Lp lanes, then fuse -> [hidden, 2*Lp] lane-dense slab.
    def pad_cols(a, n):
        return jnp.pad(a, ((0, 0), (0, n - a.shape[1])))
    wmv = jnp.concatenate([pad_cols(wm, Lp), pad_cols(wv, Lp)], axis=1)  # [H, 2Lp]
    bmv = jnp.concatenate([pad_cols(bm, Lp), pad_cols(bv, Lp)], axis=1)  # [1, 2Lp]
    w3p = jnp.pad(w3, ((0, Lp - latent), (0, 0)))    # zero rows for padded latent

    # bf16 MXU operands; biases stay f32 (elementwise path).
    x = x_nchw.reshape(B, Din).astype(jnp.bfloat16)
    w1b = w1.astype(jnp.bfloat16)
    wmvb = wmv.astype(jnp.bfloat16)
    w3b = w3p.astype(jnp.bfloat16)
    w4b = w4.astype(jnp.bfloat16)

    # Batch tiling: 16-row sublane alignment for bf16; >=2 tiles when B allows
    # so the "parallel" axis can shard across both v7x TensorCores.
    TB = min(batch_tile, max(16, _round_up(B, 16)))
    Bp = _round_up(B, TB)
    if Bp // TB == 1 and B > 16:
        TB = max(16, _round_up(pl.cdiv(Bp, 2), 16))
        Bp = _round_up(B, TB)
    grid = (Bp // TB,)

    eps_p = jnp.pad(eps.astype(jnp.float32), ((0, Bp - B), (0, Lp - latent)))
    if Bp != B:
        x = jnp.pad(x, ((0, Bp - B), (0, 0)))

    # VMEM budget: resident weights (x2 safety for double-buffer fallback) +
    # double-buffered activation tiles + headroom. Critical under v5e's 16 MiB
    # scoped default; clamp to v7x's 64 MiB physical.
    weight_bytes = 2 * int(w1b.size + wmvb.size + w3b.size + w4b.size) \
                 + 4 * int(b1.size + bmv.size + b3.size + b4.size)
    tile_bytes = TB * (Din * 2 + Lp * 4 + Din * 2 + 2 * Lp * 4)
    vmem_limit = int(min(64 << 20,
                         max(16 << 20, 2 * weight_bytes + 2 * tile_bytes + (4 << 20))))

    flops = 2 * Bp * (Din * hidden + hidden * 2 * Lp + Lp * hidden + hidden * Din)
    transcendentals = Bp * (Lp + 2 * Din)               # exp(std) + sigmoid(exp, recip)
    bytes_accessed = (
        x.size * 2 + eps_p.size * 4                      # activations in
        + (w1b.size + wmvb.size + w3b.size + w4b.size) * 2  # bf16 weights
        + (b1.size + bmv.size + b3.size + b4.size) * 4       # f32 biases
        + Bp * Din * 2 + Bp * 2 * Lp * 4                 # bf16 out + f32 mv
    )

    def batch_spec(n):
        return pl.BlockSpec((TB, n), lambda i: (i, 0))

    def build(single_buffer_weights):
        def resident(shape):
            # Constant index_map: weight DMA'd once, VMEM-resident across tiles.
            if single_buffer_weights:
                return pl.BlockSpec(shape, lambda i: (0, 0),
                                    pipeline_mode=pl.Buffered(1))
            return pl.BlockSpec(shape, lambda i: (0, 0))

        return pl.pallas_call(
            vae_kernel,
            out_shape=(
                jax.ShapeDtypeStruct((Bp, Din), jnp.bfloat16),
                jax.ShapeDtypeStruct((Bp, 2 * Lp), jnp.float32),
            ),
            grid_spec=pltpu.PrefetchScalarGridSpec(
                num_scalar_prefetch=0,
                grid=grid,
                in_specs=[
                    batch_spec(Din),             # x
                    batch_spec(Lp),              # eps (latent-padded)
                    resident((Din, hidden)),     # W1
                    resident((1, hidden)),       # b1
                    resident((hidden, 2 * Lp)),  # Wm||Wv (lane-padded)
                    resident((1, 2 * Lp)),       # bm||bv
                    resident((Lp, hidden)),      # W3 (K-padded)
                    resident((1, hidden)),       # b3
                    resident((hidden, Din)),     # W4
                    resident((1, Din)),          # b4
                ],
                out_specs=(batch_spec(Din), batch_spec(2 * Lp)),
            ),
            compiler_params=pltpu.CompilerParams(
                dimension_semantics=("parallel",),
                vmem_limit_bytes=vmem_limit),
            cost_estimate=pl.CostEstimate(flops=flops,
                                          transcendentals=transcendentals,
                                          bytes_accessed=bytes_accessed),
        )

    args = (x, eps_p, w1b, b1, wmvb, bmv, w3b, b3, w4b, b4)
    try:
        out, mv = build(single_buffer_weights=True)(*args)
    except Exception:
        # Fallback: some jax versions reject pipeline_mode=Buffered(1); the
        # double-buffered default is still correct (and small here).
        out, mv = build(single_buffer_weights=False)(*args)

    output = out[:B].astype(jnp.float32).reshape(B, C, H, W)
    mean = mv[:B, :latent]
    log_var = mv[:B, Lp:Lp + latent]
    return output, mean, log_var


def init_params(key, in_dim, hidden_dim, latent_dim):
    """Deterministic PyTorch-Linear-style init (uniform +/- 1/sqrt(fan_in))."""
    def linear(k, fan_in, fan_out):
        kw, kb = jax.random.split(k)
        bound = 1.0 / jnp.sqrt(float(fan_in))
        w = jax.random.uniform(kw, (fan_in, fan_out), jnp.float32, -bound, bound)
        b = jax.random.uniform(kb, (1, fan_out), jnp.float32, -bound, bound)
        return w, b

    k1, k2, k3, k4, k5 = jax.random.split(key, 5)
    w1, b1 = linear(k1, in_dim, hidden_dim)      # encoder trunk
    wm, bm = linear(k2, hidden_dim, latent_dim)  # mean head
    wv, bv = linear(k3, hidden_dim, latent_dim)  # log_var head
    w3, b3 = linear(k4, latent_dim, hidden_dim)  # decoder trunk
    w4, b4 = linear(k5, hidden_dim, in_dim)      # decoder output
    return (w1, b1, wm, bm, wv, bv, w3, b3, w4, b4)


if __name__ == "__main__":
    # Small shapes consistent with an image VAE: NCHW = [2, 4, 16, 16]
    B, C, H, W = 2, 4, 16, 16
    in_dim = C * H * W            # 1024
    hidden_dim = 256
    latent_dim = 32

    root = jax.random.PRNGKey(0)
    k_x, k_eps, k_params = jax.random.split(root, 3)

    x = jax.random.normal(k_x, (B, C, H, W), jnp.float32)
    # eps plays the role of torch.randn(mean.shape) in sample_latent_noise;
    # generated deterministically here so the forward is reproducible.
    eps = jax.random.normal(k_eps, (B, latent_dim), jnp.float32)
    params = init_params(k_params, in_dim, hidden_dim, latent_dim)

    output, mean, log_var = jax.block_until_ready(vae_forward(x, eps, params))

    # Pure-JAX reference with the same bf16-operand / f32-accumulate recipe.
    # (bf16 MXU operands and bf16 output writeback are an intentional precision
    #  trade-off vs a pure-f32 PyTorch VAE; tolerances below reflect that.)
    (w1, b1, wm, bm, wv, bv, w3, b3, w4, b4) = params
    xf = x.reshape(B, in_dim).astype(jnp.bfloat16)
    h_r = jnp.maximum(
        jnp.dot(xf, w1.astype(jnp.bfloat16), preferred_element_type=jnp.float32) + b1, 0.0)
    hb = h_r.astype(jnp.bfloat16)
    mean_r = jnp.dot(hb, wm.astype(jnp.bfloat16),
                     preferred_element_type=jnp.float32) + bm
    lv_r = jnp.dot(hb, wv.astype(jnp.bfloat16),
                   preferred_element_type=jnp.float32) + bv
    z_r = mean_r + eps * jnp.exp(0.5 * lv_r)
    h2_r = jnp.maximum(
        jnp.dot(z_r.astype(jnp.bfloat16), w3.astype(jnp.bfloat16),
                preferred_element_type=jnp.float32) + b3, 0.0)
    out_r = jax.nn.sigmoid(
        jnp.dot(h2_r.astype(jnp.bfloat16), w4.astype(jnp.bfloat16),
                preferred_element_type=jnp.float32) + b4).reshape(B, C, H, W)

    assert output.shape == (B, C, H, W)
    assert mean.shape == (B, latent_dim) and log_var.shape == (B, latent_dim)
    assert jnp.allclose(output, out_r, atol=1e-2, rtol=1e-2)
    assert jnp.allclose(mean, mean_r, atol=1e-2, rtol=1e-2)
    assert jnp.allclose(log_var, lv_r, atol=1e-2, rtol=1e-2)

    print("KERNEL_OK")
</pallas_src>

<mosaic_0001>
module attributes {stable_mosaic.version = 11 : i64} {
  func.func @vae_kernel(%arg0: i32, %arg1: memref<16x1024xbf16, #tpu.memory_space<vmem>>, %arg2: memref<16x128xf32, #tpu.memory_space<vmem>>, %arg3: memref<1024x256xbf16, #tpu.memory_space<vmem>>, %arg4: memref<1x256xf32, #tpu.memory_space<vmem>>, %arg5: memref<256x256xbf16, #tpu.memory_space<vmem>>, %arg6: memref<1x256xf32, #tpu.memory_space<vmem>>, %arg7: memref<128x256xbf16, #tpu.memory_space<vmem>>, %arg8: memref<1x256xf32, #tpu.memory_space<vmem>>, %arg9: memref<256x1024xbf16, #tpu.memory_space<vmem>>, %arg10: memref<1x1024xf32, #tpu.memory_space<vmem>>, %arg11: memref<16x1024xbf16, #tpu.memory_space<vmem>>, %arg12: memref<16x256xf32, #tpu.memory_space<vmem>>) attributes {dimension_semantics = [#tpu.dimension_semantics<parallel>], iteration_bounds = array<i64: 1>, scalar_prefetch = 0 : i64, scratch_operands = 0 : i64, tpu.core_type = #tpu.core_type<tc>, window_params = [{transform_indices = @transform_0, window_bounds = array<i64: 16, 1024>}, {transform_indices = @transform_1, window_bounds = array<i64: 16, 128>}, {pipeline_mode = #tpu.pipeline_mode<synchronous>, transform_indices = @transform_2, window_bounds = array<i64: 1024, 256>}, {pipeline_mode = #tpu.pipeline_mode<synchronous>, transform_indices = @transform_3, window_bounds = array<i64: 1, 256>}, {pipeline_mode = #tpu.pipeline_mode<synchronous>, transform_indices = @transform_4, window_bounds = array<i64: 256, 256>}, {pipeline_mode = #tpu.pipeline_mode<synchronous>, transform_indices = @transform_5, window_bounds = array<i64: 1, 256>}, {pipeline_mode = #tpu.pipeline_mode<synchronous>, transform_indices = @transform_6, window_bounds = array<i64: 128, 256>}, {pipeline_mode = #tpu.pipeline_mode<synchronous>, transform_indices = @transform_7, window_bounds = array<i64: 1, 256>}, {pipeline_mode = #tpu.pipeline_mode<synchronous>, transform_indices = @transform_8, window_bounds = array<i64: 256, 1024>}, {pipeline_mode = #tpu.pipeline_mode<synchronous>, transform_indices = @transform_9, window_bounds = array<i64: 1, 1024>}, {transform_indices = @transform_10, window_bounds = array<i64: 16, 1024>}, {transform_indices = @transform_11, window_bounds = array<i64: 16, 256>}]} {
    %c0 = arith.constant 0 : index
    %c0_0 = arith.constant 0 : index
    %0 = vector.load %arg1[%c0, %c0_0] : memref<16x1024xbf16, #tpu.memory_space<vmem>>, vector<16x1024xbf16>
    %c0_1 = arith.constant 0 : index
    %c0_2 = arith.constant 0 : index
    %1 = vector.load %arg3[%c0_1, %c0_2] : memref<1024x256xbf16, #tpu.memory_space<vmem>>, vector<1024x256xbf16>
    %cst = arith.constant dense<0.000000e+00> : vector<16x256xf32>
    %2 = tpu.matmul %0, %1, %cst {dimension_numbers = #tpu.dot_dimension_numbers<[1], [0], [0], [1], [0, 0, 1, 1], [], []>} : vector<16x1024xbf16>, vector<1024x256xbf16>, vector<16x256xf32> -> vector<16x256xf32>
    %c0_3 = arith.constant 0 : index
    %c0_4 = arith.constant 0 : index
    %3 = vector.load %arg4[%c0_3, %c0_4] : memref<1x256xf32, #tpu.memory_space<vmem>>, vector<1x256xf32>
    %4 = vector.broadcast %3 : vector<1x256xf32> to vector<16x256xf32>
    %5 = arith.addf %2, %4 : vector<16x256xf32>
    %cst_5 = arith.constant 0.000000e+00 : f32
    %6 = vector.broadcast %cst_5 : f32 to vector<16x256xf32>
    %7 = arith.maximumf %5, %6 : vector<16x256xf32>
    %8 = arith.truncf %7 : vector<16x256xf32> to vector<16x256xbf16>
    %c0_6 = arith.constant 0 : index
    %c0_7 = arith.constant 0 : index
    %9 = vector.load %arg5[%c0_6, %c0_7] : memref<256x256xbf16, #tpu.memory_space<vmem>>, vector<256x256xbf16>
    %cst_8 = arith.constant dense<0.000000e+00> : vector<16x256xf32>
    %10 = tpu.matmul %8, %9, %cst_8 {dimension_numbers = #tpu.dot_dimension_numbers<[1], [0], [0], [1], [0, 0, 1, 1], [], []>} : vector<16x256xbf16>, vector<256x256xbf16>, vector<16x256xf32> -> vector<16x256xf32>
    %c0_9 = arith.constant 0 : index
    %c0_10 = arith.constant 0 : index
    %11 = vector.load %arg6[%c0_9, %c0_10] : memref<1x256xf32, #tpu.memory_space<vmem>>, vector<1x256xf32>
    %12 = vector.broadcast %11 : vector<1x256xf32> to vector<16x256xf32>
    %13 = arith.addf %10, %12 : vector<16x256xf32>
    %14 = vector.extract_strided_slice %13 {offsets = [0, 0], sizes = [16, 128], strides = [1, 1]} : vector<16x256xf32> to vector<16x128xf32>
    %15 = vector.extract_strided_slice %13 {offsets = [0, 128], sizes = [16, 128], strides = [1, 1]} : vector<16x256xf32> to vector<16x128xf32>
    %cst_11 = arith.constant 5.000000e-01 : f32
    %16 = vector.broadcast %cst_11 : f32 to vector<16x128xf32>
    %17 = arith.mulf %16, %15 : vector<16x128xf32>
    %18 = math.exp %17 : vector<16x128xf32>
    %c0_12 = arith.constant 0 : index
    %c0_13 = arith.constant 0 : index
    %19 = vector.load %arg2[%c0_12, %c0_13] : memref<16x128xf32, #tpu.memory_space<vmem>>, vector<16x128xf32>
    %20 = arith.mulf %19, %18 : vector<16x128xf32>
    %21 = arith.addf %14, %20 : vector<16x128xf32>
    %22 = arith.truncf %21 : vector<16x128xf32> to vector<16x128xbf16>
    %c0_14 = arith.constant 0 : index
    %c0_15 = arith.constant 0 : index
    %23 = vector.load %arg7[%c0_14, %c0_15] : memref<128x256xbf16, #tpu.memory_space<vmem>>, vector<128x256xbf16>
    %cst_16 = arith.constant dense<0.000000e+00> : vector<16x256xf32>
    %24 = tpu.matmul %22, %23, %cst_16 {dimension_numbers = #tpu.dot_dimension_numbers<[1], [0], [0], [1], [0, 0, 1, 1], [], []>} : vector<16x128xbf16>, vector<128x256xbf16>, vector<16x256xf32> -> vector<16x256xf32>
    %c0_17 = arith.constant 0 : index
    %c0_18 = arith.constant 0 : index
    %25 = vector.load %arg8[%c0_17, %c0_18] : memref<1x256xf32, #tpu.memory_space<vmem>>, vector<1x256xf32>
    %26 = vector.broadcast %25 : vector<1x256xf32> to vector<16x256xf32>
    %27 = arith.addf %24, %26 : vector<16x256xf32>
    %cst_19 = arith.constant 0.000000e+00 : f32
    %28 = vector.broadcast %cst_19 : f32 to vector<16x256xf32>
    %29 = arith.maximumf %27, %28 : vector<16x256xf32>
    %30 = arith.truncf %29 : vector<16x256xf32> to vector<16x256xbf16>
    %c0_20 = arith.constant 0 : index
    %c0_21 = arith.constant 0 : index
    %31 = vector.load %arg9[%c0_20, %c0_21] : memref<256x1024xbf16, #tpu.memory_space<vmem>>, vector<256x1024xbf16>
    %cst_22 = arith.constant dense<0.000000e+00> : vector<16x1024xf32>
    %32 = tpu.matmul %30, %31, %cst_22 {dimension_numbers = #tpu.dot_dimension_numbers<[1], [0], [0], [1], [0, 0, 1, 1], [], []>} : vector<16x256xbf16>, vector<256x1024xbf16>, vector<16x1024xf32> -> vector<16x1024xf32>
    %c0_23 = arith.constant 0 : index
    %c0_24 = arith.constant 0 : index
    %33 = vector.load %arg10[%c0_23, %c0_24] : memref<1x1024xf32, #tpu.memory_space<vmem>>, vector<1x1024xf32>
    %34 = vector.broadcast %33 : vector<1x1024xf32> to vector<16x1024xf32>
    %35 = arith.addf %32, %34 : vector<16x1024xf32>
    %36 = arith.negf %35 : vector<16x1024xf32>
    %37 = math.exp %36 : vector<16x1024xf32>
    %cst_25 = arith.constant 1.000000e+00 : f32
    %38 = vector.broadcast %cst_25 : f32 to vector<16x1024xf32>
    %39 = arith.addf %38, %37 : vector<16x1024xf32>
    %40 = arith.divf %38, %39 : vector<16x1024xf32>
    %41 = arith.truncf %40 : vector<16x1024xf32> to vector<16x1024xbf16>
    %c0_26 = arith.constant 0 : index
    %c0_27 = arith.constant 0 : index
    %42 = vector.load %arg11[%c0_26, %c0_27] : memref<16x1024xbf16, #tpu.memory_space<vmem>>, vector<16x1024xbf16>
    tpu.vector_store %arg11[%c0_26, %c0_27], %41 {strides = array<i32>} : memref<16x1024xbf16, #tpu.memory_space<vmem>>, vector<16x1024xbf16>,
    %c0_28 = arith.constant 0 : index
    %c0_29 = arith.constant 0 : index
    %43 = vector.load %arg12[%c0_28, %c0_29] : memref<16x256xf32, #tpu.memory_space<vmem>>, vector<16x256xf32>
    tpu.vector_store %arg12[%c0_28, %c0_29], %13 {strides = array<i32>} : memref<16x256xf32, #tpu.memory_space<vmem>>, vector<16x256xf32>,
    return
  }
  func.func @transform_0(%arg0: i32) -> (i32, i32) {
    %c0_i32 = arith.constant 0 : i32
    %c0_i32_0 = arith.constant 0 : i32
    return %arg0, %c0_i32 : i32, i32
  }
  func.func @transform_1(%arg0: i32) -> (i32, i32) {
    %c0_i32 = arith.constant 0 : i32
    %c0_i32_0 = arith.constant 0 : i32
    return %arg0, %c0_i32 : i32, i32
  }
  func.func @transform_2(%arg0: i32) -> (i32, i32) {
    %c0_i32 = arith.constant 0 : i32
    %c0_i32_0 = arith.constant 0 : i32
    %c0_i32_1 = arith.constant 0 : i32
    return %c0_i32, %c0_i32_0 : i32, i32
  }
  func.func @transform_3(%arg0: i32) -> (i32, i32) {
    %c0_i32 = arith.constant 0 : i32
    %c0_i32_0 = arith.constant 0 : i32
    %c0_i32_1 = arith.constant 0 : i32
    return %c0_i32, %c0_i32_0 : i32, i32
  }
  func.func @transform_4(%arg0: i32) -> (i32, i32) {
    %c0_i32 = arith.constant 0 : i32
    %c0_i32_0 = arith.constant 0 : i32
    %c0_i32_1 = arith.constant 0 : i32
    return %c0_i32, %c0_i32_0 : i32, i32
  }
  func.func @transform_5(%arg0: i32) -> (i32, i32) {
    %c0_i32 = arith.constant 0 : i32
    %c0_i32_0 = arith.constant 0 : i32
    %c0_i32_1 = arith.constant 0 : i32
    return %c0_i32, %c0_i32_0 : i32, i32
  }
  func.func @transform_6(%arg0: i32) -> (i32, i32) {
    %c0_i32 = arith.constant 0 : i32
    %c0_i32_0 = arith.constant 0 : i32
    %c0_i32_1 = arith.constant 0 : i32
    return %c0_i32, %c0_i32_0 : i32, i32
  }
  func.func @transform_7(%arg0: i32) -> (i32, i32) {
    %c0_i32 = arith.constant 0 : i32
    %c0_i32_0 = arith.constant 0 : i32
    %c0_i32_1 = arith.constant 0 : i32
    return %c0_i32, %c0_i32_0 : i32, i32
  }
  func.func @transform_8(%arg0: i32) -> (i32, i32) {
    %c0_i32 = arith.constant 0 : i32
    %c0_i32_0 = arith.constant 0 : i32
    %c0_i32_1 = arith.constant 0 : i32
    return %c0_i32, %c0_i32_0 : i32, i32
  }
  func.func @transform_9(%arg0: i32) -> (i32, i32) {
    %c0_i32 = arith.constant 0 : i32
    %c0_i32_0 = arith.constant 0 : i32
    %c0_i32_1 = arith.constant 0 : i32
    return %c0_i32, %c0_i32_0 : i32, i32
  }
  func.func @transform_10(%arg0: i32) -> (i32, i32) {
    %c0_i32 = arith.constant 0 : i32
    %c0_i32_0 = arith.constant 0 : i32
    return %arg0, %c0_i32 : i32, i32
  }
  func.func @transform_11(%arg0: i32) -> (i32, i32) {
    %c0_i32 = arith.constant 0 : i32
    %c0_i32_0 = arith.constant 0 : i32
    return %arg0, %c0_i32 : i32, i32
  }
}

module attributes {stable_mosaic.version = 11 : i64} {
  func.func @vae_kernel(%arg0: i32, %arg1: memref<16x1024xbf16, #tpu.memory_space<vmem>>, %arg2: memref<16x128xf32, #tpu.memory_space<vmem>>, %arg3: memref<1024x256xbf16, #tpu.memory_space<vmem>>, %arg4: memref<1x256xf32, #tpu.memory_space<vmem>>, %arg5: memref<256x256xbf16, #tpu.memory_space<vmem>>, %arg6: memref<1x256xf32, #tpu.memory_space<vmem>>, %arg7: memref<128x256xbf16, #tpu.memory_space<vmem>>, %arg8: memref<1x256xf32, #tpu.memory_space<vmem>>, %arg9: memref<256x1024xbf16, #tpu.memory_space<vmem>>, %arg10: memref<1x1024xf32, #tpu.memory_space<vmem>>, %arg11: memref<16x1024xbf16, #tpu.memory_space<vmem>>, %arg12: memref<16x256xf32, #tpu.memory_space<vmem>>) attributes {dimension_semantics = [#tpu.dimension_semantics<parallel>], iteration_bounds = array<i64: 1>, scalar_prefetch = 0 : i64, scratch_operands = 0 : i64, tpu.core_type = #tpu.core_type<tc>, window_params = [{transform_indices = @transform_0, window_bounds = array<i64: 16, 1024>}, {transform_indices = @transform_1, window_bounds = array<i64: 16, 128>}, {pipeline_mode = #tpu.pipeline_mode<synchronous>, transform_indices = @transform_2, window_bounds = array<i64: 1024, 256>}, {pipeline_mode = #tpu.pipeline_mode<synchronous>, transform_indices = @transform_3, window_bounds = array<i64: 1, 256>}, {pipeline_mode = #tpu.pipeline_mode<synchronous>, transform_indices = @transform_4, window_bounds = array<i64: 256, 256>}, {pipeline_mode = #tpu.pipeline_mode<synchronous>, transform_indices = @transform_5, window_bounds = array<i64: 1, 256>}, {pipeline_mode = #tpu.pipeline_mode<synchronous>, transform_indices = @transform_6, window_bounds = array<i64: 128, 256>}, {pipeline_mode = #tpu.pipeline_mode<synchronous>, transform_indices = @transform_7, window_bounds = array<i64: 1, 256>}, {pipeline_mode = #tpu.pipeline_mode<synchronous>, transform_indices = @transform_8, window_bounds = array<i64: 256, 1024>}, {pipeline_mode = #tpu.pipeline_mode<synchronous>, transform_indices = @transform_9, window_bounds = array<i64: 1, 1024>}, {transform_indices = @transform_10, window_bounds = array<i64: 16, 1024>}, {transform_indices = @transform_11, window_bounds = array<i64: 16, 256>}]} {
    %c0 = arith.constant 0 : index
    %c0_0 = arith.constant 0 : index
    %0 = vector.load %arg1[%c0, %c0_0] : memref<16x1024xbf16, #tpu.memory_space<vmem>>, vector<16x1024xbf16>
    %c0_1 = arith.constant 0 : index
    %c0_2 = arith.constant 0 : index
    %1 = vector.load %arg3[%c0_1, %c0_2] : memref<1024x256xbf16, #tpu.memory_space<vmem>>, vector<1024x256xbf16>
    %cst = arith.constant dense<0.000000e+00> : vector<16x256xf32>
    %2 = tpu.matmul %0, %1, %cst {dimension_numbers = #tpu.dot_dimension_numbers<[1], [0], [0], [1], [0, 0, 1, 1], [], []>} : vector<16x1024xbf16>, vector<1024x256xbf16>, vector<16x256xf32> -> vector<16x256xf32>
    %c0_3 = arith.constant 0 : index
    %c0_4 = arith.constant 0 : index
    %3 = vector.load %arg4[%c0_3, %c0_4] : memref<1x256xf32, #tpu.memory_space<vmem>>, vector<1x256xf32>
    %4 = vector.broadcast %3 : vector<1x256xf32> to vector<16x256xf32>
    %5 = arith.addf %2, %4 : vector<16x256xf32>
    %cst_5 = arith.constant 0.000000e+00 : f32
    %6 = vector.broadcast %cst_5 : f32 to vector<16x256xf32>
    %7 = arith.maximumf %5, %6 : vector<16x256xf32>
    %8 = arith.truncf %7 : vector<16x256xf32> to vector<16x256xbf16>
    %c0_6 = arith.constant 0 : index
    %c0_7 = arith.constant 0 : index
    %9 = vector.load %arg5[%c0_6, %c0_7] : memref<256x256xbf16, #tpu.memory_space<vmem>>, vector<256x256xbf16>
    %cst_8 = arith.constant dense<0.000000e+00> : vector<16x256xf32>
    %10 = tpu.matmul %8, %9, %cst_8 {dimension_numbers = #tpu.dot_dimension_numbers<[1], [0], [0], [1], [0, 0, 1, 1], [], []>} : vector<16x256xbf16>, vector<256x256xbf16>, vector<16x256xf32> -> vector<16x256xf32>
    %c0_9 = arith.constant 0 : index
    %c0_10 = arith.constant 0 : index
    %11 = vector.load %arg6[%c0_9, %c0_10] : memref<1x256xf32, #tpu.memory_space<vmem>>, vector<1x256xf32>
    %12 = vector.broadcast %11 : vector<1x256xf32> to vector<16x256xf32>
    %13 = arith.addf %10, %12 : vector<16x256xf32>
    %14 = vector.extract_strided_slice %13 {offsets = [0, 0], sizes = [16, 128], strides = [1, 1]} : vector<16x256xf32> to vector<16x128xf32>
    %15 = vector.extract_strided_slice %13 {offsets = [0, 128], sizes = [16, 128], strides = [1, 1]} : vector<16x256xf32> to vector<16x128xf32>
    %cst_11 = arith.constant 5.000000e-01 : f32
    %16 = vector.broadcast %cst_11 : f32 to vector<16x128xf32>
    %17 = arith.mulf %16, %15 : vector<16x128xf32>
    %18 = math.exp %17 : vector<16x128xf32>
    %c0_12 = arith.constant 0 : index
    %c0_13 = arith.constant 0 : index
    %19 = vector.load %arg2[%c0_12, %c0_13] : memref<16x128xf32, #tpu.memory_space<vmem>>, vector<16x128xf32>
    %20 = arith.mulf %19, %18 : vector<16x128xf32>
    %21 = arith.addf %14, %20 : vector<16x128xf32>
    %22 = arith.truncf %21 : vector<16x128xf32> to vector<16x128xbf16>
    %c0_14 = arith.constant 0 : index
    %c0_15 = arith.constant 0 : index
    %23 = vector.load %arg7[%c0_14, %c0_15] : memref<128x256xbf16, #tpu.memory_space<vmem>>, vector<128x256xbf16>
    %cst_16 = arith.constant dense<0.000000e+00> : vector<16x256xf32>
    %24 = tpu.matmul %22, %23, %cst_16 {dimension_numbers = #tpu.dot_dimension_numbers<[1], [0], [0], [1], [0, 0, 1, 1], [], []>} : vector<16x128xbf16>, vector<128x256xbf16>, vector<16x256xf32> -> vector<16x256xf32>
    %c0_17 = arith.constant 0 : index
    %c0_18 = arith.constant 0 : index
    %25 = vector.load %arg8[%c0_17, %c0_18] : memref<1x256xf32, #tpu.memory_space<vmem>>, vector<1x256xf32>
    %26 = vector.broadcast %25 : vector<1x256xf32> to vector<16x256xf32>
    %27 = arith.addf %24, %26 : vector<16x256xf32>
    %cst_19 = arith.constant 0.000000e+00 : f32
    %28 = vector.broadcast %cst_19 : f32 to vector<16x256xf32>
    %29 = arith.maximumf %27, %28 : vector<16x256xf32>
    %30 = arith.truncf %29 : vector<16x256xf32> to vector<16x256xbf16>
    %c0_20 = arith.constant 0 : index
    %c0_21 = arith.constant 0 : index
    %31 = vector.load %arg9[%c0_20, %c0_21] : memref<256x1024xbf16, #tpu.memory_space<vmem>>, vector<256x1024xbf16>
    %cst_22 = arith.constant dense<0.000000e+00> : vector<16x1024xf32>
    %32 = tpu.matmul %30, %31, %cst_22 {dimension_numbers = #tpu.dot_dimension_numbers<[1], [0], [0], [1], [0, 0, 1, 1], [], []>} : vector<16x256xbf16>, vector<256x1024xbf16>, vector<16x1024xf32> -> vector<16x1024xf32>
    %c0_23 = arith.constant 0 : index
    %c0_24 = arith.constant 0 : index
    %33 = vector.load %arg10[%c0_23, %c0_24] : memref<1x1024xf32, #tpu.memory_space<vmem>>, vector<1x1024xf32>
    %34 = vector.broadcast %33 : vector<1x1024xf32> to vector<16x1024xf32>
    %35 = arith.addf %32, %34 : vector<16x1024xf32>
    %36 = arith.negf %35 : vector<16x1024xf32>
    %37 = math.exp %36 : vector<16x1024xf32>
    %cst_25 = arith.constant 1.000000e+00 : f32
    %38 = vector.broadcast %cst_25 : f32 to vector<16x1024xf32>
    %39 = arith.addf %38, %37 : vector<16x1024xf32>
    %40 = arith.divf %38, %39 : vector<16x1024xf32>
    %41 = arith.truncf %40 : vector<16x1024xf32> to vector<16x1024xbf16>
    %c0_26 = arith.constant 0 : index
    %c0_27 = arith.constant 0 : index
    %42 = vector.load %arg11[%c0_26, %c0_27] : memref<16x1024xbf16, #tpu.memory_space<vmem>>, vector<16x1024xbf16>
    tpu.vector_store %arg11[%c0_26, %c0_27], %41 {strides = array<i32>} : memref<16x1024xbf16, #tpu.memory_space<vmem>>, vector<16x1024xbf16>,
    %c0_28 = arith.constant 0 : index
    %c0_29 = arith.constant 0 : index
    %43 = vector.load %arg12[%c0_28, %c0_29] : memref<16x256xf32, #tpu.memory_space<vmem>>, vector<16x256xf32>
    tpu.vector_store %arg12[%c0_28, %c0_29], %13 {strides = array<i32>} : memref<16x256xf32, #tpu.memory_space<vmem>>, vector<16x256xf32>,
    return
  }
  func.func @transform_0(%arg0: i32) -> (i32, i32) {
    %c0_i32 = arith.constant 0 : i32
    %c0_i32_0 = arith.constant 0 : i32
    return %arg0, %c0_i32 : i32, i32
  }
  func.func @transform_1(%arg0: i32) -> (i32, i32) {
    %c0_i32 = arith.constant 0 : i32
    %c0_i32_0 = arith.constant 0 : i32
    return %arg0, %c0_i32 : i32, i32
  }
  func.func @transform_2(%arg0: i32) -> (i32, i32) {
    %c0_i32 = arith.constant 0 : i32
    %c0_i32_0 = arith.constant 0 : i32
    %c0_i32_1 = arith.constant 0 : i32
    return %c0_i32, %c0_i32_0 : i32, i32
  }
  func.func @transform_3(%arg0: i32) -> (i32, i32) {
    %c0_i32 = arith.constant 0 : i32
    %c0_i32_0 = arith.constant 0 : i32
    %c0_i32_1 = arith.constant 0 : i32
    return %c0_i32, %c0_i32_0 : i32, i32
  }
  func.func @transform_4(%arg0: i32) -> (i32, i32) {
    %c0_i32 = arith.constant 0 : i32
    %c0_i32_0 = arith.constant 0 : i32
    %c0_i32_1 = arith.constant 0 : i32
    return %c0_i32, %c0_i32_0 : i32, i32
  }
  func.func @transform_5(%arg0: i32) -> (i32, i32) {
    %c0_i32 = arith.constant 0 : i32
    %c0_i32_0 = arith.constant 0 : i32
    %c0_i32_1 = arith.constant 0 : i32
    return %c0_i32, %c0_i32_0 : i32, i32
  }
  func.func @transform_6(%arg0: i32) -> (i32, i32) {
    %c0_i32 = arith.constant 0 : i32
    %c0_i32_0 = arith.constant 0 : i32
    %c0_i32_1 = arith.constant 0 : i32
    return %c0_i32, %c0_i32_0 : i32, i32
  }
  func.func @transform_7(%arg0: i32) -> (i32, i32) {
    %c0_i32 = arith.constant 0 : i32
    %c0_i32_0 = arith.constant 0 : i32
    %c0_i32_1 = arith.constant 0 : i32
    return %c0_i32, %c0_i32_0 : i32, i32
  }
  func.func @transform_8(%arg0: i32) -> (i32, i32) {
    %c0_i32 = arith.constant 0 : i32
    %c0_i32_0 = arith.constant 0 : i32
    %c0_i32_1 = arith.constant 0 : i32
    return %c0_i32, %c0_i32_0 : i32, i32
  }
  func.func @transform_9(%arg0: i32) -> (i32, i32) {
    %c0_i32 = arith.constant 0 : i32
    %c0_i32_0 = arith.constant 0 : i32
    %c0_i32_1 = arith.constant 0 : i32
    return %c0_i32, %c0_i32_0 : i32, i32
  }
  func.func @transform_10(%arg0: i32) -> (i32, i32) {
    %c0_i32 = arith.constant 0 : i32
    %c0_i32_0 = arith.constant 0 : i32
    return %arg0, %c0_i32 : i32, i32
  }
  func.func @transform_11(%arg0: i32) -> (i32, i32) {
    %c0_i32 = arith.constant 0 : i32
    %c0_i32_0 = arith.constant 0 : i32
    return %arg0, %c0_i32 : i32, i32
  }
}

</mosaic_0001>

<bundles_post_ra>
// kernel: tpu_custom_call.1
= control target key start
LH: loop header
LB: loop body
LE: loop exit
PB: predicated region body
PF: predicated region fallthrough
CT: control target
= control target key end

     0   :  { %17 = vsyncpa [#allocation3], 0  ;;  %s3897_s0 = inlined_call_operand.hbm [shape: bf16[16,1024], index: 0, kind: input, shape index: {}]   ;;  %s3898_s1 = inlined_call_operand.hbm [shape: f32[16,128], index: 1, kind: input, shape index: {}]   ;;  %s3899_s2 = inlined_call_operand.hbm [shape: bf16[1024,256], index: 2, kind: input, shape index: {}]   ;;  %s3900_s3 = inlined_call_operand.vmem [shape: f32[1,256], index: 3, kind: input, shape index: {}]   ;;  %s3901_s4 = inlined_call_operand.hbm [shape: bf16[256,256], index: 4, kind: input, shape index: {}]   ;;  %s3902_s5 = inlined_call_operand.vmem [shape: f32[1,256], index: 5, kind: input, shape index: {}]   ;;  %s3903_s6 = inlined_call_operand.hbm [shape: bf16[128,256], index: 6, kind: input, shape index: {}]   ;;  %s3904_s7 = inlined_call_operand.vmem [shape: f32[1,256], index: 7, kind: input, shape index: {}]   ;;  %s3905_s8 = inlined_call_operand.hbm [shape: bf16[256,1024], index: 8, kind: input, shape index: {}]   ;;  %s3906_s9 = inlined_call_operand.vmem [shape: f32[1,1024], index: 9, kind: input, shape index: {}]   ;;  %s3907_s10 = inlined_call_operand.hbm [shape: bf16[16,1024], index: 10, kind: output, shape index: {0}]   ;;  %s3908_s11 = inlined_call_operand.hbm [shape: f32[16,256], index: 11, kind: output, shape index: {1}]  }
   0x1   :  { %18 = vsyncpa [#allocation6], 0 }
   0x2   :  { %19 = vsyncpa [#allocation9], 0 }
   0x3   :  { %20 = vsyncpa [#allocation12], 0 }
   0x4   :  { %21 = vsyncpa [#allocation4], 0 }
   0x5   :  { %22 = vsyncpa [#allocation15], 0  ;;  %s3614_s17 = smov [#allocation5]   ;;  %s3426_s21 = scalar_lea.hbm %s3898_s1, 256 }
   0x6   :  { %s40_s18 = sshll.u32 %s3614_s17, 4  ;;  %p3427_p0 = scmp.ne.s32.totalorder %s3898_s1, %s3426_s21  ;;  %s41_s18 = int_to_ptr.vmem [resolvable:$true] %s40_s18 }
   0x7   :  { %p3430_p1 = scmp.lt.u32.totalorder %s3426_s21, %s3898_s1 }
   0x9   :  { %p3432_p2 = pnand %p3430_p1, %p3427_p0 }
   0xb   :  { %3435 = shalt.err (!%p3432_p2)
}
   0xc   :  { %s3436_s26 = scalar_lea.vmem %s41_s18, 256  ;;  %p3441_p4 = scmp.lt.s32.totalorder %s41_s18, %s41_s18 }
   0xd   :  { %p3437_p3 = scmp.ne.s32.totalorder %s41_s18, %s3436_s26  ;;  %p3442_p5 = scmp.lt.s32.totalorder %s3436_s26, %s3436_s26 }
   0xf   :  { %p3443_p6 = por %p3442_p5, %p3441_p4 }
  0x11   :  { %p3444_p7 = pnand %p3443_p6, %p3437_p3 }
  0x13   :  { %3447 = shalt.err (!%p3444_p7)
}
  0x14   :  { %s3615_s27 = smov 128   ;;  %s3616_s28 = smov 8  }
  0x15   :  { %46 = dma.hbm_to_vmem [thread:$0]  %s3898_s1, 256, %s41_s18, [#allocation6], %s3615_s27, %s3615_s27, %s3616_s28  }
  0x16   :  { %s3617_s12 = smov [#allocation8]   ;;  %s3618_s14 = smov [#allocation2]  }
  0x17   :  { %s66_s13 = sshll.u32 %s3617_s12, 4  ;;  %s28_s15 = sshll.u32 %s3618_s14, 4  ;;  %s67_s13 = int_to_ptr.vmem [resolvable:$true] %s66_s13  ;;  %s29_s15 = int_to_ptr.vmem [resolvable:$true] %s28_s15 }
  0x18   :  { %s3448_s19 = scalar_lea.hbm %s3901_s4, 4096 }
  0x19   :  { %p3449_p8 = scmp.ne.s32.totalorder %s3901_s4, %s3448_s19  ;;  %p3452_p9 = scmp.lt.u32.totalorder %s3448_s19, %s3901_s4 }
  0x1b   :  { %p3454_p10 = pnand %p3452_p9, %p3449_p8 }
  0x1d   :  { %3457 = shalt.err (!%p3454_p10)
}
  0x1e   :  { %s3458_s1 = scalar_lea.vmem %s67_s13, 4096  ;;  %p3463_p12 = scmp.lt.s32.totalorder %s67_s13, %s67_s13 }
  0x1f   :  { %p3459_p11 = scmp.ne.s32.totalorder %s67_s13, %s3458_s1  ;;  %p3464_p13 = scmp.lt.s32.totalorder %s3458_s1, %s3458_s1 }
  0x21   :  { %p3465_p0 = por %p3464_p13, %p3463_p12 }
  0x23   :  { %p3466_p1 = pnand %p3465_p0, %p3459_p11 }
  0x25   :  { %3469 = shalt.err (!%p3466_p1)
}
  0x26   :  { %72 = dma.hbm_to_vmem [thread:$0]  %s3901_s4, 4096, %s67_s13, [#allocation9], %s3615_s27, %s3615_s27, %s3616_s28  }
  0x27   :  { %s3470_s29 = scalar_lea.hbm %s3897_s0, 1024 }
  0x28   :  { %p3471_p2 = scmp.ne.s32.totalorder %s3897_s0, %s3470_s29  ;;  %p3474_p3 = scmp.lt.u32.totalorder %s3470_s29, %s3897_s0 }
  0x2a   :  { %p3476_p4 = pnand %p3474_p3, %p3471_p2 }
  0x2c   :  { %3479 = shalt.err (!%p3476_p4)
}
  0x2d   :  { %s3480_s17 = scalar_lea.vmem %s29_s15, 1024  ;;  %p3485_p6 = scmp.lt.s32.totalorder %s29_s15, %s29_s15 }
  0x2e   :  { %p3481_p5 = scmp.ne.s32.totalorder %s29_s15, %s3480_s17  ;;  %p3486_p7 = scmp.lt.s32.totalorder %s3480_s17, %s3480_s17 }
  0x30   :  { %p3487_p8 = por %p3486_p7, %p3485_p6 }
  0x32   :  { %p3488_p9 = pnand %p3487_p8, %p3481_p5 }
  0x34   :  { %3491 = shalt.err (!%p3488_p9)
}
  0x35   :  { %s3619_s4 = smov 512   ;;  %s3620_s13 = smov 32  }
  0x36   :  { %34 = dma.hbm_to_vmem [thread:$0]  %s3897_s0, 1024, %s29_s15, [#allocation3], %s3619_s4, %s3619_s4, %s3620_s13  }
  0x37   :  { %s3621_s21 = smov [#allocation7]   ;;  %s3622_s23 = smov [#allocation10]  }
  0x38   :  { %s52_s22 = sshll.u32 %s3621_s21, 4  ;;  %s80_s1 = sshll.u32 %s3622_s23, 4  ;;  %s53_s22 = int_to_ptr.vmem [resolvable:$true] %s52_s22  ;;  %s81_s1 = int_to_ptr.vmem [resolvable:$true] %s80_s1 }
  0x39   :  { %s3492_s25 = scalar_lea.hbm %s3899_s2, 16384 }
  0x3a   :  { %p3493_p10 = scmp.ne.s32.totalorder %s3899_s2, %s3492_s25  ;;  %p3496_p11 = scmp.lt.u32.totalorder %s3492_s25, %s3899_s2 }
  0x3c   :  { %p3498_p12 = pnand %p3496_p11, %p3493_p10 }
  0x3e   :  { %3501 = shalt.err (!%p3498_p12)
}
  0x3f   :  { %s3502_s0 = scalar_lea.vmem %s53_s22, 16384  ;;  %p3507_p0 = scmp.lt.s32.totalorder %s53_s22, %s53_s22 }
  0x40   :  { %p3503_p13 = scmp.ne.s32.totalorder %s53_s22, %s3502_s0  ;;  %p3508_p1 = scmp.lt.s32.totalorder %s3502_s0, %s3502_s0 }
  0x42   :  { %p3509_p2 = por %p3508_p1, %p3507_p0 }
  0x44   :  { %p3510_p3 = pnand %p3509_p2, %p3503_p13 }
  0x46   :  { %3513 = shalt.err (!%p3510_p3)
}
  0x47   :  { %58 = dma.hbm_to_vmem [thread:$0]  %s3899_s2, 16384, %s53_s22, [#allocation6], %s3615_s27, %s3615_s27, %s3616_s28  }
  0x48   :  { %s3514_s19 = scalar_lea.hbm %s3903_s6, 2048 }
  0x49   :  { %p3515_p4 = scmp.ne.s32.totalorder %s3903_s6, %s3514_s19  ;;  %p3518_p5 = scmp.lt.u32.totalorder %s3514_s19, %s3903_s6 }
  0x4b   :  { %p3520_p6 = pnand %p3518_p5, %p3515_p4 }
  0x4d   :  { %3523 = shalt.err (!%p3520_p6)
}
  0x4e   :  { %s3524_s24 = scalar_lea.vmem %s81_s1, 2048  ;;  %p3529_p8 = scmp.lt.s32.totalorder %s81_s1, %s81_s1 }
  0x4f   :  { %p3525_p7 = scmp.ne.s32.totalorder %s81_s1, %s3524_s24  ;;  %p3530_p9 = scmp.lt.s32.totalorder %s3524_s24, %s3524_s24 }
  0x51   :  { %p3531_p10 = por %p3530_p9, %p3529_p8 }
  0x53   :  { %p3532_p11 = pnand %p3531_p10, %p3525_p7 }
  0x55   :  { %3535 = shalt.err (!%p3532_p11)
}
  0x56   :  { %86 = dma.hbm_to_vmem [thread:$0]  %s3903_s6, 2048, %s81_s1, [#allocation9], %s3615_s27, %s3615_s27, %s3616_s28  }
  0x57   :  { %s3623_s25 = smov [#allocation11]   ;;  %s3536_s12 = scalar_lea.hbm %s3905_s8, 16384 }
  0x58   :  { %s94_s26 = sshll.u32 %s3623_s25, 4  ;;  %p3537_p12 = scmp.ne.s32.totalorder %s3905_s8, %s3536_s12  ;;  %s95_s26 = int_to_ptr.vmem [resolvable:$true] %s94_s26 }
  0x59   :  { %p3540_p13 = scmp.lt.u32.totalorder %s3536_s12, %s3905_s8 }
  0x5b   :  { %p3542_p0 = pnand %p3540_p13, %p3537_p12 }
  0x5d   :  { %3545 = shalt.err (!%p3542_p0)
}
  0x5e   :  { %s3546_s17 = scalar_lea.vmem %s95_s26, 16384  ;;  %p3551_p2 = scmp.lt.s32.totalorder %s95_s26, %s95_s26 }
  0x5f   :  { %p3547_p1 = scmp.ne.s32.totalorder %s95_s26, %s3546_s17  ;;  %p3552_p3 = scmp.lt.s32.totalorder %s3546_s17, %s3546_s17 }
  0x61   :  { %p3553_p4 = por %p3552_p3, %p3551_p2 }
  0x63   :  { %p3554_p5 = pnand %p3553_p4, %p3547_p1 }
  0x65   :  { %3557 = shalt.err (!%p3554_p5)
}
  0x66   :  { %100 = dma.hbm_to_vmem [thread:$0]  %s3905_s8, 16384, %s95_s26, [#allocation12], %s3619_s4, %s3619_s4, %s3620_s13  }
  0x67   :  { %3602 = dma.done.wait [#allocation3], 1024  }
  0x68   :  { %3603 = vsyncadd [#allocation3], 4294966272 }
  0x69   :  { %3604 = dma.done.wait [#allocation6], 16640  }
  0x6a   :  { %3605 = vsyncadd [#allocation6], 4294950656 }
  0x6b   :  { %3606 = dma.done.wait [#allocation9], 6144  }
  0x6c   :  { %3607 = vsyncadd [#allocation9], 4294961152 }
  0x6d   :  { %3608 = dma.done.wait [#allocation12], 16384  }
  0x6e   :  { %3609 = vsyncadd [#allocation12], 4294950912  ;;  %v3094_v0 = vld [vmem:[#allocation7 + $0x4] ss:$8 sps:$4 sm:$0xff]   ;;  %v3096_v1 = vld [vmem:[#allocation7] ss:$8 sps:$4 sm:$0xff]  }
  0x6f   :  { %950 = vmatprep.subr.bf16.mxu0 %v3094_v0  ;;  %v3097_v2 = vld [vmem:[#allocation7 + $0x14] ss:$8 sps:$4 sm:$0xff]   ;;  %v3099_v3 = vld [vmem:[#allocation7 + $0x10] ss:$8 sps:$4 sm:$0xff]   ;;  %v3100_v4 = vld [vmem:[#allocation7 + $0x24] ss:$8 sps:$4 sm:$0xff]  }
  0x70   :  { %951 = vmatpush1.bf16.msra.mxu0 %v3096_v1  ;;  %v3102_v5 = vld [vmem:[#allocation7 + $0x20] ss:$8 sps:$4 sm:$0xff]   ;;  %v3103_v6 = vld [vmem:[#allocation7 + $0x34] ss:$8 sps:$4 sm:$0xff]   ;;  %v3105_v7 = vld [vmem:[#allocation7 + $0x30] ss:$8 sps:$4 sm:$0xff]  }
  0x71   :  { %952 = vmatprep.subr.bf16.mxu0 %v3097_v2  ;;  %v3106_v8 = vld [vmem:[#allocation7 + $0x44] ss:$8 sps:$4 sm:$0xff]   ;;  %v3108_v9 = vld [vmem:[#allocation7 + $0x40] ss:$8 sps:$4 sm:$0xff]   ;;  %v3109_v10 = vld [vmem:[#allocation7 + $0x54] ss:$8 sps:$4 sm:$0xff]  }
  0x72   :  { %v3111_v11 = vld [vmem:[#allocation7 + $0x50] ss:$8 sps:$4 sm:$0xff]   ;;  %v3112_v12 = vld [vmem:[#allocation7 + $0x64] ss:$8 sps:$4 sm:$0xff]   ;;  %v3114_v16 = vld [vmem:[#allocation7 + $0x60] ss:$8 sps:$4 sm:$0xff]  }
  0x73   :  { %v122_v13 = vld [vmem:[#allocation2] sm:$0xff]  ;;  %v3118_v19 = vld [vmem:[#allocation7 + $0x84] ss:$8 sps:$4 sm:$0xff]   ;;  %v3120_v20 = vld [vmem:[#allocation7 + $0x80] ss:$8 sps:$4 sm:$0xff]  }
  0x74   :  { %953 = vmatpush1.bf16.msra.mxu0 %v3099_v3  ;;  %v126_v14 = vld [vmem:[#allocation2 + $0x20] sm:$0xff]  ;;  %v3124_v23 = vld [vmem:[#allocation7 + $0xa4] ss:$8 sps:$4 sm:$0xff]   ;;  %v3126_v24 = vld [vmem:[#allocation7 + $0xa0] ss:$8 sps:$4 sm:$0xff]  }
  0x75   :  { %954 = vmatprep.subr.bf16.mxu0 %v3100_v4  ;;  %v2720_v15 = vcombine.high %v122_v13, %v126_v14  ;;  %v3115_v17 = vld [vmem:[#allocation7 + $0x74] ss:$8 sps:$4 sm:$0xff]   ;;  %v3117_v18 = vld [vmem:[#allocation7 + $0x70] ss:$8 sps:$4 sm:$0xff]   ;;  %v3130_v27 = vld [vmem:[#allocation7 + $0xc4] ss:$8 sps:$4 sm:$0xff]   ;;  %v2719_v38 = vcombine.low %v122_v13, %v126_v14 }
  0x76   :  { %v3121_v21 = vld [vmem:[#allocation7 + $0x94] ss:$8 sps:$4 sm:$0xff]   ;;  %v3123_v22 = vld [vmem:[#allocation7 + $0x90] ss:$8 sps:$4 sm:$0xff]   ;;  %v3132_v28 = vld [vmem:[#allocation7 + $0xc0] ss:$8 sps:$4 sm:$0xff]  }
  0x77   :  { %982 = vmatprep.mubr.bf16.mxu0 %v2720_v15  ;;  %v3127_v25 = vld [vmem:[#allocation7 + $0xb4] ss:$8 sps:$4 sm:$0xff]   ;;  %v3129_v26 = vld [vmem:[#allocation7 + $0xb0] ss:$8 sps:$4 sm:$0xff]   ;;  %v3136_v31 = vld [vmem:[#allocation7 + $0xe4] ss:$8 sps:$4 sm:$0xff]  }
  0x78   :  { %955 = vmatpush1.bf16.msra.mxu0 %v3102_v5  ;;  %v3133_v29 = vld [vmem:[#allocation7 + $0xd4] ss:$8 sps:$4 sm:$0xff]   ;;  %v3135_v30 = vld [vmem:[#allocation7 + $0xd0] ss:$8 sps:$4 sm:$0xff]   ;;  %v3138_v32 = vld [vmem:[#allocation7 + $0xe0] ss:$8 sps:$4 sm:$0xff]  }
  0x79   :  { %956 = vmatprep.subr.bf16.mxu0 %v3103_v6  ;;  %v3139_v33 = vld [vmem:[#allocation7 + $0xf4] ss:$8 sps:$4 sm:$0xff]   ;;  %v3141_v34 = vld [vmem:[#allocation7 + $0xf0] ss:$8 sps:$4 sm:$0xff]   ;;  %v3144_v35 = vld [vmem:[#allocation7 + $0x104] ss:$8 sps:$4 sm:$0xff]  }
  0x7a   :  { %v3779_v36 = vld [vmem:[#allocation2 + $0x8] sm:$0xff]  ;;  %v3142_v39 = vld [vmem:[#allocation7 + $0x100] ss:$8 sps:$4 sm:$0xff]   ;;  %v3150_v43 = vld [vmem:[#allocation7 + $0x124] ss:$8 sps:$4 sm:$0xff]  }
  0x7b   :  { %v3781_v37 = vld [vmem:[#allocation2 + $0x28] sm:$0xff]  ;;  %v3148_v44 = vld [vmem:[#allocation7 + $0x120] ss:$8 sps:$4 sm:$0xff]   ;;  %v3156_v47 = vld [vmem:[#allocation7 + $0x144] ss:$8 sps:$4 sm:$0xff]  }
  0x7c   :  { %957 = vmatpush1.bf16.msra.mxu0 %v3105_v7  ;;  %v2722_v40 = vcombine.high %v3779_v36, %v3781_v37  ;;  %v3147_v41 = vld [vmem:[#allocation7 + $0x114] ss:$8 sps:$4 sm:$0xff]   ;;  %v3145_v42 = vld [vmem:[#allocation7 + $0x110] ss:$8 sps:$4 sm:$0xff]   ;;  %v3154_v48 = vld [vmem:[#allocation7 + $0x140] ss:$8 sps:$4 sm:$0xff]  }
  0x7d   :  { %958 = vmatprep.subr.bf16.mxu0 %v3106_v8  ;;  %v3153_v45 = vld [vmem:[#allocation7 + $0x134] ss:$8 sps:$4 sm:$0xff]   ;;  %v3151_v46 = vld [vmem:[#allocation7 + $0x130] ss:$8 sps:$4 sm:$0xff]   ;;  %v3162_v51 = vld [vmem:[#allocation7 + $0x164] ss:$8 sps:$4 sm:$0xff]  }
  0x7e   :  { %v3159_v49 = vld [vmem:[#allocation7 + $0x154] ss:$8 sps:$4 sm:$0xff]   ;;  %v3157_v50 = vld [vmem:[#allocation7 + $0x150] ss:$8 sps:$4 sm:$0xff]   ;;  %v3160_v52 = vld [vmem:[#allocation7 + $0x160] ss:$8 sps:$4 sm:$0xff]  }
  0x7f   :  { %v3165_v53 = vld [vmem:[#allocation7 + $0x174] ss:$8 sps:$4 sm:$0xff]   ;;  %v3163_v54 = vld [vmem:[#allocation7 + $0x170] ss:$8 sps:$4 sm:$0xff]   ;;  %v3168_v55 = vld [vmem:[#allocation7 + $0x184] ss:$8 sps:$4 sm:$0xff]  }
  0x80   :  { %959 = vmatpush1.bf16.msra.mxu0 %v3108_v9  ;;  %v3166_v56 = vld [vmem:[#allocation7 + $0x180] ss:$8 sps:$4 sm:$0xff]   ;;  %v3171_v57 = vld [vmem:[#allocation7 + $0x194] ss:$8 sps:$4 sm:$0xff]   ;;  %v3169_v58 = vld [vmem:[#allocation7 + $0x190] ss:$8 sps:$4 sm:$0xff]  }
  0x81   :  { %960 = vmatprep.subr.bf16.mxu0 %v3109_v10  ;;  %v3174_v59 = vld [vmem:[#allocation7 + $0x1a4] ss:$8 sps:$4 sm:$0xff]   ;;  %v3172_v60 = vld [vmem:[#allocation7 + $0x1a0] ss:$8 sps:$4 sm:$0xff]   ;;  %v3177_v61 = vld [vmem:[#allocation7 + $0x1b4] ss:$8 sps:$4 sm:$0xff]   ;;  %v2721_v10 = vcombine.low %v3779_v36, %v3781_v37 }
  0x82   :  { %v3175_v62 = vld [vmem:[#allocation7 + $0x1b0] ss:$8 sps:$4 sm:$0xff]   ;;  %v3180_v63 = vld [vmem:[#allocation7 + $0x1c4] ss:$8 sps:$4 sm:$0xff]   ;;  %v3178_v0 = vld [vmem:[#allocation7 + $0x1c0] ss:$8 sps:$4 sm:$0xff]  }
  0x83   :  { %v3183_v1 = vld [vmem:[#allocation7 + $0x1d4] ss:$8 sps:$4 sm:$0xff]   ;;  %v3181_v2 = vld [vmem:[#allocation7 + $0x1d0] ss:$8 sps:$4 sm:$0xff]   ;;  %v3186_v3 = vld [vmem:[#allocation7 + $0x1e4] ss:$8 sps:$4 sm:$0xff]  }
  0x84   :  { %961 = vmatpush1.bf16.msra.mxu0 %v3111_v11  ;;  %v3184_v4 = vld [vmem:[#allocation7 + $0x1e0] ss:$8 sps:$4 sm:$0xff]   ;;  %v3189_v5 = vld [vmem:[#allocation7 + $0x1f4] ss:$8 sps:$4 sm:$0xff]   ;;  %v3187_v6 = vld [vmem:[#allocation7 + $0x1f0] ss:$8 sps:$4 sm:$0xff]  }
  0x85   :  { %962 = vmatprep.subr.bf16.mxu0 %v3112_v12  ;;  %v3192_v7 = vld [vmem:[#allocation7 + $0x204] ss:$8 sps:$4 sm:$0xff]   ;;  %v3190_v11 = vld [vmem:[#allocation7 + $0x200] ss:$8 sps:$4 sm:$0xff]   ;;  %v3195_v13 = vld [vmem:[#allocation7 + $0x214] ss:$8 sps:$4 sm:$0xff]  }
  0x86   :  { %v3785_v8 = vld [vmem:[#allocation2 + $0x10] sm:$0xff] }
  0x87   :  { %v3787_v9 = vld [vmem:[#allocation2 + $0x30] sm:$0xff] }
  0x88   :  { %963 = vmatpush1.bf16.msra.mxu0 %v3114_v16  ;;  %v2724_v12 = vcombine.high %v3785_v8, %v3787_v9  ;;  %v3286_v14 = vld [vmem:[#allocation8 + $0x4] ss:$8 sps:$4 sm:$0xff]   ;;  %v3288_v15 = vld [vmem:[#allocation8] ss:$8 sps:$4 sm:$0xff]   ;;  %v3289_v16 = vld [vmem:[#allocation8 + $0x14] ss:$8 sps:$4 sm:$0xff]  }
  0x89   :  { %964 = vmatprep.subr.bf16.mxu0 %v3115_v17  ;;  %v3193_v17 = vld [vmem:[#allocation7 + $0x210] ss:$8 sps:$4 sm:$0xff]   ;;  %1332 = vmatprep.subr.bf16.mxu1 %v3286_v14  ;;  %v3304_v36 = vld [vmem:[#allocation8 + $0x64] ss:$8 sps:$4 sm:$0xff]   ;;  %v3208_v37 = vld [vmem:[#allocation7 + $0x260] ss:$8 sps:$4 sm:$0xff]  }
  0x8a   :  { %1333 = vmatpush1.bf16.msra.mxu1 %v3288_v15  ;;  %v3243_v14 = vld [vmem:[#allocation7 + $0x314] ss:$8 sps:$4 sm:$0xff]   ;;  %v3241_v15 = vld [vmem:[#allocation7 + $0x310] ss:$8 sps:$4 sm:$0xff]  }
  0x8b   :  { %1334 = vmatprep.subr.bf16.mxu1 %v3289_v16  ;;  %v3246_v16 = vld [vmem:[#allocation7 + $0x324] ss:$8 sps:$4 sm:$0xff]  }
  0x8c   :  { %965 = vmatpush1.bf16.msra.mxu0 %v3117_v18  ;;  %v3198_v18 = vld [vmem:[#allocation7 + $0x224] ss:$8 sps:$4 sm:$0xff]  }
  0x8d   :  { %966 = vmatprep.subr.bf16.mxu0 %v3118_v19  ;;  %v3291_v19 = vld [vmem:[#allocation8 + $0x10] ss:$8 sps:$4 sm:$0xff]  }
  0x8e   :  { %1335 = vmatpush1.bf16.msra.mxu1 %v3291_v19  ;;  %v3247_v19 = vld [vmem:[#allocation7 + $0x330] ss:$8 sps:$4 sm:$0xff]  }
  0x90   :  { %967 = vmatpush1.bf16.msra.mxu0 %v3120_v20  ;;  %v3292_v20 = vld [vmem:[#allocation8 + $0x24] ss:$8 sps:$4 sm:$0xff]  }
  0x91   :  { %968 = vmatprep.subr.bf16.mxu0 %v3121_v21  ;;  %v3196_v21 = vld [vmem:[#allocation7 + $0x220] ss:$8 sps:$4 sm:$0xff]   ;;  %1336 = vmatprep.subr.bf16.mxu1 %v3292_v20  ;;  %v3255_v20 = vld [vmem:[#allocation7 + $0x354] ss:$8 sps:$4 sm:$0xff]  }
  0x94   :  { %969 = vmatpush1.bf16.msra.mxu0 %v3123_v22  ;;  %v3201_v22 = vld [vmem:[#allocation7 + $0x234] ss:$8 sps:$4 sm:$0xff]  }
  0x95   :  { %970 = vmatprep.subr.bf16.mxu0 %v3124_v23  ;;  %v3294_v23 = vld [vmem:[#allocation8 + $0x20] ss:$8 sps:$4 sm:$0xff]  }
  0x96   :  { %1337 = vmatpush1.bf16.msra.mxu1 %v3294_v23  ;;  %v3256_v23 = vld [vmem:[#allocation7 + $0x360] ss:$8 sps:$4 sm:$0xff]  }
  0x98   :  { %971 = vmatpush1.bf16.msra.mxu0 %v3126_v24  ;;  %v3295_v24 = vld [vmem:[#allocation8 + $0x34] ss:$8 sps:$4 sm:$0xff]  }
  0x99   :  { %972 = vmatprep.subr.bf16.mxu0 %v3127_v25  ;;  %v3199_v25 = vld [vmem:[#allocation7 + $0x230] ss:$8 sps:$4 sm:$0xff]   ;;  %1338 = vmatprep.subr.bf16.mxu1 %v3295_v24  ;;  %v3261_v24 = vld [vmem:[#allocation7 + $0x374] ss:$8 sps:$4 sm:$0xff]  }
  0x9c   :  { %973 = vmatpush1.bf16.msra.mxu0 %v3129_v26  ;;  %v3204_v26 = vld [vmem:[#allocation7 + $0x244] ss:$8 sps:$4 sm:$0xff]  }
  0x9d   :  { %974 = vmatprep.subr.bf16.mxu0 %v3130_v27  ;;  %v3297_v27 = vld [vmem:[#allocation8 + $0x30] ss:$8 sps:$4 sm:$0xff]  }
  0x9e   :  { %1339 = vmatpush1.bf16.msra.mxu1 %v3297_v27  ;;  %v3262_v27 = vld [vmem:[#allocation7 + $0x380] ss:$8 sps:$4 sm:$0xff]  }
  0xa0   :  { %975 = vmatpush1.bf16.msra.mxu0 %v3132_v28  ;;  %v3298_v28 = vld [vmem:[#allocation8 + $0x44] ss:$8 sps:$4 sm:$0xff]  }
  0xa1   :  { %976 = vmatprep.subr.bf16.mxu0 %v3133_v29  ;;  %v3202_v29 = vld [vmem:[#allocation7 + $0x240] ss:$8 sps:$4 sm:$0xff]   ;;  %1340 = vmatprep.subr.bf16.mxu1 %v3298_v28  ;;  %v3267_v28 = vld [vmem:[#allocation7 + $0x394] ss:$8 sps:$4 sm:$0xff]  }
  0xa4   :  { %977 = vmatpush1.bf16.msra.mxu0 %v3135_v30  ;;  %v3207_v30 = vld [vmem:[#allocation7 + $0x254] ss:$8 sps:$4 sm:$0xff]  }
  0xa5   :  { %978 = vmatprep.subr.bf16.mxu0 %v3136_v31  ;;  %v3300_v31 = vld [vmem:[#allocation8 + $0x40] ss:$8 sps:$4 sm:$0xff]  }
  0xa6   :  { %1341 = vmatpush1.bf16.msra.mxu1 %v3300_v31  ;;  %v3268_v31 = vld [vmem:[#allocation7 + $0x3a0] ss:$8 sps:$4 sm:$0xff]  }
  0xa8   :  { %979 = vmatpush1.bf16.msra.mxu0 %v3138_v32  ;;  %v3301_v32 = vld [vmem:[#allocation8 + $0x54] ss:$8 sps:$4 sm:$0xff]  }
  0xa9   :  { %980 = vmatprep.subr.bf16.mxu0 %v3139_v33  ;;  %v3205_v33 = vld [vmem:[#allocation7 + $0x250] ss:$8 sps:$4 sm:$0xff]   ;;  %1342 = vmatprep.subr.bf16.mxu1 %v3301_v32  ;;  %v3273_v32 = vld [vmem:[#allocation7 + $0x3b4] ss:$8 sps:$4 sm:$0xff]  }
  0xac   :  { %981 = vmatpush1.bf16.msra.mxu0 %v3141_v34  ;;  %v3210_v34 = vld [vmem:[#allocation7 + $0x264] ss:$8 sps:$4 sm:$0xff]  }
  0xad   :  { %993 = vmatprep.subr.bf16.mxu0 %v3144_v35  ;;  %v3303_v35 = vld [vmem:[#allocation8 + $0x50] ss:$8 sps:$4 sm:$0xff]  }
  0xae   :  { %1343 = vmatpush1.bf16.msra.mxu1 %v3303_v35  ;;  %v3274_v35 = vld [vmem:[#allocation7 + $0x3c0] ss:$8 sps:$4 sm:$0xff]  }
  0xaf   :  { %983 = vmatmul.mubr.bf16.vlgmr.msra.gmra.mrb[0].mxu0 %v2719_v38  ;;  %v3213_v38 = vld [vmem:[#allocation7 + $0x274] ss:$8 sps:$4 sm:$0xff]   ;;  %1344 = vmatprep.subr.bf16.mxu1 %v3304_v36 }
  0xb0   :  { %994 = vmatpush1.bf16.msra.mxu0 %v3142_v39  ;;  %1025 = vmatprep.mubr.bf16.mxu0 %v2722_v40  ;;  %v3306_v39 = vld [vmem:[#allocation8 + $0x60] ss:$8 sps:$4 sm:$0xff]   ;;  %v3307_v40 = vld [vmem:[#allocation8 + $0x74] ss:$8 sps:$4 sm:$0xff]  }
  0xb1   :  { %995 = vmatprep.subr.bf16.mxu0 %v3147_v41  ;;  %v3211_v41 = vld [vmem:[#allocation7 + $0x270] ss:$8 sps:$4 sm:$0xff]   ;;  %v3279_v36 = vld [vmem:[#allocation7 + $0x3d4] ss:$8 sps:$4 sm:$0xff]  }
  0xb2   :  { %1345 = vmatpush1.bf16.msra.mxu1 %v3306_v39  ;;  %v3280_v39 = vld [vmem:[#allocation7 + $0x3e0] ss:$8 sps:$4 sm:$0xff]  }
  0xb3   :  { %1346 = vmatprep.subr.bf16.mxu1 %v3307_v40  ;;  %v3285_v40 = vld [vmem:[#allocation7 + $0x3f4] ss:$8 sps:$4 sm:$0xff]  }
  0xb4   :  { %996 = vmatpush1.bf16.msra.mxu0 %v3145_v42  ;;  %v3216_v42 = vld [vmem:[#allocation7 + $0x284] ss:$8 sps:$4 sm:$0xff]  }
  0xb5   :  { %997 = vmatprep.subr.bf16.mxu0 %v3150_v43  ;;  %v3309_v43 = vld [vmem:[#allocation8 + $0x70] ss:$8 sps:$4 sm:$0xff]  }
  0xb6   :  { %1347 = vmatpush1.bf16.msra.mxu1 %v3309_v43  ;;  %v3327_v43 = vld [vmem:[#allocation8 + $0xd0] ss:$8 sps:$4 sm:$0xff]  }
  0xb8   :  { %998 = vmatpush1.bf16.msra.mxu0 %v3148_v44  ;;  %v3310_v44 = vld [vmem:[#allocation8 + $0x84] ss:$8 sps:$4 sm:$0xff]  }
  0xb9   :  { %999 = vmatprep.subr.bf16.mxu0 %v3153_v45  ;;  %v3214_v45 = vld [vmem:[#allocation7 + $0x280] ss:$8 sps:$4 sm:$0xff]   ;;  %1348 = vmatprep.subr.bf16.mxu1 %v3310_v44  ;;  %v3328_v44 = vld [vmem:[#allocation8 + $0xe4] ss:$8 sps:$4 sm:$0xff]  }
  0xbc   :  { %1000 = vmatpush1.bf16.msra.mxu0 %v3151_v46  ;;  %v3219_v46 = vld [vmem:[#allocation7 + $0x294] ss:$8 sps:$4 sm:$0xff]  }
  0xbd   :  { %1001 = vmatprep.subr.bf16.mxu0 %v3156_v47  ;;  %v3312_v47 = vld [vmem:[#allocation8 + $0x80] ss:$8 sps:$4 sm:$0xff]  }
  0xbe   :  { %1349 = vmatpush1.bf16.msra.mxu1 %v3312_v47  ;;  %v3333_v47 = vld [vmem:[#allocation8 + $0xf0] ss:$8 sps:$4 sm:$0xff]  }
  0xc0   :  { %1002 = vmatpush1.bf16.msra.mxu0 %v3154_v48  ;;  %v3313_v48 = vld [vmem:[#allocation8 + $0x94] ss:$8 sps:$4 sm:$0xff]  }
  0xc1   :  { %1003 = vmatprep.subr.bf16.mxu0 %v3159_v49  ;;  %v3217_v49 = vld [vmem:[#allocation7 + $0x290] ss:$8 sps:$4 sm:$0xff]   ;;  %1350 = vmatprep.subr.bf16.mxu1 %v3313_v48  ;;  %v3336_v48 = vld [vmem:[#allocation10 + $0x4] ss:$8 sps:$4 sm:$0xff]  }
  0xc4   :  { %1004 = vmatpush1.bf16.msra.mxu0 %v3157_v50  ;;  %v3222_v50 = vld [vmem:[#allocation7 + $0x2a4] ss:$8 sps:$4 sm:$0xff]  }
  0xc5   :  { %1005 = vmatprep.subr.bf16.mxu0 %v3162_v51  ;;  %v3315_v51 = vld [vmem:[#allocation8 + $0x90] ss:$8 sps:$4 sm:$0xff]  }
  0xc6   :  { %1351 = vmatpush1.bf16.msra.mxu1 %v3315_v51 }
  0xc8   :  { %1006 = vmatpush1.bf16.msra.mxu0 %v3160_v52  ;;  %v3316_v52 = vld [vmem:[#allocation8 + $0xa4] ss:$8 sps:$4 sm:$0xff]  }
  0xc9   :  { %1007 = vmatprep.subr.bf16.mxu0 %v3165_v53  ;;  %v3220_v53 = vld [vmem:[#allocation7 + $0x2a0] ss:$8 sps:$4 sm:$0xff]   ;;  %1352 = vmatprep.subr.bf16.mxu1 %v3316_v52  ;;  %v258_v52 = vld [vmem:[%s3900_s3] sm:$0x3] }
  0xcc   :  { %1008 = vmatpush1.bf16.msra.mxu0 %v3163_v54  ;;  %v3225_v54 = vld [vmem:[#allocation7 + $0x2b4] ss:$8 sps:$4 sm:$0xff]  }
  0xcd   :  { %1009 = vmatprep.subr.bf16.mxu0 %v3168_v55  ;;  %v3318_v55 = vld [vmem:[#allocation8 + $0xa0] ss:$8 sps:$4 sm:$0xff]  }
  0xce   :  { %1353 = vmatpush1.bf16.msra.mxu1 %v3318_v55 }
  0xd0   :  { %1010 = vmatpush1.bf16.msra.mxu0 %v3166_v56  ;;  %v3319_v56 = vld [vmem:[#allocation8 + $0xb4] ss:$8 sps:$4 sm:$0xff]  }
  0xd1   :  { %1011 = vmatprep.subr.bf16.mxu0 %v3171_v57  ;;  %v3223_v57 = vld [vmem:[#allocation7 + $0x2b0] ss:$8 sps:$4 sm:$0xff]   ;;  %1354 = vmatprep.subr.bf16.mxu1 %v3319_v56 }
  0xd4   :  { %1012 = vmatpush1.bf16.msra.mxu0 %v3169_v58  ;;  %v3228_v58 = vld [vmem:[#allocation7 + $0x2c4] ss:$8 sps:$4 sm:$0xff]  }
  0xd5   :  { %1013 = vmatprep.subr.bf16.mxu0 %v3174_v59  ;;  %v3321_v59 = vld [vmem:[#allocation8 + $0xb0] ss:$8 sps:$4 sm:$0xff]  }
  0xd6   :  { %1355 = vmatpush1.bf16.msra.mxu1 %v3321_v59 }
  0xd8   :  { %1014 = vmatpush1.bf16.msra.mxu0 %v3172_v60  ;;  %v3322_v60 = vld [vmem:[#allocation8 + $0xc4] ss:$8 sps:$4 sm:$0xff]  }
  0xd9   :  { %1015 = vmatprep.subr.bf16.mxu0 %v3177_v61  ;;  %v3226_v61 = vld [vmem:[#allocation7 + $0x2c0] ss:$8 sps:$4 sm:$0xff]   ;;  %1356 = vmatprep.subr.bf16.mxu1 %v3322_v60 }
  0xdc   :  { %1016 = vmatpush1.bf16.msra.mxu0 %v3175_v62  ;;  %v3231_v62 = vld [vmem:[#allocation7 + $0x2d4] ss:$8 sps:$4 sm:$0xff]  }
  0xdd   :  { %1017 = vmatprep.subr.bf16.mxu0 %v3180_v63  ;;  %v3324_v63 = vld [vmem:[#allocation8 + $0xc0] ss:$8 sps:$4 sm:$0xff]  }
  0xde   :  { %1357 = vmatpush1.bf16.msra.mxu1 %v3324_v63 }
  0xe0   :  { %1018 = vmatpush1.bf16.msra.mxu0 %v3178_v0  ;;  %v3325_v0 = vld [vmem:[#allocation8 + $0xd4] ss:$8 sps:$4 sm:$0xff]  }
  0xe1   :  { %1019 = vmatprep.subr.bf16.mxu0 %v3183_v1  ;;  %v3229_v1 = vld [vmem:[#allocation7 + $0x2d0] ss:$8 sps:$4 sm:$0xff]   ;;  %1358 = vmatprep.subr.bf16.mxu1 %v3325_v0 }
  0xe2   :  { %1359 = vmatpush1.bf16.msra.mxu1 %v3327_v43  ;;  %v1584_v43 = vld [vmem:[#allocation11 + $0x138] sm:$0xff] }
  0xe3   :  { %1360 = vmatprep.subr.bf16.mxu1 %v3328_v44 }
  0xe4   :  { %1020 = vmatpush1.bf16.msra.mxu0 %v3181_v2  ;;  %v3234_v2 = vld [vmem:[#allocation7 + $0x2e4] ss:$8 sps:$4 sm:$0xff]  }
  0xe5   :  { %1021 = vmatprep.subr.bf16.mxu0 %v3186_v3  ;;  %v3232_v3 = vld [vmem:[#allocation7 + $0x2e0] ss:$8 sps:$4 sm:$0xff]  }
  0xe8   :  { %1022 = vmatpush1.bf16.msra.mxu0 %v3184_v4  ;;  %v3237_v4 = vld [vmem:[#allocation7 + $0x2f4] ss:$8 sps:$4 sm:$0xff]  }
  0xe9   :  { %1023 = vmatprep.subr.bf16.mxu0 %v3189_v5  ;;  %v3235_v5 = vld [vmem:[#allocation7 + $0x2f0] ss:$8 sps:$4 sm:$0xff]  }
  0xec   :  { %1024 = vmatpush1.bf16.msra.mxu0 %v3187_v6  ;;  %v3240_v6 = vld [vmem:[#allocation7 + $0x304] ss:$8 sps:$4 sm:$0xff]  }
  0xed   :  { %1036 = vmatprep.subr.bf16.mxu0 %v3192_v7  ;;  %v3793_v7 = vld [vmem:[#allocation2 + $0x18] sm:$0xff] }
  0xef   :  { %1026 = vmatmul.mubr.bf16.vlgmr.msra.gmra.mrb[0].mxu0 %v2721_v10  ;;  %v3795_v10 = vld [vmem:[#allocation2 + $0x38] sm:$0xff] }
  0xf0   :  { %1037 = vmatpush1.bf16.msra.mxu0 %v3190_v11  ;;  %1068 = vmatprep.mubr.bf16.mxu0 %v2724_v12  ;;  %v2723_v11 = vcombine.low %v3785_v8, %v3787_v9  ;;  %v3238_v12 = vld [vmem:[#allocation7 + $0x300] ss:$8 sps:$4 sm:$0xff]   ;;  %v3252_v8 = vld [vmem:[#allocation7 + $0x344] ss:$8 sps:$4 sm:$0xff]  }
  0xf1   :  { %1038 = vmatprep.subr.bf16.mxu0 %v3195_v13  ;;  %v2726_v13 = vcombine.high %v3793_v7, %v3795_v10  ;;  %v3250_v9 = vld [vmem:[#allocation7 + $0x340] ss:$8 sps:$4 sm:$0xff]  }
  0xf4   :  { %1039 = vmatpush1.bf16.msra.mxu0 %v3193_v17  ;;  %v3244_v17 = vld [vmem:[#allocation7 + $0x320] ss:$8 sps:$4 sm:$0xff]  }
  0xf5   :  { %1040 = vmatprep.subr.bf16.mxu0 %v3198_v18  ;;  %v3249_v18 = vld [vmem:[#allocation7 + $0x334] ss:$8 sps:$4 sm:$0xff]  }
  0xf8   :  { %1041 = vmatpush1.bf16.msra.mxu0 %v3196_v21  ;;  %v3253_v21 = vld [vmem:[#allocation7 + $0x350] ss:$8 sps:$4 sm:$0xff]  }
  0xf9   :  { %1042 = vmatprep.subr.bf16.mxu0 %v3201_v22  ;;  %v3258_v22 = vld [vmem:[#allocation7 + $0x364] ss:$8 sps:$4 sm:$0xff]  }
  0xfc   :  { %1043 = vmatpush1.bf16.msra.mxu0 %v3199_v25  ;;  %v3259_v25 = vld [vmem:[#allocation7 + $0x370] ss:$8 sps:$4 sm:$0xff]  }
  0xfd   :  { %1044 = vmatprep.subr.bf16.mxu0 %v3204_v26  ;;  %v3264_v26 = vld [vmem:[#allocation7 + $0x384] ss:$8 sps:$4 sm:$0xff]  }
 0x100   :  { %1045 = vmatpush1.bf16.msra.mxu0 %v3202_v29  ;;  %v3265_v29 = vld [vmem:[#allocation7 + $0x390] ss:$8 sps:$4 sm:$0xff]  }
 0x101   :  { %1046 = vmatprep.subr.bf16.mxu0 %v3207_v30  ;;  %v3270_v30 = vld [vmem:[#allocation7 + $0x3a4] ss:$8 sps:$4 sm:$0xff]  }
 0x104   :  { %1047 = vmatpush1.bf16.msra.mxu0 %v3205_v33  ;;  %v3271_v33 = vld [vmem:[#allocation7 + $0x3b0] ss:$8 sps:$4 sm:$0xff]  }
 0x105   :  { %1048 = vmatprep.subr.bf16.mxu0 %v3210_v34  ;;  %v3276_v34 = vld [vmem:[#allocation7 + $0x3c4] ss:$8 sps:$4 sm:$0xff]  }
 0x108   :  { %1049 = vmatpush1.bf16.msra.mxu0 %v3208_v37  ;;  %v3277_v37 = vld [vmem:[#allocation7 + $0x3d0] ss:$8 sps:$4 sm:$0xff]  }
 0x109   :  { %1050 = vmatprep.subr.bf16.mxu0 %v3213_v38  ;;  %v3282_v38 = vld [vmem:[#allocation7 + $0x3e4] ss:$8 sps:$4 sm:$0xff]  }
 0x10c   :  { %1051 = vmatpush1.bf16.msra.mxu0 %v3211_v41  ;;  %v3283_v41 = vld [vmem:[#allocation7 + $0x3f0] ss:$8 sps:$4 sm:$0xff]  }
 0x10d   :  { %1052 = vmatprep.subr.bf16.mxu0 %v3216_v42  ;;  %v2725_v42 = vcombine.low %v3793_v7, %v3795_v10  ;;  %v3339_v7 = vld [vmem:[#allocation10 + $0x14] ss:$8 sps:$4 sm:$0xff]   ;;  %v3337_v10 = vld [vmem:[#allocation10 + $0x10] ss:$8 sps:$4 sm:$0xff]  }
 0x110   :  { %1053 = vmatpush1.bf16.msra.mxu0 %v3214_v45  ;;  %v3330_v45 = vld [vmem:[#allocation8 + $0xe0] ss:$8 sps:$4 sm:$0xff]  }
 0x111   :  { %1054 = vmatprep.subr.bf16.mxu0 %v3219_v46  ;;  %1361 = vmatpush1.bf16.msra.mxu1 %v3330_v45  ;;  %v3331_v46 = vld [vmem:[#allocation8 + $0xf4] ss:$8 sps:$4 sm:$0xff]  }
 0x112   :  { %1362 = vmatprep.subr.bf16.mxu1 %v3331_v46  ;;  %v1588_v46 = vld [vmem:[#allocation11 + $0x158] sm:$0xff] }
 0x114   :  { %1055 = vmatpush1.bf16.msra.mxu0 %v3217_v49  ;;  %v260_v49 = vlaneseq }
 0x115   :  { %1056 = vmatprep.subr.bf16.mxu0 %v3222_v50  ;;  %1363 = vmatpush1.bf16.msra.mxu1 %v3333_v47  ;;  %v1592_v47 = vld [vmem:[#allocation11 + $0x178] sm:$0xff] }
 0x116   :  { %1496 = vmatprep.subr.bf16.mxu1 %v3336_v48  ;;  %v3803_v50 = vshrl.u32 %v260_v49, 7  ;;  %v2949_v48 = vcombine.low %v1588_v46, %v1592_v47  ;;  %v2950_v49 = vcombine.high %v1588_v46, %v1592_v47  ;;  %v1553_v46 = vld [vmem:[#allocation11 + $0x40] sm:$0xff] }
 0x117   :  { %v1557_v47 = vld [vmem:[#allocation11 + $0x60] sm:$0xff] }
 0x118   :  { %1057 = vmatpush1.bf16.msra.mxu0 %v3220_v53  ;;  %v3806_v51 = vsub.s32 0, %v3803_v50  ;;  %v3812_v53 = vsub.s32 1, %v3803_v50 }
 0x119   :  { %1058 = vmatprep.subr.bf16.mxu0 %v3225_v54 }
 0x11a   :  { %v263_v54 = vrot.slane %v258_v52, %v3806_v51  ;;  %v267_v55 = vrot.slane %v258_v52, %v3812_v53  ;;  %v1596_v52 = vld [vmem:[#allocation11 + $0x198] sm:$0xff] }
 0x11c   :  { %1059 = vmatpush1.bf16.msra.mxu0 %v3223_v57 }
 0x11d   :  { %1060 = vmatprep.subr.bf16.mxu0 %v3228_v58 }
 0x120   :  { %1061 = vmatpush1.bf16.msra.mxu0 %v3226_v61 }
 0x121   :  { %1062 = vmatprep.subr.bf16.mxu0 %v3231_v62 }
 0x124   :  { %1063 = vmatpush1.bf16.msra.mxu0 %v3229_v1 }
 0x125   :  { %1064 = vmatprep.subr.bf16.mxu0 %v3234_v2 }
 0x128   :  { %1065 = vmatpush1.bf16.msra.mxu0 %v3232_v3 }
 0x129   :  { %1066 = vmatprep.subr.bf16.mxu0 %v3237_v4 }
 0x12c   :  { %1067 = vmatpush1.bf16.msra.mxu0 %v3235_v5 }
 0x12d   :  { %1079 = vmatprep.subr.bf16.mxu0 %v3240_v6  ;;  %v3334_v6 = vld [vmem:[#allocation10] ss:$8 sps:$4 sm:$0xff]  }
 0x12f   :  { %1069 = vmatmul.mubr.bf16.vlgmr.msra.gmra.mrb[0].mxu0 %v2723_v11  ;;  %v3342_v11 = vld [vmem:[#allocation10 + $0x24] ss:$8 sps:$4 sm:$0xff]  }
 0x130   :  { %1080 = vmatpush1.bf16.msra.mxu0 %v3238_v12  ;;  %1111 = vmatprep.mubr.bf16.mxu0 %v2726_v13  ;;  %v3340_v12 = vld [vmem:[#allocation10 + $0x20] ss:$8 sps:$4 sm:$0xff]   ;;  %v3345_v13 = vld [vmem:[#allocation10 + $0x34] ss:$8 sps:$4 sm:$0xff]  }
 0x131   :  { %1081 = vmatprep.subr.bf16.mxu0 %v3243_v14  ;;  %v3343_v14 = vld [vmem:[#allocation10 + $0x30] ss:$8 sps:$4 sm:$0xff]  }
 0x134   :  { %1082 = vmatpush1.bf16.msra.mxu0 %v3241_v15  ;;  %v3348_v15 = vld [vmem:[#allocation10 + $0x44] ss:$8 sps:$4 sm:$0xff]  }
 0x135   :  { %1083 = vmatprep.subr.bf16.mxu0 %v3246_v16  ;;  %v3346_v16 = vld [vmem:[#allocation10 + $0x40] ss:$8 sps:$4 sm:$0xff]  }
 0x138   :  { %1084 = vmatpush1.bf16.msra.mxu0 %v3244_v17  ;;  %v3351_v17 = vld [vmem:[#allocation10 + $0x54] ss:$8 sps:$4 sm:$0xff]  }
 0x139   :  { %1085 = vmatprep.subr.bf16.mxu0 %v3249_v18  ;;  %v3349_v18 = vld [vmem:[#allocation10 + $0x50] ss:$8 sps:$4 sm:$0xff]  }
 0x13c   :  { %1086 = vmatpush1.bf16.msra.mxu0 %v3247_v19  ;;  %v3354_v19 = vld [vmem:[#allocation10 + $0x64] ss:$8 sps:$4 sm:$0xff]  }
 0x13d   :  { %1087 = vmatprep.subr.bf16.mxu0 %v3252_v8  ;;  %v3624_v8 = vmov 0  }
 0x140   :  { %1088 = vmatpush1.bf16.msra.mxu0 %v3250_v9  ;;  %v3352_v9 = vld [vmem:[#allocation10 + $0x60] ss:$8 sps:$4 sm:$0xff]  }
 0x141   :  { %1089 = vmatprep.subr.bf16.mxu0 %v3255_v20  ;;  %v3357_v20 = vld [vmem:[#allocation10 + $0x74] ss:$8 sps:$4 sm:$0xff]  }
 0x144   :  { %1090 = vmatpush1.bf16.msra.mxu0 %v3253_v21  ;;  %v3355_v21 = vld [vmem:[#allocation10 + $0x70] ss:$8 sps:$4 sm:$0xff]  }
 0x145   :  { %1091 = vmatprep.subr.bf16.mxu0 %v3258_v22  ;;  %v3816_v22 = vld [vmem:[#allocation11] sm:$0xff] }
 0x148   :  { %1092 = vmatpush1.bf16.msra.mxu0 %v3256_v23  ;;  %v3818_v23 = vld [vmem:[#allocation11 + $0x20] sm:$0xff] }
 0x149   :  { %1093 = vmatprep.subr.bf16.mxu0 %v3261_v24  ;;  %v2903_v24 = vcombine.low %v3816_v22, %v3818_v23 }
 0x14c   :  { %1094 = vmatpush1.bf16.msra.mxu0 %v3259_v25  ;;  %v2904_v25 = vcombine.high %v3816_v22, %v3818_v23 }
 0x14d   :  { %1095 = vmatprep.subr.bf16.mxu0 %v3264_v26  ;;  %v1548_v26 = vld [vmem:[#allocation11 + $0x18] sm:$0xff] }
 0x150   :  { %1096 = vmatpush1.bf16.msra.mxu0 %v3262_v27  ;;  %v1552_v27 = vld [vmem:[#allocation11 + $0x38] sm:$0xff] }
 0x151   :  { %1097 = vmatprep.subr.bf16.mxu0 %v3267_v28  ;;  %v2909_v28 = vcombine.low %v1548_v26, %v1552_v27 }
 0x154   :  { %1098 = vmatpush1.bf16.msra.mxu0 %v3265_v29  ;;  %v2910_v29 = vcombine.high %v1548_v26, %v1552_v27 }
 0x155   :  { %1099 = vmatprep.subr.bf16.mxu0 %v3270_v30  ;;  %v1556_v30 = vld [vmem:[#allocation11 + $0x58] sm:$0xff] }
 0x158   :  { %1100 = vmatpush1.bf16.msra.mxu0 %v3268_v31  ;;  %v1560_v31 = vld [vmem:[#allocation11 + $0x78] sm:$0xff] }
 0x159   :  { %1101 = vmatprep.subr.bf16.mxu0 %v3273_v32  ;;  %v2917_v32 = vcombine.low %v1556_v30, %v1560_v31 }
 0x15c   :  { %1102 = vmatpush1.bf16.msra.mxu0 %v3271_v33  ;;  %v2918_v33 = vcombine.high %v1556_v30, %v1560_v31 }
 0x15d   :  { %1103 = vmatprep.subr.bf16.mxu0 %v3276_v34  ;;  %v1564_v34 = vld [vmem:[#allocation11 + $0x98] sm:$0xff] }
 0x160   :  { %1104 = vmatpush1.bf16.msra.mxu0 %v3274_v35  ;;  %v1568_v35 = vld [vmem:[#allocation11 + $0xb8] sm:$0xff] }
 0x161   :  { %1105 = vmatprep.subr.bf16.mxu0 %v3279_v36  ;;  %v2925_v36 = vcombine.low %v1564_v34, %v1568_v35 }
 0x164   :  { %1106 = vmatpush1.bf16.msra.mxu0 %v3277_v37  ;;  %v2926_v37 = vcombine.high %v1564_v34, %v1568_v35 }
 0x165   :  { %1107 = vmatprep.subr.bf16.mxu0 %v3282_v38  ;;  %v1572_v38 = vld [vmem:[#allocation11 + $0xd8] sm:$0xff] }
 0x168   :  { %1108 = vmatpush1.bf16.msra.mxu0 %v3280_v39  ;;  %v1576_v39 = vld [vmem:[#allocation11 + $0xf8] sm:$0xff] }
 0x169   :  { %1109 = vmatprep.subr.bf16.mxu0 %v3285_v40  ;;  %v2933_v40 = vcombine.low %v1572_v38, %v1576_v39 }
 0x16c   :  { %1110 = vmatpush1.bf16.msra.mxu0 %v3283_v41  ;;  %v2934_v41 = vcombine.high %v1572_v38, %v1576_v39  ;;  %v1381_v39 = vld [vmem:[#allocation5] sm:$0xff] }
 0x16d   :  { %2484 = vmatprep.subr.bf16.mxu0 %v2910_v29 }
 0x16f   :  { %1112 = vmatmul.mubr.bf16.vlgmr.msra.gmra.mrb[0].mxu0 %v2725_v42  ;;  %v1580_v42 = vld [vmem:[#allocation11 + $0x118] sm:$0xff] }
 0x170   :  { %2485 = vmatpush1.bf16.msra.mxu0 %v2909_v28  ;;  %v2941_v44 = vcombine.low %v1580_v42, %v1584_v43  ;;  %v2942_v45 = vcombine.high %v1580_v42, %v1584_v43 }
 0x171   :  { %2486 = vmatprep.subr.bf16.mxu0 %v2918_v33 }
 0x174   :  { %2487 = vmatpush1.bf16.msra.mxu0 %v2917_v32 }
 0x175   :  { %2488 = vmatprep.subr.bf16.mxu0 %v2926_v37 }
 0x178   :  { %2489 = vmatpush1.bf16.msra.mxu0 %v2925_v36 }
 0x179   :  { %2490 = vmatprep.subr.bf16.mxu0 %v2934_v41  ;;  %v1382_v41 = vld [vmem:[#allocation5 + $0x8] sm:$0xff] }
 0x17c   :  { %2491 = vmatpush1.bf16.msra.mxu0 %v2933_v40 }
 0x17d   :  { %2492 = vmatprep.subr.bf16.mxu0 %v2942_v45 }
 0x180   :  { %2493 = vmatpush1.bf16.msra.mxu0 %v2941_v44 }
 0x181   :  { %2494 = vmatprep.subr.bf16.mxu0 %v2950_v49 }
 0x184   :  { %2495 = vmatpush1.bf16.msra.mxu0 %v2949_v48 }
 0x242   :  { %v1113_v56 = vpop.f32.mrb[0].mxu0 }
 0x243   :  { %v3063_v57 = vadd.f32 %v1113_v56, %v263_v54  ;;  %v1115_v58 = vpop.f32.mrb[1].mxu0 }
 0x244   :  { %v3064_v59 = vadd.f32 %v1115_v58, %v267_v55  ;;  %v1117_v60 = vpop.f32.mrb[2].mxu0  ;;  %v1608_v58 = vld [vmem:[#allocation11 + $0x1f8] sm:$0xff] }
 0x245   :  { %v3065_v61 = vadd.f32 %v1117_v60, %v263_v54  ;;  %v1119_v62 = vpop.f32.mrb[3].mxu0  ;;  %v1122_v0 = vmax.f32 %v3063_v57, 0.0  ;;  %v1600_v54 = vld [vmem:[#allocation11 + $0x1b8] sm:$0xff] }
 0x246   :  { %v3066_v63 = vadd.f32 %v1119_v62, %v267_v55  ;;  %v1123_v2 = vmax.f32 %v3064_v59, 0.0  ;;  %v2957_v55 = vcombine.low %v1596_v52, %v1600_v54  ;;  %v2958_v56 = vcombine.high %v1596_v52, %v1600_v54  ;;  %v1604_v57 = vld [vmem:[#allocation11 + $0x1d8] sm:$0xff]  ;;  %v1561_v54 = vld [vmem:[#allocation11 + $0x80] sm:$0xff] }
 0x247   :  { %v1124_v1 = vmax.f32 %v3065_v61, 0.0  ;;  %v2965_v59 = vcombine.low %v1604_v57, %v1608_v58  ;;  %v2966_v60 = vcombine.high %v1604_v57, %v1608_v58  ;;  %v1612_v61 = vld [vmem:[#allocation11 + $0x218] sm:$0xff]  ;;  %v2912_v52 = vcombine.high %v1553_v46, %v1557_v47  ;;  %v1569_v58 = vld [vmem:[#allocation11 + $0xc0] sm:$0xff] }
 0x248   :  { %v1125_v3 = vmax.f32 %v3066_v63, 0.0  ;;  %2496 = vmatprep.subr.bf16.mxu0 %v2958_v56  ;;  %v1616_v62 = vld [vmem:[#allocation11 + $0x238] sm:$0xff]  ;;  %v2911_v56 = vcombine.low %v1553_v46, %v1557_v47  ;;  %v1665_v47 = vld [vmem:[#allocation11 + $0x3c0] sm:$0xff] }
 0x249   :  { %v1126_v4 = vpack.c.bf16 %v1124_v1, %v1122_v0  ;;  %2497 = vmatpush1.bf16.msra.mxu0 %v2957_v55  ;;  %v2973_v63 = vcombine.low %v1612_v61, %v1616_v62  ;;  %v2974_v0 = vcombine.high %v1612_v61, %v1616_v62  ;;  %v1620_v1 = vld [vmem:[#allocation11 + $0x258] sm:$0xff]  ;;  %v1565_v55 = vld [vmem:[#allocation11 + $0xa0] sm:$0xff] }
 0x24a   :  { %v1127_v5 = vpack.c.bf16 %v1125_v3, %v1123_v2  ;;  %2498 = vmatprep.subr.bf16.mxu0 %v2966_v60  ;;  %v1624_v2 = vld [vmem:[#allocation11 + $0x278] sm:$0xff]  ;;  %v2920_v57 = vcombine.high %v1561_v54, %v1565_v55  ;;  %v2919_v60 = vcombine.low %v1561_v54, %v1565_v55  ;;  %v1577_v62 = vld [vmem:[#allocation11 + $0x100] sm:$0xff] }
 0x24b   :  { %v2981_v3 = vcombine.low %v1620_v1, %v1624_v2  ;;  %v1672_v54 = vld [vmem:[#allocation11 + $0x3f8] sm:$0xff] }
 0x24c   :  { %1364 = vmatprep.mubr.bf16.mxu1 %v1127_v5  ;;  %v1628_v5 = vld [vmem:[#allocation11 + $0x298] sm:$0xff] }
 0x24d   :  { %1365 = vmatmul.mubr.bf16.vlgmr.msra.gmra.mrb[0].mxu1 %v1126_v4  ;;  %2499 = vmatpush1.bf16.msra.mxu0 %v2965_v59  ;;  %v2982_v4 = vcombine.high %v1620_v1, %v1624_v2  ;;  %v1573_v59 = vld [vmem:[#allocation11 + $0xe0] sm:$0xff] }
 0x24e   :  { %1497 = vmatpush1.bf16.msra.mxu1 %v3334_v6  ;;  %1528 = vmatprep.mubr.bf16.mxu1 %v3624_v8  ;;  %v1632_v6 = vld [vmem:[#allocation11 + $0x2b8] sm:$0xff]  ;;  %v2928_v61 = vcombine.high %v1569_v58, %v1573_v59  ;;  %v1585_v2 = vld [vmem:[#allocation11 + $0x140] sm:$0xff] }
 0x24f   :  { %1498 = vmatprep.subr.bf16.mxu1 %v3339_v7  ;;  %2500 = vmatprep.subr.bf16.mxu0 %v2974_v0  ;;  %v2989_v7 = vcombine.low %v1628_v5, %v1632_v6  ;;  %v1656_v8 = vld [vmem:[#allocation11 + $0x378] sm:$0xff]  ;;  %v2927_v0 = vcombine.low %v1569_v58, %v1573_v59  ;;  %v1546_v58 = vld [vmem:[#allocation11 + $0x8] sm:$0xff] }
 0x250   :  { %v1550_v59 = vld [vmem:[#allocation11 + $0x28] sm:$0xff] }
 0x251   :  { %2501 = vmatpush1.bf16.msra.mxu0 %v2973_v63  ;;  %v1581_v63 = vld [vmem:[#allocation11 + $0x120] sm:$0xff] }
 0x252   :  { %1499 = vmatpush1.bf16.msra.mxu1 %v3337_v10  ;;  %2502 = vmatprep.subr.bf16.mxu0 %v2982_v4  ;;  %v2990_v10 = vcombine.high %v1628_v5, %v1632_v6  ;;  %v2936_v1 = vcombine.high %v1577_v62, %v1581_v63  ;;  %v2935_v22 = vcombine.low %v1577_v62, %v1581_v63  ;;  %v1597_v4 = vld [vmem:[#allocation11 + $0x1a0] sm:$0xff]  ;;  %v1404_v62 = vld [vmem:[%s3904_s7] sm:$0x3] }
 0x253   :  { %1500 = vmatprep.subr.bf16.mxu1 %v3342_v11  ;;  %v1636_v11 = vld [vmem:[#allocation11 + $0x2d8] sm:$0xff]  ;;  %v1409_v63 = vrot.slane %v1404_v62, %v3806_v51 }
 0x255   :  { %2503 = vmatpush1.bf16.msra.mxu0 %v2981_v3  ;;  %v1589_v3 = vld [vmem:[#allocation11 + $0x160] sm:$0xff] }
 0x256   :  { %1501 = vmatpush1.bf16.msra.mxu1 %v3340_v12  ;;  %2504 = vmatprep.subr.bf16.mxu0 %v2990_v10  ;;  %v1640_v12 = vld [vmem:[#allocation11 + $0x2f8] sm:$0xff]  ;;  %v2944_v23 = vcombine.high %v1585_v2, %v1589_v3  ;;  %v2943_v5 = vcombine.low %v1585_v2, %v1589_v3  ;;  %v1605_v10 = vld [vmem:[#allocation11 + $0x1e0] sm:$0xff] }
 0x257   :  { %1502 = vmatprep.subr.bf16.mxu1 %v3345_v13  ;;  %v2997_v13 = vcombine.low %v1636_v11, %v1640_v12 }
 0x259   :  { %2505 = vmatpush1.bf16.msra.mxu0 %v2989_v7  ;;  %v1601_v7 = vld [vmem:[#allocation11 + $0x1c0] sm:$0xff] }
 0x25a   :  { %1503 = vmatpush1.bf16.msra.mxu1 %v3343_v14  ;;  %v2998_v14 = vcombine.high %v1636_v11, %v1640_v12  ;;  %v2960_v12 = vcombine.high %v1601_v7, %v1605_v10 }
 0x25b   :  { %1504 = vmatprep.subr.bf16.mxu1 %v3348_v15  ;;  %v1644_v15 = vld [vmem:[#allocation11 + $0x318] sm:$0xff] }
 0x25c   :  { %2506 = vmatprep.subr.bf16.mxu0 %v2998_v14  ;;  %v1613_v14 = vld [vmem:[#allocation11 + $0x220] sm:$0xff] }
 0x25d   :  { %2507 = vmatpush1.bf16.msra.mxu0 %v2997_v13  ;;  %v1609_v13 = vld [vmem:[#allocation11 + $0x200] sm:$0xff] }
 0x25e   :  { %1505 = vmatpush1.bf16.msra.mxu1 %v3346_v16  ;;  %v1648_v16 = vld [vmem:[#allocation11 + $0x338] sm:$0xff] }
 0x25f   :  { %1506 = vmatprep.subr.bf16.mxu1 %v3351_v17  ;;  %v3005_v17 = vcombine.low %v1644_v15, %v1648_v16 }
 0x262   :  { %1507 = vmatpush1.bf16.msra.mxu1 %v3349_v18  ;;  %v3006_v18 = vcombine.high %v1644_v15, %v1648_v16  ;;  %v2959_v15 = vcombine.low %v1601_v7, %v1605_v10  ;;  %v2968_v16 = vcombine.high %v1609_v13, %v1613_v14 }
 0x263   :  { %1508 = vmatprep.subr.bf16.mxu1 %v3354_v19  ;;  %v1652_v19 = vld [vmem:[#allocation11 + $0x358] sm:$0xff] }
 0x264   :  { %2508 = vmatprep.subr.bf16.mxu0 %v3006_v18  ;;  %v1621_v18 = vld [vmem:[#allocation11 + $0x260] sm:$0xff] }
 0x265   :  { %2509 = vmatpush1.bf16.msra.mxu0 %v3005_v17  ;;  %v1617_v17 = vld [vmem:[#allocation11 + $0x240] sm:$0xff] }
 0x266   :  { %1509 = vmatpush1.bf16.msra.mxu1 %v3352_v9  ;;  %v3013_v9 = vcombine.low %v1652_v19, %v1656_v8 }
 0x267   :  { %1510 = vmatprep.subr.bf16.mxu1 %v3357_v20  ;;  %v3014_v20 = vcombine.high %v1652_v19, %v1656_v8  ;;  %v2967_v19 = vcombine.low %v1609_v13, %v1613_v14  ;;  %v2976_v8 = vcombine.high %v1617_v17, %v1621_v18  ;;  %v1558_v13 = vld [vmem:[#allocation11 + $0x68] sm:$0xff] }
 0x269   :  { %2510 = vmatprep.subr.bf16.mxu0 %v3014_v20  ;;  %v1629_v20 = vld [vmem:[#allocation11 + $0x2a0] sm:$0xff] }
 0x26a   :  { %1511 = vmatpush1.bf16.msra.mxu1 %v3355_v21  ;;  %2511 = vmatpush1.bf16.msra.mxu0 %v3013_v9  ;;  %v1160_v21 = vld [vmem:[%s3902_s5] sm:$0x3]  ;;  %v1625_v9 = vld [vmem:[#allocation11 + $0x280] sm:$0xff] }
 0x26b   :  { %2355 = vmatprep.subr.bf16.mxu1 %v2904_v25  ;;  %v1165_v25 = vrot.slane %v1160_v21, %v3806_v51  ;;  %v1169_v26 = vrot.slane %v1160_v21, %v3812_v53  ;;  %v2975_v21 = vcombine.low %v1617_v17, %v1621_v18  ;;  %v1562_v17 = vld [vmem:[#allocation11 + $0x88] sm:$0xff] }
 0x26c   :  { %v1566_v18 = vld [vmem:[#allocation11 + $0xa8] sm:$0xff] }
 0x320   :  { %v1366_v27 = vpop.f32.mrb[0].mxu1 }
 0x321   :  { %v1367_v28 = vadd.f32 %v1366_v27, %v1165_v25  ;;  %v1368_v29 = vpop.f32.mrb[1].mxu1  ;;  %v1637_v27 = vld [vmem:[#allocation11 + $0x2e0] sm:$0xff] }
 0x322   :  { %v1369_v30 = vadd.f32 %v1368_v29, %v1169_v26  ;;  %v1370_v31 = vpop.f32.mrb[2].mxu1 }
 0x323   :  { %2679 = vst [vmem:[#allocation14] sm:$0xff] %v1367_v28  ;;  %v1371_v32 = vadd.f32 %v1370_v31, %v1165_v25  ;;  %v1372_v33 = vpop.f32.mrb[3].mxu1  ;;  %v2984_v25 = vcombine.high %v1625_v9, %v1629_v20  ;;  %v1645_v31 = vld [vmem:[#allocation11 + $0x320] sm:$0xff] }
 0x324   :  { %v1375_v34 = vmul.f32 0.5, %v1369_v30  ;;  %2680 = vst [vmem:[#allocation14 + $0x8] sm:$0xff] %v1369_v30  ;;  %v1373_v35 = vadd.f32 %v1372_v33, %v1169_v26  ;;  %v1633_v26 = vld [vmem:[#allocation11 + $0x2c0] sm:$0xff] }
 0x325   :  { %2681 = vst [vmem:[#allocation14 + $0x10] sm:$0xff] %v1371_v32  ;;  %v2992_v29 = vcombine.high %v1633_v26, %v1637_v27  ;;  %v1641_v30 = vld [vmem:[#allocation11 + $0x300] sm:$0xff] }
 0x326   :  { %v1377_v36 = vmul.f32 1.442695, %v1375_v34  ;;  %v1376_v37 = vmul.f32 0.5, %v1373_v35  ;;  %2682 = vst [vmem:[#allocation14 + $0x18] sm:$0xff] %v1373_v35  ;;  %v3000_v33 = vcombine.high %v1641_v30, %v1645_v31  ;;  %v1649_v34 = vld [vmem:[#allocation11 + $0x340] sm:$0xff] }
 0x327   :  { %v1653_v35 = vld [vmem:[#allocation11 + $0x360] sm:$0xff] }
 0x328   :  { %3358 = vpow2.f32 %v1377_v36  ;;  %v1379_v38 = vmul.f32 1.442695, %v1376_v37  ;;  %v2999_v36 = vcombine.low %v1641_v30, %v1645_v31  ;;  %v3008_v37 = vcombine.high %v1649_v34, %v1653_v35  ;;  %v1586_v30 = vld [vmem:[#allocation11 + $0x148] sm:$0xff] }
 0x329   :  { %v1590_v31 = vld [vmem:[#allocation11 + $0x168] sm:$0xff] }
 0x32a   :  { %3360 = vpow2.f32 %v1379_v38  ;;  %v3007_v38 = vcombine.low %v1649_v34, %v1653_v35  ;;  %v1594_v34 = vld [vmem:[#allocation11 + $0x188] sm:$0xff] }
 0x32b   :  { %v1598_v35 = vld [vmem:[#allocation11 + $0x1a8] sm:$0xff] }
 0x332   :  { %v3359_v40 = vpop.eup %3358 }
 0x333   :  { %v1383_v42 = vmul.f32 %v3359_v40, %v1381_v39  ;;  %v1657_v39 = vld [vmem:[#allocation11 + $0x380] sm:$0xff] }
 0x334   :  { %v3361_v43 = vpop.eup %3360  ;;  %v1661_v40 = vld [vmem:[#allocation11 + $0x3a0] sm:$0xff] }
 0x335   :  { %v1384_v44 = vmul.f32 %v3361_v43, %v1382_v41  ;;  %v1385_v45 = vadd.f32 %v1383_v42, %v1367_v28  ;;  %v2983_v28 = vcombine.low %v1625_v9, %v1629_v20  ;;  %v3016_v41 = vcombine.high %v1657_v39, %v1661_v40  ;;  %v1660_v42 = vld [vmem:[#allocation11 + $0x398] sm:$0xff]  ;;  %v1570_v9 = vld [vmem:[#allocation11 + $0xc8] sm:$0xff] }
 0x336   :  { %v1664_v43 = vld [vmem:[#allocation11 + $0x3b8] sm:$0xff]  ;;  %v1574_v20 = vld [vmem:[#allocation11 + $0xe8] sm:$0xff] }
 0x337   :  { %v1386_v48 = vadd.f32 %v1384_v44, %v1371_v32  ;;  %v2991_v32 = vcombine.low %v1633_v26, %v1637_v27  ;;  %v3015_v44 = vcombine.low %v1657_v39, %v1661_v40  ;;  %v3021_v46 = vcombine.low %v1660_v42, %v1664_v43  ;;  %v1578_v26 = vld [vmem:[#allocation11 + $0x108] sm:$0xff] }
 0x338   :  { %v1582_v27 = vld [vmem:[#allocation11 + $0x128] sm:$0xff]  ;;  %v2953_v40 = vcombine.low %v1594_v34, %v1598_v35 }
 0x339   :  { %v1387_v49 = vpack.c.bf16 %v1386_v48, %v1385_v45  ;;  %v3022_v45 = vcombine.high %v1660_v42, %v1664_v43  ;;  %v1669_v48 = vld [vmem:[#allocation11 + $0x3e0] sm:$0xff]  ;;  %v1606_v39 = vld [vmem:[#allocation11 + $0x1e8] sm:$0xff] }
 0x33a   :  { %v3023_v55 = vcombine.low %v1665_v47, %v1669_v48  ;;  %v1610_v42 = vld [vmem:[#allocation11 + $0x208] sm:$0xff] }
 0x33b   :  { %1529 = vmatmul.mubr.bf16.vlgmr.msra.gmra.mrb[4].mxu1 %v1387_v49  ;;  %2512 = vmatprep.subr.bf16.mxu0 %v3022_v45  ;;  %v3024_v49 = vcombine.high %v1665_v47, %v1669_v48  ;;  %v1614_v43 = vld [vmem:[#allocation11 + $0x228] sm:$0xff] }
 0x33c   :  { %2356 = vmatpush1.bf16.msra.mxu1 %v2903_v24  ;;  %v1593_v24 = vld [vmem:[#allocation11 + $0x180] sm:$0xff]  ;;  %2513 = vmatpush1.bf16.msra.mxu0 %v3021_v46  ;;  %v2970_v45 = vcombine.high %v1610_v42, %v1614_v43  ;;  %v1618_v46 = vld [vmem:[#allocation11 + $0x248] sm:$0xff]  ;;  %v2969_v48 = vcombine.low %v1610_v42, %v1614_v43  ;;  %v1603_v42 = vld [vmem:[#allocation11 + $0x1d0] sm:$0xff] }
 0x33d   :  { %2357 = vmatprep.subr.bf16.mxu1 %v2912_v52  ;;  %v2952_v6 = vcombine.high %v1593_v24, %v1597_v4  ;;  %v2951_v11 = vcombine.low %v1593_v24, %v1597_v4  ;;  %v1668_v52 = vld [vmem:[#allocation11 + $0x3d8] sm:$0xff]  ;;  %v1622_v47 = vld [vmem:[#allocation11 + $0x268] sm:$0xff]  ;;  %v1607_v43 = vld [vmem:[#allocation11 + $0x1f0] sm:$0xff] }
 0x340   :  { %2358 = vmatpush1.bf16.msra.mxu1 %v2911_v56  ;;  %v3030_v56 = vcombine.high %v1668_v52, %v1672_v54 }
 0x341   :  { %2359 = vmatprep.subr.bf16.mxu1 %v2920_v57  ;;  %v3029_v57 = vcombine.low %v1668_v52, %v1672_v54  ;;  %v1626_v52 = vld [vmem:[#allocation11 + $0x288] sm:$0xff] }
 0x342   :  { %2514 = vmatprep.subr.bf16.mxu0 %v3030_v56  ;;  %v1630_v54 = vld [vmem:[#allocation11 + $0x2a8] sm:$0xff] }
 0x343   :  { %2515 = vmatpush1.bf16.msra.mxu0 %v3029_v57  ;;  %v2986_v56 = vcombine.high %v1626_v52, %v1630_v54  ;;  %v1634_v57 = vld [vmem:[#allocation11 + $0x2c8] sm:$0xff] }
 0x344   :  { %2360 = vmatpush1.bf16.msra.mxu1 %v2919_v60  ;;  %v2906_v60 = vcombine.high %v1546_v58, %v1550_v59 }
 0x345   :  { %2361 = vmatprep.subr.bf16.mxu1 %v2928_v61  ;;  %v2905_v61 = vcombine.low %v1546_v58, %v1550_v59  ;;  %v1638_v58 = vld [vmem:[#allocation11 + $0x2e8] sm:$0xff]  ;;  %v2985_v59 = vcombine.low %v1626_v52, %v1630_v54  ;;  %v1619_v52 = vld [vmem:[#allocation11 + $0x250] sm:$0xff] }
 0x346   :  { %v1623_v54 = vld [vmem:[#allocation11 + $0x270] sm:$0xff] }
 0x348   :  { %2362 = vmatpush1.bf16.msra.mxu1 %v2927_v0  ;;  %v1413_v0 = vrot.slane %v1404_v62, %v3812_v53  ;;  %v1646_v62 = vld [vmem:[#allocation11 + $0x328] sm:$0xff] }
 0x349   :  { %2363 = vmatprep.subr.bf16.mxu1 %v2936_v1 }
 0x34c   :  { %2364 = vmatpush1.bf16.msra.mxu1 %v2935_v22 }
 0x34d   :  { %2365 = vmatprep.subr.bf16.mxu1 %v2944_v23 }
 0x350   :  { %2366 = vmatpush1.bf16.msra.mxu1 %v2943_v5 }
 0x351   :  { %2367 = vmatprep.subr.bf16.mxu1 %v2952_v6 }
 0x354   :  { %2368 = vmatpush1.bf16.msra.mxu1 %v2951_v11 }
 0x355   :  { %2369 = vmatprep.subr.bf16.mxu1 %v2960_v12  ;;  %v1554_v12 = vld [vmem:[#allocation11 + $0x48] sm:$0xff] }
 0x358   :  { %2370 = vmatpush1.bf16.msra.mxu1 %v2959_v15 }
 0x359   :  { %2371 = vmatprep.subr.bf16.mxu1 %v2968_v16  ;;  %v2914_v16 = vcombine.high %v1554_v12, %v1558_v13 }
 0x35c   :  { %2372 = vmatpush1.bf16.msra.mxu1 %v2967_v19  ;;  %v2913_v19 = vcombine.low %v1554_v12, %v1558_v13  ;;  %v1547_v12 = vld [vmem:[#allocation11 + $0x10] sm:$0xff] }
 0x35d   :  { %2373 = vmatprep.subr.bf16.mxu1 %v2976_v8  ;;  %v2922_v8 = vcombine.high %v1562_v17, %v1566_v18  ;;  %v1551_v13 = vld [vmem:[#allocation11 + $0x30] sm:$0xff] }
 0x360   :  { %2374 = vmatpush1.bf16.msra.mxu1 %v2975_v21  ;;  %v2921_v21 = vcombine.low %v1562_v17, %v1566_v18  ;;  %v2908_v17 = vcombine.high %v1547_v12, %v1551_v13  ;;  %v1555_v18 = vld [vmem:[#allocation11 + $0x50] sm:$0xff] }
 0x361   :  { %2375 = vmatprep.subr.bf16.mxu1 %v2984_v25  ;;  %v2930_v25 = vcombine.high %v1570_v9, %v1574_v20 }
 0x364   :  { %2376 = vmatpush1.bf16.msra.mxu1 %v2983_v28  ;;  %v2929_v28 = vcombine.low %v1570_v9, %v1574_v20  ;;  %v1563_v20 = vld [vmem:[#allocation11 + $0x90] sm:$0xff] }
 0x365   :  { %2377 = vmatprep.subr.bf16.mxu1 %v2992_v29  ;;  %v2938_v29 = vcombine.high %v1578_v26, %v1582_v27 }
 0x368   :  { %2378 = vmatpush1.bf16.msra.mxu1 %v2991_v32  ;;  %v2937_v32 = vcombine.low %v1578_v26, %v1582_v27  ;;  %v1571_v27 = vld [vmem:[#allocation11 + $0xd0] sm:$0xff] }
 0x369   :  { %2379 = vmatprep.subr.bf16.mxu1 %v3000_v33  ;;  %v2946_v33 = vcombine.high %v1586_v30, %v1590_v31 }
 0x36c   :  { %2380 = vmatpush1.bf16.msra.mxu1 %v2999_v36  ;;  %v2945_v36 = vcombine.low %v1586_v30, %v1590_v31  ;;  %v1579_v31 = vld [vmem:[#allocation11 + $0x110] sm:$0xff] }
 0x36d   :  { %2381 = vmatprep.subr.bf16.mxu1 %v3008_v37  ;;  %v2954_v37 = vcombine.high %v1594_v34, %v1598_v35  ;;  %v1587_v35 = vld [vmem:[#allocation11 + $0x150] sm:$0xff] }
 0x370   :  { %2382 = vmatpush1.bf16.msra.mxu1 %v3007_v38  ;;  %v1602_v38 = vld [vmem:[#allocation11 + $0x1c8] sm:$0xff] }
 0x371   :  { %2383 = vmatprep.subr.bf16.mxu1 %v3016_v41  ;;  %v2962_v41 = vcombine.high %v1602_v38, %v1606_v39 }
 0x374   :  { %2384 = vmatpush1.bf16.msra.mxu1 %v3015_v44  ;;  %v2961_v44 = vcombine.low %v1602_v38, %v1606_v39  ;;  %v1595_v38 = vld [vmem:[#allocation11 + $0x190] sm:$0xff] }
 0x375   :  { %2385 = vmatprep.subr.bf16.mxu1 %v3024_v49  ;;  %v2978_v49 = vcombine.high %v1618_v46, %v1622_v47  ;;  %v1599_v39 = vld [vmem:[#allocation11 + $0x1b0] sm:$0xff] }
 0x378   :  { %2386 = vmatpush1.bf16.msra.mxu1 %v3023_v55  ;;  %v2977_v55 = vcombine.low %v1618_v46, %v1622_v47  ;;  %v1611_v46 = vld [vmem:[#allocation11 + $0x210] sm:$0xff] }
 0x379   :  { %2398 = vmatprep.subr.bf16.mxu1 %v2906_v60  ;;  %v2994_v60 = vcombine.high %v1634_v57, %v1638_v58  ;;  %v1615_v47 = vld [vmem:[#allocation11 + $0x230] sm:$0xff] }
 0x40e   :  { %v1530_v1 = vpop.f32.mrb[4].mxu1 }
 0x40f   :  { %v1531_v2 = vadd.f32 %v1530_v1, %v1409_v63  ;;  %v1532_v3 = vpop.f32.mrb[5].mxu1  ;;  %v1650_v1 = vld [vmem:[#allocation11 + $0x348] sm:$0xff] }
 0x410   :  { %v1533_v22 = vadd.f32 %v1532_v3, %v1413_v0  ;;  %v1534_v23 = vpop.f32.mrb[6].mxu1 }
 0x411   :  { %v1535_v24 = vadd.f32 %v1534_v23, %v1409_v63  ;;  %v1536_v4 = vpop.f32.mrb[7].mxu1  ;;  %v1539_v6 = vmax.f32 %v1531_v2, 0.0  ;;  %v2993_v63 = vcombine.low %v1634_v57, %v1638_v58  ;;  %v1654_v2 = vld [vmem:[#allocation11 + $0x368] sm:$0xff]  ;;  %v1627_v57 = vld [vmem:[#allocation11 + $0x290] sm:$0xff] }
 0x412   :  { %v1537_v5 = vadd.f32 %v1536_v4, %v1413_v0  ;;  %v1540_v10 = vmax.f32 %v1533_v22, 0.0  ;;  %v3010_v22 = vcombine.high %v1650_v1, %v1654_v2  ;;  %v1658_v23 = vld [vmem:[#allocation11 + $0x388] sm:$0xff]  ;;  %v3009_v4 = vcombine.low %v1650_v1, %v1654_v2  ;;  %v1631_v58 = vld [vmem:[#allocation11 + $0x2b0] sm:$0xff] }
 0x413   :  { %v1541_v7 = vmax.f32 %v1535_v24, 0.0  ;;  %v1662_v24 = vld [vmem:[#allocation11 + $0x3a8] sm:$0xff]  ;;  %v1643_v1 = vld [vmem:[#allocation11 + $0x310] sm:$0xff] }
 0x414   :  { %v1542_v11 = vmax.f32 %v1537_v5, 0.0  ;;  %v3018_v5 = vcombine.high %v1658_v23, %v1662_v24  ;;  %v1647_v2 = vld [vmem:[#allocation11 + $0x330] sm:$0xff] }
 0x415   :  { %v3837_v14 = vpack.c.bf16 %v1541_v7, %v1539_v6  ;;  %v1666_v6 = vld [vmem:[#allocation11 + $0x3c8] sm:$0xff] }
 0x416   :  { %v3839_v15 = vpack.c.bf16 %v1542_v11, %v1540_v10  ;;  %v1670_v7 = vld [vmem:[#allocation11 + $0x3e8] sm:$0xff]  ;;  %v3017_v10 = vcombine.low %v1658_v23, %v1662_v24  ;;  %v1651_v23 = vld [vmem:[#allocation11 + $0x350] sm:$0xff] }
 0x417   :  { %v3026_v11 = vcombine.high %v1666_v6, %v1670_v7  ;;  %v1655_v24 = vld [vmem:[#allocation11 + $0x370] sm:$0xff] }
 0x418   :  { %2387 = vmatprep.mubr.bf16.mxu1 %v3839_v15  ;;  %2516 = vmatprep.mubr.bf16.mxu0 %v3839_v15 }
 0x419   :  { %2388 = vmatmul.mubr.bf16.vlgmr.msra.gmra.mrb[8].mxu1 %v3837_v14  ;;  %2517 = vmatmul.mubr.bf16.vlgmr.msra.gmra.mrb[4].mxu0 %v3837_v14 }
 0x41a   :  { %2399 = vmatpush1.bf16.msra.mxu1 %v2905_v61  ;;  %2430 = vmatprep.mubr.bf16.mxu1 %v3839_v15  ;;  %v1642_v61 = vld [vmem:[#allocation11 + $0x308] sm:$0xff] }
 0x41b   :  { %2400 = vmatprep.subr.bf16.mxu1 %v2914_v16  ;;  %v3002_v0 = vcombine.high %v1642_v61, %v1646_v62  ;;  %v3001_v3 = vcombine.low %v1642_v61, %v1646_v62  ;;  %v3025_v16 = vcombine.low %v1666_v6, %v1670_v7  ;;  %v1635_v61 = vld [vmem:[#allocation11 + $0x2d0] sm:$0xff] }
 0x41c   :  { %v1639_v62 = vld [vmem:[#allocation11 + $0x2f0] sm:$0xff] }
 0x41d   :  { %v1659_v6 = vld [vmem:[#allocation11 + $0x390] sm:$0xff] }
 0x41e   :  { %2401 = vmatpush1.bf16.msra.mxu1 %v2913_v19  ;;  %v1559_v19 = vld [vmem:[#allocation11 + $0x70] sm:$0xff] }
 0x41f   :  { %2402 = vmatprep.subr.bf16.mxu1 %v2922_v8  ;;  %v2907_v8 = vcombine.low %v1547_v12, %v1551_v13  ;;  %v2916_v9 = vcombine.high %v1555_v18, %v1559_v19  ;;  %v1663_v7 = vld [vmem:[#allocation11 + $0x3b0] sm:$0xff] }
 0x420   :  { %v1667_v12 = vld [vmem:[#allocation11 + $0x3d0] sm:$0xff] }
 0x421   :  { %v1671_v13 = vld [vmem:[#allocation11 + $0x3f0] sm:$0xff] }
 0x422   :  { %2403 = vmatpush1.bf16.msra.mxu1 %v2921_v21  ;;  %v1567_v21 = vld [vmem:[#allocation11 + $0xb0] sm:$0xff] }
 0x423   :  { %2404 = vmatprep.subr.bf16.mxu1 %v2930_v25  ;;  %v2915_v25 = vcombine.low %v1555_v18, %v1559_v19  ;;  %v2924_v26 = vcombine.high %v1563_v20, %v1567_v21  ;;  %v3027_v18 = vcombine.low %v1667_v12, %v1671_v13  ;;  %v1701_v19 = vsub.s32 6, %v3803_v50 }
 0x426   :  { %2405 = vmatpush1.bf16.msra.mxu1 %v2929_v28  ;;  %v1575_v28 = vld [vmem:[#allocation11 + $0xf0] sm:$0xff] }
 0x427   :  { %2406 = vmatprep.subr.bf16.mxu1 %v2938_v29  ;;  %v2923_v29 = vcombine.low %v1563_v20, %v1567_v21  ;;  %v2932_v30 = vcombine.high %v1571_v27, %v1575_v28 }
 0x42a   :  { %2407 = vmatpush1.bf16.msra.mxu1 %v2937_v32  ;;  %v1583_v32 = vld [vmem:[#allocation11 + $0x130] sm:$0xff] }
 0x42b   :  { %2408 = vmatprep.subr.bf16.mxu1 %v2946_v33  ;;  %v2931_v33 = vcombine.low %v1571_v27, %v1575_v28  ;;  %v2940_v34 = vcombine.high %v1579_v31, %v1583_v32 }
 0x42e   :  { %2409 = vmatpush1.bf16.msra.mxu1 %v2945_v36  ;;  %v1591_v36 = vld [vmem:[#allocation11 + $0x170] sm:$0xff] }
 0x42f   :  { %2410 = vmatprep.subr.bf16.mxu1 %v2954_v37  ;;  %v2939_v37 = vcombine.low %v1579_v31, %v1583_v32 }
 0x432   :  { %2411 = vmatpush1.bf16.msra.mxu1 %v2953_v40  ;;  %v2947_v40 = vcombine.low %v1587_v35, %v1591_v36 }
 0x433   :  { %2412 = vmatprep.subr.bf16.mxu1 %v2962_v41  ;;  %v2956_v41 = vcombine.high %v1595_v38, %v1599_v39 }
 0x436   :  { %2413 = vmatpush1.bf16.msra.mxu1 %v2961_v44  ;;  %v2955_v44 = vcombine.low %v1595_v38, %v1599_v39 }
 0x437   :  { %2414 = vmatprep.subr.bf16.mxu1 %v2970_v45  ;;  %v2964_v45 = vcombine.high %v1603_v42, %v1607_v43 }
 0x43a   :  { %2415 = vmatpush1.bf16.msra.mxu1 %v2969_v48  ;;  %v2963_v48 = vcombine.low %v1603_v42, %v1607_v43 }
 0x43b   :  { %2416 = vmatprep.subr.bf16.mxu1 %v2978_v49  ;;  %v2972_v49 = vcombine.high %v1611_v46, %v1615_v47 }
 0x43e   :  { %2417 = vmatpush1.bf16.msra.mxu1 %v2977_v55  ;;  %v2971_v55 = vcombine.low %v1611_v46, %v1615_v47 }
 0x43f   :  { %2418 = vmatprep.subr.bf16.mxu1 %v2986_v56  ;;  %v2980_v56 = vcombine.high %v1619_v52, %v1623_v54 }
 0x442   :  { %2419 = vmatpush1.bf16.msra.mxu1 %v2985_v59  ;;  %v2979_v59 = vcombine.low %v1619_v52, %v1623_v54 }
 0x443   :  { %2420 = vmatprep.subr.bf16.mxu1 %v2994_v60  ;;  %v2988_v60 = vcombine.high %v1627_v57, %v1631_v58 }
 0x446   :  { %2421 = vmatpush1.bf16.msra.mxu1 %v2993_v63  ;;  %v2987_v63 = vcombine.low %v1627_v57, %v1631_v58 }
 0x447   :  { %2422 = vmatprep.subr.bf16.mxu1 %v3002_v0  ;;  %v2996_v0 = vcombine.high %v1635_v61, %v1639_v62 }
 0x44a   :  { %2423 = vmatpush1.bf16.msra.mxu1 %v3001_v3  ;;  %v2995_v3 = vcombine.low %v1635_v61, %v1639_v62 }
 0x44b   :  { %2424 = vmatprep.subr.bf16.mxu1 %v3010_v22  ;;  %v3004_v22 = vcombine.high %v1643_v1, %v1647_v2 }
 0x44e   :  { %2425 = vmatpush1.bf16.msra.mxu1 %v3009_v4  ;;  %v3003_v4 = vcombine.low %v1643_v1, %v1647_v2 }
 0x44f   :  { %2426 = vmatprep.subr.bf16.mxu1 %v3018_v5  ;;  %v3012_v5 = vcombine.high %v1651_v23, %v1655_v24 }
 0x452   :  { %2427 = vmatpush1.bf16.msra.mxu1 %v3017_v10  ;;  %v3011_v10 = vcombine.low %v1651_v23, %v1655_v24 }
 0x453   :  { %2428 = vmatprep.subr.bf16.mxu1 %v3026_v11  ;;  %v3020_v11 = vcombine.high %v1659_v6, %v1663_v7 }
 0x456   :  { %2429 = vmatpush1.bf16.msra.mxu1 %v3025_v16  ;;  %v3019_v16 = vcombine.low %v1659_v6, %v1663_v7 }
 0x457   :  { %2441 = vmatprep.subr.bf16.mxu1 %v2908_v17  ;;  %v3028_v17 = vcombine.high %v1667_v12, %v1671_v13 }
 0x459   :  { %2431 = vmatmul.mubr.bf16.vlgmr.msra.gmra.mrb[12].mxu1 %v3837_v14 }
 0x45a   :  { %2442 = vmatpush1.bf16.msra.mxu1 %v2907_v8  ;;  %2473 = vmatprep.mubr.bf16.mxu1 %v3839_v15  ;;  %v2948_v15 = vcombine.high %v1587_v35, %v1591_v36  ;;  %v3853_v8 = vld [vmem:[%s3906_s9] sm:$0xff]  ;;  %s3625_s9 = smov [#allocation14]  }
 0x45b   :  { %2443 = vmatprep.subr.bf16.mxu1 %v2916_v9  ;;  %v1705_v9 = vsub.s32 7, %v3803_v50  ;;  %v1678_v20 = vrot.slane %v3853_v8, %v3806_v51  ;;  %v1702_v21 = vrot.slane %v3853_v8, %v1701_v19  ;;  %s2700_s21 = sshll.u32 %s3625_s9, 4  ;;  %s2701_s21 = int_to_ptr.vmem [resolvable:$true] %s2700_s21 }
 0x45c   :  { %s3558_s23 = scalar_lea.vmem %s2701_s21, 512  ;;  %p3563_p7 = scmp.lt.s32.totalorder %s2701_s21, %s2701_s21 }
 0x45d   :  { %p3559_p6 = scmp.ne.s32.totalorder %s2701_s21, %s3558_s23  ;;  %p3564_p8 = scmp.lt.s32.totalorder %s3558_s23, %s3558_s23 }
 0x45e   :  { %2444 = vmatpush1.bf16.msra.mxu1 %v2915_v25  ;;  %v1682_v25 = vrot.slane %v3853_v8, %v3812_v53 }
 0x45f   :  { %2445 = vmatprep.subr.bf16.mxu1 %v2924_v26  ;;  %v1706_v26 = vrot.slane %v3853_v8, %v1705_v9  ;;  %p3565_p9 = por %p3564_p8, %p3563_p7 }
 0x461   :  { %p3566_p10 = pnand %p3565_p9, %p3559_p6 }
 0x462   :  { %2446 = vmatpush1.bf16.msra.mxu1 %v2923_v29 }
 0x463   :  { %2447 = vmatprep.subr.bf16.mxu1 %v2932_v30 }
 0x466   :  { %2448 = vmatpush1.bf16.msra.mxu1 %v2931_v33 }
 0x467   :  { %2449 = vmatprep.subr.bf16.mxu1 %v2940_v34 }
 0x46a   :  { %2450 = vmatpush1.bf16.msra.mxu1 %v2939_v37 }
 0x46b   :  { %2451 = vmatprep.subr.bf16.mxu1 %v2948_v15 }
 0x46e   :  { %2452 = vmatpush1.bf16.msra.mxu1 %v2947_v40 }
 0x46f   :  { %2453 = vmatprep.subr.bf16.mxu1 %v2956_v41 }
 0x472   :  { %2454 = vmatpush1.bf16.msra.mxu1 %v2955_v44 }
 0x473   :  { %2455 = vmatprep.subr.bf16.mxu1 %v2964_v45 }
 0x476   :  { %2456 = vmatpush1.bf16.msra.mxu1 %v2963_v48 }
 0x477   :  { %2457 = vmatprep.subr.bf16.mxu1 %v2972_v49 }
 0x47a   :  { %2458 = vmatpush1.bf16.msra.mxu1 %v2971_v55 }
 0x47b   :  { %2459 = vmatprep.subr.bf16.mxu1 %v2980_v56 }
 0x47e   :  { %2460 = vmatpush1.bf16.msra.mxu1 %v2979_v59 }
 0x47f   :  { %2461 = vmatprep.subr.bf16.mxu1 %v2988_v60 }
 0x482   :  { %2462 = vmatpush1.bf16.msra.mxu1 %v2987_v63 }
 0x483   :  { %2463 = vmatprep.subr.bf16.mxu1 %v2996_v0 }
 0x486   :  { %2464 = vmatpush1.bf16.msra.mxu1 %v2995_v3 }
 0x487   :  { %2465 = vmatprep.subr.bf16.mxu1 %v3004_v22 }
 0x48a   :  { %2466 = vmatpush1.bf16.msra.mxu1 %v3003_v4 }
 0x48b   :  { %2467 = vmatprep.subr.bf16.mxu1 %v3012_v5 }
 0x48e   :  { %2468 = vmatpush1.bf16.msra.mxu1 %v3011_v10 }
 0x48f   :  { %2469 = vmatprep.subr.bf16.mxu1 %v3020_v11 }
 0x492   :  { %2470 = vmatpush1.bf16.msra.mxu1 %v3019_v16 }
 0x493   :  { %2471 = vmatprep.subr.bf16.mxu1 %v3028_v17 }
 0x496   :  { %2472 = vmatpush1.bf16.msra.mxu1 %v3027_v18 }
 0x499   :  { %2474 = vmatmul.mubr.bf16.vlgmr.msra.gmra.mrb[16].mxu1 %v3837_v14 }
 0x4ec   :  { %v2389_v14 = vpop.f32.mrb[8].mxu1  ;;  %v2518_v27 = vpop.f32.mrb[4].mxu0 }
 0x4ed   :  { %v2390_v28 = vadd.f32 %v2389_v14, %v1678_v20  ;;  %v2519_v29 = vadd.f32 %v2518_v27, %v1702_v21  ;;  %v2391_v30 = vpop.f32.mrb[9].mxu1  ;;  %v2520_v31 = vpop.f32.mrb[5].mxu0 }
 0x4ee   :  { %v2392_v32 = vadd.f32 %v2391_v30, %v1682_v25  ;;  %v2521_v33 = vadd.f32 %v2520_v31, %v1706_v26  ;;  %v2393_v34 = vpop.f32.mrb[10].mxu1  ;;  %v2522_v35 = vpop.f32.mrb[6].mxu0 }
 0x4ef   :  { %v3031_v36 = vmul.f32 -1.442695, %v2390_v28  ;;  %v3037_v37 = vmul.f32 -1.442695, %v2519_v29  ;;  %v2394_v51 = vadd.f32 %v2393_v34, %v1678_v20  ;;  %v2523_v15 = vadd.f32 %v2522_v35, %v1702_v21  ;;  %v2395_v38 = vpop.f32.mrb[11].mxu1  ;;  %v2524_v39 = vpop.f32.mrb[7].mxu0 }
 0x4f0   :  { %v3032_v40 = vmul.f32 -1.442695, %v2392_v32  ;;  %v3038_v53 = vmul.f32 -1.442695, %v2521_v33  ;;  %v2396_v41 = vadd.f32 %v2395_v38, %v1682_v25  ;;  %v2525_v42 = vadd.f32 %v2524_v39, %v1706_v26 }
 0x4f1   :  { %3362 = vpow2.f32 %v3031_v36  ;;  %v3039_v43 = vmul.f32 -1.442695, %v2394_v51  ;;  %v3045_v44 = vmul.f32 -1.442695, %v2523_v15 }
 0x4f2   :  { %3364 = vpow2.f32 %v3037_v37  ;;  %v3040_v45 = vmul.f32 -1.442695, %v2396_v41  ;;  %v3046_v46 = vmul.f32 -1.442695, %v2525_v42 }
 0x4f3   :  { %3366 = vpow2.f32 %v3032_v40 }
 0x4f4   :  { %3368 = vpow2.f32 %v3038_v53 }
 0x4f5   :  { %3370 = vpow2.f32 %v3039_v43 }
 0x4f6   :  { %3372 = vpow2.f32 %v3045_v44 }
 0x4f7   :  { %3374 = vpow2.f32 %v3040_v45 }
 0x4f8   :  { %3376 = vpow2.f32 %v3046_v46 }
 0x4fb   :  { %v3363_v47 = vpop.eup %3362 }
 0x4fc   :  { %v3365_v48 = vpop.eup %3364  ;;  %v2575_v49 = vadd.f32 1.0, %v3363_v47 }
 0x4fd   :  { %v3367_v52 = vpop.eup %3366  ;;  %v2581_v54 = vadd.f32 1.0, %v3365_v48 }
 0x4fe   :  { %v3369_v55 = vpop.eup %3368  ;;  %3378 = vrcp.f32 %v2575_v49  ;;  %v2576_v56 = vadd.f32 1.0, %v3367_v52 }
 0x4ff   :  { %v3371_v57 = vpop.eup %3370  ;;  %3380 = vrcp.f32 %v2581_v54  ;;  %v2582_v58 = vadd.f32 1.0, %v3369_v55 }
 0x500   :  { %v3373_v59 = vpop.eup %3372  ;;  %3382 = vrcp.f32 %v2576_v56  ;;  %v2583_v60 = vadd.f32 1.0, %v3371_v57 }
 0x501   :  { %v3375_v61 = vpop.eup %3374  ;;  %3384 = vrcp.f32 %v2582_v58  ;;  %v2589_v62 = vadd.f32 1.0, %v3373_v59 }
 0x502   :  { %v3377_v63 = vpop.eup %3376  ;;  %3386 = vrcp.f32 %v2583_v60  ;;  %v2584_v0 = vadd.f32 1.0, %v3375_v61 }
 0x503   :  { %3388 = vrcp.f32 %v2589_v62  ;;  %v2590_v1 = vadd.f32 1.0, %v3377_v63 }
 0x504   :  { %3390 = vrcp.f32 %v2584_v0 }
 0x505   :  { %3392 = vrcp.f32 %v2590_v1 }
 0x508   :  { %v3379_v2 = vpop.eup %3378 }
 0x509   :  { %v3381_v3 = vpop.eup %3380 }
 0x50a   :  { %v3383_v22 = vpop.eup %3382 }
 0x50b   :  { %v3385_v23 = vpop.eup %3384  ;;  %v3055_v24 = vpack.c.bf16 %v3383_v22, %v3379_v2 }
 0x50c   :  { %v3387_v4 = vpop.eup %3386  ;;  %v3058_v5 = vpack.c.bf16 %v3385_v23, %v3381_v3 }
 0x50d   :  { %v3389_v6 = vpop.eup %3388  ;;  %2671 = vst [vmem:[#allocation13] sm:$0xff] %v3055_v24 }
 0x50e   :  { %v3391_v7 = vpop.eup %3390  ;;  %2674 = vst [vmem:[#allocation13 + $0x18] sm:$0xff] %v3058_v5 }
 0x50f   :  { %v3393_v10 = vpop.eup %3392  ;;  %v3059_v11 = vpack.c.bf16 %v3391_v7, %v3387_v4 }
 0x510   :  { %v3062_v12 = vpack.c.bf16 %v3393_v10, %v3389_v6 }
 0x511   :  { %2675 = vst [vmem:[#allocation13 + $0x20] sm:$0xff] %v3059_v11 }
 0x512   :  { %2678 = vst [vmem:[#allocation13 + $0x38] sm:$0xff] %v3062_v12 }
 0x513   :  { %3569 = shalt.err (!%p3566_p10)
}
 0x514   :  { %s3570_s2 = scalar_lea.hbm %s3908_s11, 512 }
 0x515   :  { %p3571_p11 = scmp.ne.s32.totalorder %s3908_s11, %s3570_s2  ;;  %p3574_p12 = scmp.lt.u32.totalorder %s3570_s2, %s3908_s11 }
 0x517   :  { %p3576_p13 = pnand %p3574_p12, %p3571_p11 }
 0x519   :  { %3579 = shalt.err (!%p3576_p13)
}
 0x51a   :  { %s3626_s30 = smov 256   ;;  %s3627_s12 = smov 16   ;;  %v1685_v13 = vsub.s32 2, %v3803_v50  ;;  %v1689_v16 = vsub.s32 3, %v3803_v50  ;;  %v1693_v43 = vsub.s32 4, %v3803_v50  ;;  %v1697_v44 = vsub.s32 5, %v3803_v50 }
 0x51b   :  { %2706 = dma.vmem_to_hbm [thread:$0]  %s2701_s21, 512, %s3908_s11, [#allocation15], %s3626_s30, %s3626_s30, %s3627_s12  }
 0x51c   :  { %v1686_v17 = vrot.slane %v3853_v8, %v1685_v13  ;;  %v1690_v18 = vrot.slane %v3853_v8, %v1689_v16  ;;  %v1694_v45 = vrot.slane %v3853_v8, %v1693_v43  ;;  %v1698_v46 = vrot.slane %v3853_v8, %v1697_v44  ;;  %s3628_s11 = smov [#allocation13]  }
 0x51d   :  { %s2688_s14 = sshll.u32 %s3628_s11, 4  ;;  %s2689_s14 = int_to_ptr.vmem [resolvable:$true] %s2688_s14 }
 0x51e   :  { %s3580_s16 = scalar_lea.vmem %s2689_s14, 1024  ;;  %p3585_p1 = scmp.lt.s32.totalorder %s2689_s14, %s2689_s14 }
 0x51f   :  { %p3581_p0 = scmp.ne.s32.totalorder %s2689_s14, %s3580_s16  ;;  %p3586_p2 = scmp.lt.s32.totalorder %s3580_s16, %s3580_s16 }
 0x521   :  { %p3587_p3 = por %p3586_p2, %p3585_p1 }
 0x523   :  { %p3588_p4 = pnand %p3587_p3, %p3581_p0 }
 0x52c   :  { %v2432_v19 = vpop.f32.mrb[12].mxu1 }
 0x52d   :  { %v2433_v9 = vadd.f32 %v2432_v19, %v1686_v17  ;;  %v2434_v20 = vpop.f32.mrb[13].mxu1 }
 0x52e   :  { %v2435_v21 = vadd.f32 %v2434_v20, %v1690_v18  ;;  %v2436_v25 = vpop.f32.mrb[14].mxu1 }
 0x52f   :  { %v3033_v26 = vmul.f32 -1.442695, %v2433_v9  ;;  %v2437_v14 = vadd.f32 %v2436_v25, %v1686_v17  ;;  %v2438_v27 = vpop.f32.mrb[15].mxu1 }
 0x530   :  { %v3034_v28 = vmul.f32 -1.442695, %v2435_v21  ;;  %v2439_v29 = vadd.f32 %v2438_v27, %v1690_v18 }
 0x531   :  { %3394 = vpow2.f32 %v3033_v26  ;;  %v3041_v30 = vmul.f32 -1.442695, %v2437_v14 }
 0x532   :  { %3396 = vpow2.f32 %v3034_v28  ;;  %v3042_v31 = vmul.f32 -1.442695, %v2439_v29 }
 0x533   :  { %3398 = vpow2.f32 %v3041_v30 }
 0x534   :  { %3400 = vpow2.f32 %v3042_v31 }
 0x53b   :  { %v3395_v32 = vpop.eup %3394 }
 0x53c   :  { %v3397_v33 = vpop.eup %3396  ;;  %v2577_v34 = vadd.f32 1.0, %v3395_v32 }
 0x53d   :  { %v3399_v35 = vpop.eup %3398  ;;  %v2578_v36 = vadd.f32 1.0, %v3397_v33 }
 0x53e   :  { %v3401_v37 = vpop.eup %3400  ;;  %3402 = vrcp.f32 %v2577_v34  ;;  %v2585_v51 = vadd.f32 1.0, %v3399_v35 }
 0x53f   :  { %3404 = vrcp.f32 %v2578_v36  ;;  %v2586_v15 = vadd.f32 1.0, %v3401_v37 }
 0x540   :  { %3406 = vrcp.f32 %v2585_v51 }
 0x541   :  { %3408 = vrcp.f32 %v2586_v15 }
 0x548   :  { %v3403_v38 = vpop.eup %3402 }
 0x549   :  { %v3405_v39 = vpop.eup %3404 }
 0x54a   :  { %v3407_v40 = vpop.eup %3406  ;;  %v3056_v53 = vpack.c.bf16 %v3405_v39, %v3403_v38 }
 0x54b   :  { %v3409_v41 = vpop.eup %3408 }
 0x54c   :  { %2672 = vst [vmem:[#allocation13 + $0x8] sm:$0xff] %v3056_v53  ;;  %v3060_v42 = vpack.c.bf16 %v3409_v41, %v3407_v40 }
 0x54e   :  { %2676 = vst [vmem:[#allocation13 + $0x28] sm:$0xff] %v3060_v42 }
 0x56c   :  { %v2475_v47 = vpop.f32.mrb[16].mxu1 }
 0x56d   :  { %v2476_v48 = vadd.f32 %v2475_v47, %v1694_v45  ;;  %v2477_v49 = vpop.f32.mrb[17].mxu1 }
 0x56e   :  { %v2478_v52 = vadd.f32 %v2477_v49, %v1698_v46  ;;  %v2479_v54 = vpop.f32.mrb[18].mxu1 }
 0x56f   :  { %v3035_v55 = vmul.f32 -1.442695, %v2476_v48  ;;  %v2480_v56 = vadd.f32 %v2479_v54, %v1694_v45  ;;  %v2481_v57 = vpop.f32.mrb[19].mxu1 }
 0x570   :  { %v3036_v58 = vmul.f32 -1.442695, %v2478_v52  ;;  %v2482_v59 = vadd.f32 %v2481_v57, %v1698_v46 }
 0x571   :  { %3410 = vpow2.f32 %v3035_v55  ;;  %v3043_v60 = vmul.f32 -1.442695, %v2480_v56 }
 0x572   :  { %3412 = vpow2.f32 %v3036_v58  ;;  %v3044_v61 = vmul.f32 -1.442695, %v2482_v59 }
 0x573   :  { %3414 = vpow2.f32 %v3043_v60 }
 0x574   :  { %3416 = vpow2.f32 %v3044_v61 }
 0x57b   :  { %v3411_v50 = vpop.eup %3410 }
 0x57c   :  { %v3413_v62 = vpop.eup %3412  ;;  %v2579_v63 = vadd.f32 1.0, %v3411_v50 }
 0x57d   :  { %v3415_v8 = vpop.eup %3414  ;;  %v2580_v0 = vadd.f32 1.0, %v3413_v62 }
 0x57e   :  { %v3417_v1 = vpop.eup %3416  ;;  %3418 = vrcp.f32 %v2579_v63  ;;  %v2587_v2 = vadd.f32 1.0, %v3415_v8 }
 0x57f   :  { %3420 = vrcp.f32 %v2580_v0  ;;  %v2588_v3 = vadd.f32 1.0, %v3417_v1 }
 0x580   :  { %3422 = vrcp.f32 %v2587_v2 }
 0x581   :  { %3424 = vrcp.f32 %v2588_v3 }
 0x588   :  { %v3419_v22 = vpop.eup %3418 }
 0x589   :  { %v3421_v23 = vpop.eup %3420 }
 0x58a   :  { %v3423_v24 = vpop.eup %3422  ;;  %v3057_v4 = vpack.c.bf16 %v3421_v23, %v3419_v22 }
 0x58b   :  { %v3425_v5 = vpop.eup %3424 }
 0x58c   :  { %2673 = vst [vmem:[#allocation13 + $0x10] sm:$0xff] %v3057_v4  ;;  %v3061_v6 = vpack.c.bf16 %v3425_v5, %v3423_v24 }
 0x58e   :  { %2677 = vst [vmem:[#allocation13 + $0x30] sm:$0xff] %v3061_v6 }
 0x58f   :  { %3591 = shalt.err (!%p3588_p4)
}
 0x590   :  { %s3592_s27 = scalar_lea.hbm %s3907_s10, 1024 }
 0x591   :  { %p3593_p5 = scmp.ne.s32.totalorder %s3907_s10, %s3592_s27  ;;  %p3596_p6 = scmp.lt.u32.totalorder %s3592_s27, %s3907_s10 }
 0x593   :  { %p3598_p7 = pnand %p3596_p6, %p3593_p5 }
 0x595   :  { %3601 = shalt.err (!%p3598_p7)
}
 0x596   :  { %2694 = dma.vmem_to_hbm [thread:$0]  %s2689_s14, 1024, %s3907_s10, [#allocation4], %s3619_s4, %s3619_s4, %s3620_s13  }
 0x597   :  { %3610 = dma.done.wait [#allocation4], 1024  }
 0x598   :  { %3611 = vsyncadd [#allocation4], 4294966272 }
 0x599   :  { %3612 = dma.done.wait [#allocation15], 512  }
 0x59a   :  { %3613 = vsyncadd [#allocation15], 4294966784 }
 0x59b   :  { %2713 = vsyncpa [#allocation3], 1 }
 0x59c   :  { %2714 = vsyncpa [#allocation6], 1 }
 0x59d   :  { %2715 = vsyncpa [#allocation9], 1 }
 0x59e   :  { %2716 = vsyncpa [#allocation12], 1 }
 0x59f   :  { %2717 = vsyncpa [#allocation4], 1 }
 0x5a0   :  { %2718 = vsyncpa [#allocation15], 1 }

// kernel: tpu_custom_call.1
= control target key start
LH: loop header
LB: loop body
LE: loop exit
PB: predicated region body
PF: predicated region fallthrough
CT: control target
= control target key end

     0   :  { %17 = vsyncpa [#allocation3], 0  ;;  %s3897_s0 = inlined_call_operand.hbm [shape: bf16[16,1024], index: 0, kind: input, shape index: {}]   ;;  %s3898_s1 = inlined_call_operand.hbm [shape: f32[16,128], index: 1, kind: input, shape index: {}]   ;;  %s3899_s2 = inlined_call_operand.hbm [shape: bf16[1024,256], index: 2, kind: input, shape index: {}]   ;;  %s3900_s3 = inlined_call_operand.vmem [shape: f32[1,256], index: 3, kind: input, shape index: {}]   ;;  %s3901_s4 = inlined_call_operand.hbm [shape: bf16[256,256], index: 4, kind: input, shape index: {}]   ;;  %s3902_s5 = inlined_call_operand.vmem [shape: f32[1,256], index: 5, kind: input, shape index: {}]   ;;  %s3903_s6 = inlined_call_operand.hbm [shape: bf16[128,256], index: 6, kind: input, shape index: {}]   ;;  %s3904_s7 = inlined_call_operand.vmem [shape: f32[1,256], index: 7, kind: input, shape index: {}]   ;;  %s3905_s8 = inlined_call_operand.hbm [shape: bf16[256,1024], index: 8, kind: input, shape index: {}]   ;;  %s3906_s9 = inlined_call_operand.vmem [shape: f32[1,1024], index: 9, kind: input, shape index: {}]   ;;  %s3907_s10 = inlined_call_operand.hbm [shape: bf16[16,1024], index: 10, kind: output, shape index: {0}]   ;;  %s3908_s11 = inlined_call_operand.hbm [shape: f32[16,256], index: 11, kind: output, shape index: {1}]  }
   0x1   :  { %18 = vsyncpa [#allocation6], 0 }
   0x2   :  { %19 = vsyncpa [#allocation9], 0 }
   0x3   :  { %20 = vsyncpa [#allocation12], 0 }
   0x4   :  { %21 = vsyncpa [#allocation4], 0 }
   0x5   :  { %22 = vsyncpa [#allocation15], 0  ;;  %s3614_s17 = smov [#allocation5]   ;;  %s3426_s21 = scalar_lea.hbm %s3898_s1, 256 }
   0x6   :  { %s40_s18 = sshll.u32 %s3614_s17, 4  ;;  %p3427_p0 = scmp.ne.s32.totalorder %s3898_s1, %s3426_s21  ;;  %s41_s18 = int_to_ptr.vmem [resolvable:$true] %s40_s18 }
   0x7   :  { %p3430_p1 = scmp.lt.u32.totalorder %s3426_s21, %s3898_s1 }
   0x9   :  { %p3432_p2 = pnand %p3430_p1, %p3427_p0 }
   0xb   :  { %3435 = shalt.err (!%p3432_p2)
}
   0xc   :  { %s3436_s26 = scalar_lea.vmem %s41_s18, 256  ;;  %p3441_p4 = scmp.lt.s32.totalorder %s41_s18, %s41_s18 }
   0xd   :  { %p3437_p3 = scmp.ne.s32.totalorder %s41_s18, %s3436_s26  ;;  %p3442_p5 = scmp.lt.s32.totalorder %s3436_s26, %s3436_s26 }
   0xf   :  { %p3443_p6 = por %p3442_p5, %p3441_p4 }
  0x11   :  { %p3444_p7 = pnand %p3443_p6, %p3437_p3 }
  0x13   :  { %3447 = shalt.err (!%p3444_p7)
}
  0x14   :  { %s3615_s27 = smov 128   ;;  %s3616_s28 = smov 8  }
  0x15   :  { %46 = dma.hbm_to_vmem [thread:$0]  %s3898_s1, 256, %s41_s18, [#allocation6], %s3615_s27, %s3615_s27, %s3616_s28  }
  0x16   :  { %s3617_s12 = smov [#allocation8]   ;;  %s3618_s14 = smov [#allocation2]  }
  0x17   :  { %s66_s13 = sshll.u32 %s3617_s12, 4  ;;  %s28_s15 = sshll.u32 %s3618_s14, 4  ;;  %s67_s13 = int_to_ptr.vmem [resolvable:$true] %s66_s13  ;;  %s29_s15 = int_to_ptr.vmem [resolvable:$true] %s28_s15 }
  0x18   :  { %s3448_s19 = scalar_lea.hbm %s3901_s4, 4096 }
  0x19   :  { %p3449_p8 = scmp.ne.s32.totalorder %s3901_s4, %s3448_s19  ;;  %p3452_p9 = scmp.lt.u32.totalorder %s3448_s19, %s3901_s4 }
  0x1b   :  { %p3454_p10 = pnand %p3452_p9, %p3449_p8 }
  0x1d   :  { %3457 = shalt.err (!%p3454_p10)
}
  0x1e   :  { %s3458_s1 = scalar_lea.vmem %s67_s13, 4096  ;;  %p3463_p12 = scmp.lt.s32.totalorder %s67_s13, %s67_s13 }
  0x1f   :  { %p3459_p11 = scmp.ne.s32.totalorder %s67_s13, %s3458_s1  ;;  %p3464_p13 = scmp.lt.s32.totalorder %s3458_s1, %s3458_s1 }
  0x21   :  { %p3465_p0 = por %p3464_p13, %p3463_p12 }
  0x23   :  { %p3466_p1 = pnand %p3465_p0, %p3459_p11 }
  0x25   :  { %3469 = shalt.err (!%p3466_p1)
}
  0x26   :  { %72 = dma.hbm_to_vmem [thread:$0]  %s3901_s4, 4096, %s67_s13, [#allocation9], %s3615_s27, %s3615_s27, %s3616_s28  }
  0x27   :  { %s3470_s29 = scalar_lea.hbm %s3897_s0, 1024 }
  0x28   :  { %p3471_p2 = scmp.ne.s32.totalorder %s3897_s0, %s3470_s29  ;;  %p3474_p3 = scmp.lt.u32.totalorder %s3470_s29, %s3897_s0 }
  0x2a   :  { %p3476_p4 = pnand %p3474_p3, %p3471_p2 }
  0x2c   :  { %3479 = shalt.err (!%p3476_p4)
}
  0x2d   :  { %s3480_s17 = scalar_lea.vmem %s29_s15, 1024  ;;  %p3485_p6 = scmp.lt.s32.totalorder %s29_s15, %s29_s15 }
  0x2e   :  { %p3481_p5 = scmp.ne.s32.totalorder %s29_s15, %s3480_s17  ;;  %p3486_p7 = scmp.lt.s32.totalorder %s3480_s17, %s3480_s17 }
  0x30   :  { %p3487_p8 = por %p3486_p7, %p3485_p6 }
  0x32   :  { %p3488_p9 = pnand %p3487_p8, %p3481_p5 }
  0x34   :  { %3491 = shalt.err (!%p3488_p9)
}
  0x35   :  { %s3619_s4 = smov 512   ;;  %s3620_s13 = smov 32  }
  0x36   :  { %34 = dma.hbm_to_vmem [thread:$0]  %s3897_s0, 1024, %s29_s15, [#allocation3], %s3619_s4, %s3619_s4, %s3620_s13  }
  0x37   :  { %s3621_s21 = smov [#allocation7]   ;;  %s3622_s23 = smov [#allocation10]  }
  0x38   :  { %s52_s22 = sshll.u32 %s3621_s21, 4  ;;  %s80_s1 = sshll.u32 %s3622_s23, 4  ;;  %s53_s22 = int_to_ptr.vmem [resolvable:$true] %s52_s22  ;;  %s81_s1 = int_to_ptr.vmem [resolvable:$true] %s80_s1 }
  0x39   :  { %s3492_s25 = scalar_lea.hbm %s3899_s2, 16384 }
  0x3a   :  { %p3493_p10 = scmp.ne.s32.totalorder %s3899_s2, %s3492_s25  ;;  %p3496_p11 = scmp.lt.u32.totalorder %s3492_s25, %s3899_s2 }
  0x3c   :  { %p3498_p12 = pnand %p3496_p11, %p3493_p10 }
  0x3e   :  { %3501 = shalt.err (!%p3498_p12)
}
  0x3f   :  { %s3502_s0 = scalar_lea.vmem %s53_s22, 16384  ;;  %p3507_p0 = scmp.lt.s32.totalorder %s53_s22, %s53_s22 }
  0x40   :  { %p3503_p13 = scmp.ne.s32.totalorder %s53_s22, %s3502_s0  ;;  %p3508_p1 = scmp.lt.s32.totalorder %s3502_s0, %s3502_s0 }
  0x42   :  { %p3509_p2 = por %p3508_p1, %p3507_p0 }
  0x44   :  { %p3510_p3 = pnand %p3509_p2, %p3503_p13 }
  0x46   :  { %3513 = shalt.err (!%p3510_p3)
}
  0x47   :  { %58 = dma.hbm_to_vmem [thread:$0]  %s3899_s2, 16384, %s53_s22, [#allocation6], %s3615_s27, %s3615_s27, %s3616_s28  }
  0x48   :  { %s3514_s19 = scalar_lea.hbm %s3903_s6, 2048 }
  0x49   :  { %p3515_p4 = scmp.ne.s32.totalorder %s3903_s6, %s3514_s19  ;;  %p3518_p5 = scmp.lt.u32.totalorder %s3514_s19, %s3903_s6 }
  0x4b   :  { %p3520_p6 = pnand %p3518_p5, %p3515_p4 }
  0x4d   :  { %3523 = shalt.err (!%p3520_p6)
}
  0x4e   :  { %s3524_s24 = scalar_lea.vmem %s81_s1, 2048  ;;  %p3529_p8 = scmp.lt.s32.totalorder %s81_s1, %s81_s1 }
  0x4f   :  { %p3525_p7 = scmp.ne.s32.totalorder %s81_s1, %s3524_s24  ;;  %p3530_p9 = scmp.lt.s32.totalorder %s3524_s24, %s3524_s24 }
  0x51   :  { %p3531_p10 = por %p3530_p9, %p3529_p8 }
  0x53   :  { %p3532_p11 = pnand %p3531_p10, %p3525_p7 }
  0x55   :  { %3535 = shalt.err (!%p3532_p11)
}
  0x56   :  { %86 = dma.hbm_to_vmem [thread:$0]  %s3903_s6, 2048, %s81_s1, [#allocation9], %s3615_s27, %s3615_s27, %s3616_s28  }
  0x57   :  { %s3623_s25 = smov [#allocation11]   ;;  %s3536_s12 = scalar_lea.hbm %s3905_s8, 16384 }
  0x58   :  { %s94_s26 = sshll.u32 %s3623_s25, 4  ;;  %p3537_p12 = scmp.ne.s32.totalorder %s3905_s8, %s3536_s12  ;;  %s95_s26 = int_to_ptr.vmem [resolvable:$true] %s94_s26 }
  0x59   :  { %p3540_p13 = scmp.lt.u32.totalorder %s3536_s12, %s3905_s8 }
  0x5b   :  { %p3542_p0 = pnand %p3540_p13, %p3537_p12 }
  0x5d   :  { %3545 = shalt.err (!%p3542_p0)
}
  0x5e   :  { %s3546_s17 = scalar_lea.vmem %s95_s26, 16384  ;;  %p3551_p2 = scmp.lt.s32.totalorder %s95_s26, %s95_s26 }
  0x5f   :  { %p3547_p1 = scmp.ne.s32.totalorder %s95_s26, %s3546_s17  ;;  %p3552_p3 = scmp.lt.s32.totalorder %s3546_s17, %s3546_s17 }
  0x61   :  { %p3553_p4 = por %p3552_p3, %p3551_p2 }
  0x63   :  { %p3554_p5 = pnand %p3553_p4, %p3547_p1 }
  0x65   :  { %3557 = shalt.err (!%p3554_p5)
}
  0x66   :  { %100 = dma.hbm_to_vmem [thread:$0]  %s3905_s8, 16384, %s95_s26, [#allocation12], %s3619_s4, %s3619_s4, %s3620_s13  }
  0x67   :  { %3602 = dma.done.wait [#allocation3], 1024  }
  0x68   :  { %3603 = vsyncadd [#allocation3], 4294966272 }
  0x69   :  { %3604 = dma.done.wait [#allocation6], 16640  }
  0x6a   :  { %3605 = vsyncadd [#allocation6], 4294950656 }
  0x6b   :  { %3606 = dma.done.wait [#allocation9], 6144  }
  0x6c   :  { %3607 = vsyncadd [#allocation9], 4294961152 }
  0x6d   :  { %3608 = dma.done.wait [#allocation12], 16384  }
  0x6e   :  { %3609 = vsyncadd [#allocation12], 4294950912  ;;  %v3094_v0 = vld [vmem:[#allocation7 + $0x4] ss:$8 sps:$4 sm:$0xff]   ;;  %v3096_v1 = vld [vmem:[#allocation7] ss:$8 sps:$4 sm:$0xff]  }
  0x6f   :  { %950 = vmatprep.subr.bf16.mxu0 %v3094_v0  ;;  %v3097_v2 = vld [vmem:[#allocation7 + $0x14] ss:$8 sps:$4 sm:$0xff]   ;;  %v3099_v3 = vld [vmem:[#allocation7 + $0x10] ss:$8 sps:$4 sm:$0xff]   ;;  %v3100_v4 = vld [vmem:[#allocation7 + $0x24] ss:$8 sps:$4 sm:$0xff]  }
  0x70   :  { %951 = vmatpush1.bf16.msra.mxu0 %v3096_v1  ;;  %v3102_v5 = vld [vmem:[#allocation7 + $0x20] ss:$8 sps:$4 sm:$0xff]   ;;  %v3103_v6 = vld [vmem:[#allocation7 + $0x34] ss:$8 sps:$4 sm:$0xff]   ;;  %v3105_v7 = vld [vmem:[#allocation7 + $0x30] ss:$8 sps:$4 sm:$0xff]  }
  0x71   :  { %952 = vmatprep.subr.bf16.mxu0 %v3097_v2  ;;  %v3106_v8 = vld [vmem:[#allocation7 + $0x44] ss:$8 sps:$4 sm:$0xff]   ;;  %v3108_v9 = vld [vmem:[#allocation7 + $0x40] ss:$8 sps:$4 sm:$0xff]   ;;  %v3109_v10 = vld [vmem:[#allocation7 + $0x54] ss:$8 sps:$4 sm:$0xff]  }
  0x72   :  { %v3111_v11 = vld [vmem:[#allocation7 + $0x50] ss:$8 sps:$4 sm:$0xff]   ;;  %v3112_v12 = vld [vmem:[#allocation7 + $0x64] ss:$8 sps:$4 sm:$0xff]   ;;  %v3114_v16 = vld [vmem:[#allocation7 + $0x60] ss:$8 sps:$4 sm:$0xff]  }
  0x73   :  { %v122_v13 = vld [vmem:[#allocation2] sm:$0xff]  ;;  %v3118_v19 = vld [vmem:[#allocation7 + $0x84] ss:$8 sps:$4 sm:$0xff]   ;;  %v3120_v20 = vld [vmem:[#allocation7 + $0x80] ss:$8 sps:$4 sm:$0xff]  }
  0x74   :  { %953 = vmatpush1.bf16.msra.mxu0 %v3099_v3  ;;  %v126_v14 = vld [vmem:[#allocation2 + $0x20] sm:$0xff]  ;;  %v3124_v23 = vld [vmem:[#allocation7 + $0xa4] ss:$8 sps:$4 sm:$0xff]   ;;  %v3126_v24 = vld [vmem:[#allocation7 + $0xa0] ss:$8 sps:$4 sm:$0xff]  }
  0x75   :  { %954 = vmatprep.subr.bf16.mxu0 %v3100_v4  ;;  %v2720_v15 = vcombine.high %v122_v13, %v126_v14  ;;  %v3115_v17 = vld [vmem:[#allocation7 + $0x74] ss:$8 sps:$4 sm:$0xff]   ;;  %v3117_v18 = vld [vmem:[#allocation7 + $0x70] ss:$8 sps:$4 sm:$0xff]   ;;  %v3130_v27 = vld [vmem:[#allocation7 + $0xc4] ss:$8 sps:$4 sm:$0xff]   ;;  %v2719_v38 = vcombine.low %v122_v13, %v126_v14 }
  0x76   :  { %v3121_v21 = vld [vmem:[#allocation7 + $0x94] ss:$8 sps:$4 sm:$0xff]   ;;  %v3123_v22 = vld [vmem:[#allocation7 + $0x90] ss:$8 sps:$4 sm:$0xff]   ;;  %v3132_v28 = vld [vmem:[#allocation7 + $0xc0] ss:$8 sps:$4 sm:$0xff]  }
  0x77   :  { %982 = vmatprep.mubr.bf16.mxu0 %v2720_v15  ;;  %v3127_v25 = vld [vmem:[#allocation7 + $0xb4] ss:$8 sps:$4 sm:$0xff]   ;;  %v3129_v26 = vld [vmem:[#allocation7 + $0xb0] ss:$8 sps:$4 sm:$0xff]   ;;  %v3136_v31 = vld [vmem:[#allocation7 + $0xe4] ss:$8 sps:$4 sm:$0xff]  }
  0x78   :  { %955 = vmatpush1.bf16.msra.mxu0 %v3102_v5  ;;  %v3133_v29 = vld [vmem:[#allocation7 + $0xd4] ss:$8 sps:$4 sm:$0xff]   ;;  %v3135_v30 = vld [vmem:[#allocation7 + $0xd0] ss:$8 sps:$4 sm:$0xff]   ;;  %v3138_v32 = vld [vmem:[#allocation7 + $0xe0] ss:$8 sps:$4 sm:$0xff]  }
  0x79   :  { %956 = vmatprep.subr.bf16.mxu0 %v3103_v6  ;;  %v3139_v33 = vld [vmem:[#allocation7 + $0xf4] ss:$8 sps:$4 sm:$0xff]   ;;  %v3141_v34 = vld [vmem:[#allocation7 + $0xf0] ss:$8 sps:$4 sm:$0xff]   ;;  %v3144_v35 = vld [vmem:[#allocation7 + $0x104] ss:$8 sps:$4 sm:$0xff]  }
  0x7a   :  { %v3779_v36 = vld [vmem:[#allocation2 + $0x8] sm:$0xff]  ;;  %v3142_v39 = vld [vmem:[#allocation7 + $0x100] ss:$8 sps:$4 sm:$0xff]   ;;  %v3150_v43 = vld [vmem:[#allocation7 + $0x124] ss:$8 sps:$4 sm:$0xff]  }
  0x7b   :  { %v3781_v37 = vld [vmem:[#allocation2 + $0x28] sm:$0xff]  ;;  %v3148_v44 = vld [vmem:[#allocation7 + $0x120] ss:$8 sps:$4 sm:$0xff]   ;;  %v3156_v47 = vld [vmem:[#allocation7 + $0x144] ss:$8 sps:$4 sm:$0xff]  }
  0x7c   :  { %957 = vmatpush1.bf16.msra.mxu0 %v3105_v7  ;;  %v2722_v40 = vcombine.high %v3779_v36, %v3781_v37  ;;  %v3147_v41 = vld [vmem:[#allocation7 + $0x114] ss:$8 sps:$4 sm:$0xff]   ;;  %v3145_v42 = vld [vmem:[#allocation7 + $0x110] ss:$8 sps:$4 sm:$0xff]   ;;  %v3154_v48 = vld [vmem:[#allocation7 + $0x140] ss:$8 sps:$4 sm:$0xff]  }
  0x7d   :  { %958 = vmatprep.subr.bf16.mxu0 %v3106_v8  ;;  %v3153_v45 = vld [vmem:[#allocation7 + $0x134] ss:$8 sps:$4 sm:$0xff]   ;;  %v3151_v46 = vld [vmem:[#allocation7 + $0x130] ss:$8 sps:$4 sm:$0xff]   ;;  %v3162_v51 = vld [vmem:[#allocation7 + $0x164] ss:$8 sps:$4 sm:$0xff]  }
  0x7e   :  { %v3159_v49 = vld [vmem:[#allocation7 + $0x154] ss:$8 sps:$4 sm:$0xff]   ;;  %v3157_v50 = vld [vmem:[#allocation7 + $0x150] ss:$8 sps:$4 sm:$0xff]   ;;  %v3160_v52 = vld [vmem:[#allocation7 + $0x160] ss:$8 sps:$4 sm:$0xff]  }
  0x7f   :  { %v3165_v53 = vld [vmem:[#allocation7 + $0x174] ss:$8 sps:$4 sm:$0xff]   ;;  %v3163_v54 = vld [vmem:[#allocation7 + $0x170] ss:$8 sps:$4 sm:$0xff]   ;;  %v3168_v55 = vld [vmem:[#allocation7 + $0x184] ss:$8 sps:$4 sm:$0xff]  }
  0x80   :  { %959 = vmatpush1.bf16.msra.mxu0 %v3108_v9  ;;  %v3166_v56 = vld [vmem:[#allocation7 + $0x180] ss:$8 sps:$4 sm:$0xff]   ;;  %v3171_v57 = vld [vmem:[#allocation7 + $0x194] ss:$8 sps:$4 sm:$0xff]   ;;  %v3169_v58 = vld [vmem:[#allocation7 + $0x190] ss:$8 sps:$4 sm:$0xff]  }
  0x81   :  { %960 = vmatprep.subr.bf16.mxu0 %v3109_v10  ;;  %v3174_v59 = vld [vmem:[#allocation7 + $0x1a4] ss:$8 sps:$4 sm:$0xff]   ;;  %v3172_v60 = vld [vmem:[#allocation7 + $0x1a0] ss:$8 sps:$4 sm:$0xff]   ;;  %v3177_v61 = vld [vmem:[#allocation7 + $0x1b4] ss:$8 sps:$4 sm:$0xff]   ;;  %v2721_v10 = vcombine.low %v3779_v36, %v3781_v37 }
  0x82   :  { %v3175_v62 = vld [vmem:[#allocation7 + $0x1b0] ss:$8 sps:$4 sm:$0xff]   ;;  %v3180_v63 = vld [vmem:[#allocation7 + $0x1c4] ss:$8 sps:$4 sm:$0xff]   ;;  %v3178_v0 = vld [vmem:[#allocation7 + $0x1c0] ss:$8 sps:$4 sm:$0xff]  }
  0x83   :  { %v3183_v1 = vld [vmem:[#allocation7 + $0x1d4] ss:$8 sps:$4 sm:$0xff]   ;;  %v3181_v2 = vld [vmem:[#allocation7 + $0x1d0] ss:$8 sps:$4 sm:$0xff]   ;;  %v3186_v3 = vld [vmem:[#allocation7 + $0x1e4] ss:$8 sps:$4 sm:$0xff]  }
  0x84   :  { %961 = vmatpush1.bf16.msra.mxu0 %v3111_v11  ;;  %v3184_v4 = vld [vmem:[#allocation7 + $0x1e0] ss:$8 sps:$4 sm:$0xff]   ;;  %v3189_v5 = vld [vmem:[#allocation7 + $0x1f4] ss:$8 sps:$4 sm:$0xff]   ;;  %v3187_v6 = vld [vmem:[#allocation7 + $0x1f0] ss:$8 sps:$4 sm:$0xff]  }
  0x85   :  { %962 = vmatprep.subr.bf16.mxu0 %v3112_v12  ;;  %v3192_v7 = vld [vmem:[#allocation7 + $0x204] ss:$8 sps:$4 sm:$0xff]   ;;  %v3190_v11 = vld [vmem:[#allocation7 + $0x200] ss:$8 sps:$4 sm:$0xff]   ;;  %v3195_v13 = vld [vmem:[#allocation7 + $0x214] ss:$8 sps:$4 sm:$0xff]  }
  0x86   :  { %v3785_v8 = vld [vmem:[#allocation2 + $0x10] sm:$0xff] }
  0x87   :  { %v3787_v9 = vld [vmem:[#allocation2 + $0x30] sm:$0xff] }
  0x88   :  { %963 = vmatpush1.bf16.msra.mxu0 %v3114_v16  ;;  %v2724_v12 = vcombine.high %v3785_v8, %v3787_v9  ;;  %v3286_v14 = vld [vmem:[#allocation8 + $0x4] ss:$8 sps:$4 sm:$0xff]   ;;  %v3288_v15 = vld [vmem:[#allocation8] ss:$8 sps:$4 sm:$0xff]   ;;  %v3289_v16 = vld [vmem:[#allocation8 + $0x14] ss:$8 sps:$4 sm:$0xff]  }
  0x89   :  { %964 = vmatprep.subr.bf16.mxu0 %v3115_v17  ;;  %v3193_v17 = vld [vmem:[#allocation7 + $0x210] ss:$8 sps:$4 sm:$0xff]   ;;  %1332 = vmatprep.subr.bf16.mxu1 %v3286_v14  ;;  %v3304_v36 = vld [vmem:[#allocation8 + $0x64] ss:$8 sps:$4 sm:$0xff]   ;;  %v3208_v37 = vld [vmem:[#allocation7 + $0x260] ss:$8 sps:$4 sm:$0xff]  }
  0x8a   :  { %1333 = vmatpush1.bf16.msra.mxu1 %v3288_v15  ;;  %v3243_v14 = vld [vmem:[#allocation7 + $0x314] ss:$8 sps:$4 sm:$0xff]   ;;  %v3241_v15 = vld [vmem:[#allocation7 + $0x310] ss:$8 sps:$4 sm:$0xff]  }
  0x8b   :  { %1334 = vmatprep.subr.bf16.mxu1 %v3289_v16  ;;  %v3246_v16 = vld [vmem:[#allocation7 + $0x324] ss:$8 sps:$4 sm:$0xff]  }
  0x8c   :  { %965 = vmatpush1.bf16.msra.mxu0 %v3117_v18  ;;  %v3198_v18 = vld [vmem:[#allocation7 + $0x224] ss:$8 sps:$4 sm:$0xff]  }
  0x8d   :  { %966 = vmatprep.subr.bf16.mxu0 %v3118_v19  ;;  %v3291_v19 = vld [vmem:[#allocation8 + $0x10] ss:$8 sps:$4 sm:$0xff]  }
  0x8e   :  { %1335 = vmatpush1.bf16.msra.mxu1 %v3291_v19  ;;  %v3247_v19 = vld [vmem:[#allocation7 + $0x330] ss:$8 sps:$4 sm:$0xff]  }
  0x90   :  { %967 = vmatpush1.bf16.msra.mxu0 %v3120_v20  ;;  %v3292_v20 = vld [vmem:[#allocation8 + $0x24] ss:$8 sps:$4 sm:$0xff]  }
  0x91   :  { %968 = vmatprep.subr.bf16.mxu0 %v3121_v21  ;;  %v3196_v21 = vld [vmem:[#allocation7 + $0x220] ss:$8 sps:$4 sm:$0xff]   ;;  %1336 = vmatprep.subr.bf16.mxu1 %v3292_v20  ;;  %v3255_v20 = vld [vmem:[#allocation7 + $0x354] ss:$8 sps:$4 sm:$0xff]  }
  0x94   :  { %969 = vmatpush1.bf16.msra.mxu0 %v3123_v22  ;;  %v3201_v22 = vld [vmem:[#allocation7 + $0x234] ss:$8 sps:$4 sm:$0xff]  }
  0x95   :  { %970 = vmatprep.subr.bf16.mxu0 %v3124_v23  ;;  %v3294_v23 = vld [vmem:[#allocation8 + $0x20] ss:$8 sps:$4 sm:$0xff]  }
  0x96   :  { %1337 = vmatpush1.bf16.msra.mxu1 %v3294_v23  ;;  %v3256_v23 = vld [vmem:[#allocation7 + $0x360] ss:$8 sps:$4 sm:$0xff]  }
  0x98   :  { %971 = vmatpush1.bf16.msra.mxu0 %v3126_v24  ;;  %v3295_v24 = vld [vmem:[#allocation8 + $0x34] ss:$8 sps:$4 sm:$0xff]  }
  0x99   :  { %972 = vmatprep.subr.bf16.mxu0 %v3127_v25  ;;  %v3199_v25 = vld [vmem:[#allocation7 + $0x230] ss:$8 sps:$4 sm:$0xff]   ;;  %1338 = vmatprep.subr.bf16.mxu1 %v3295_v24  ;;  %v3261_v24 = vld [vmem:[#allocation7 + $0x374] ss:$8 sps:$4 sm:$0xff]  }
  0x9c   :  { %973 = vmatpush1.bf16.msra.mxu0 %v3129_v26  ;;  %v3204_v26 = vld [vmem:[#allocation7 + $0x244] ss:$8 sps:$4 sm:$0xff]  }
  0x9d   :  { %974 = vmatprep.subr.bf16.mxu0 %v3130_v27  ;;  %v3297_v27 = vld [vmem:[#allocation8 + $0x30] ss:$8 sps:$4 sm:$0xff]  }
  0x9e   :  { %1339 = vmatpush1.bf16.msra.mxu1 %v3297_v27  ;;  %v3262_v27 = vld [vmem:[#allocation7 + $0x380] ss:$8 sps:$4 sm:$0xff]  }
  0xa0   :  { %975 = vmatpush1.bf16.msra.mxu0 %v3132_v28  ;;  %v3298_v28 = vld [vmem:[#allocation8 + $0x44] ss:$8 sps:$4 sm:$0xff]  }
  0xa1   :  { %976 = vmatprep.subr.bf16.mxu0 %v3133_v29  ;;  %v3202_v29 = vld [vmem:[#allocation7 + $0x240] ss:$8 sps:$4 sm:$0xff]   ;;  %1340 = vmatprep.subr.bf16.mxu1 %v3298_v28  ;;  %v3267_v28 = vld [vmem:[#allocation7 + $0x394] ss:$8 sps:$4 sm:$0xff]  }
  0xa4   :  { %977 = vmatpush1.bf16.msra.mxu0 %v3135_v30  ;;  %v3207_v30 = vld [vmem:[#allocation7 + $0x254] ss:$8 sps:$4 sm:$0xff]  }
  0xa5   :  { %978 = vmatprep.subr.bf16.mxu0 %v3136_v31  ;;  %v3300_v31 = vld [vmem:[#allocation8 + $0x40] ss:$8 sps:$4 sm:$0xff]  }
  0xa6   :  { %1341 = vmatpush1.bf16.msra.mxu1 %v3300_v31  ;;  %v3268_v31 = vld [vmem:[#allocation7 + $0x3a0] ss:$8 sps:$4 sm:$0xff]  }
  0xa8   :  { %979 = vmatpush1.bf16.msra.mxu0 %v3138_v32  ;;  %v3301_v32 = vld [vmem:[#allocation8 + $0x54] ss:$8 sps:$4 sm:$0xff]  }
  0xa9   :  { %980 = vmatprep.subr.bf16.mxu0 %v3139_v33  ;;  %v3205_v33 = vld [vmem:[#allocation7 + $0x250] ss:$8 sps:$4 sm:$0xff]   ;;  %1342 = vmatprep.subr.bf16.mxu1 %v3301_v32  ;;  %v3273_v32 = vld [vmem:[#allocation7 + $0x3b4] ss:$8 sps:$4 sm:$0xff]  }
  0xac   :  { %981 = vmatpush1.bf16.msra.mxu0 %v3141_v34  ;;  %v3210_v34 = vld [vmem:[#allocation7 + $0x264] ss:$8 sps:$4 sm:$0xff]  }
  0xad   :  { %993 = vmatprep.subr.bf16.mxu0 %v3144_v35  ;;  %v3303_v35 = vld [vmem:[#allocation8 + $0x50] ss:$8 sps:$4 sm:$0xff]  }
  0xae   :  { %1343 = vmatpush1.bf16.msra.mxu1 %v3303_v35  ;;  %v3274_v35 = vld [vmem:[#allocation7 + $0x3c0] ss:$8 sps:$4 sm:$0xff]  }
  0xaf   :  { %983 = vmatmul.mubr.bf16.vlgmr.msra.gmra.mrb[0].mxu0 %v2719_v38  ;;  %v3213_v38 = vld [vmem:[#allocation7 + $0x274] ss:$8 sps:$4 sm:$0xff]   ;;  %1344 = vmatprep.subr.bf16.mxu1 %v3304_v36 }
  0xb0   :  { %994 = vmatpush1.bf16.msra.mxu0 %v3142_v39  ;;  %1025 = vmatprep.mubr.bf16.mxu0 %v2722_v40  ;;  %v3306_v39 = vld [vmem:[#allocation8 + $0x60] ss:$8 sps:$4 sm:$0xff]   ;;  %v3307_v40 = vld [vmem:[#allocation8 + $0x74] ss:$8 sps:$4 sm:$0xff]  }
  0xb1   :  { %995 = vmatprep.subr.bf16.mxu0 %v3147_v41  ;;  %v3211_v41 = vld [vmem:[#allocation7 + $0x270] ss:$8 sps:$4 sm:$0xff]   ;;  %v3279_v36 = vld [vmem:[#allocation7 + $0x3d4] ss:$8 sps:$4 sm:$0xff]  }
  0xb2   :  { %1345 = vmatpush1.bf16.msra.mxu1 %v3306_v39  ;;  %v3280_v39 = vld [vmem:[#allocation7 + $0x3e0] ss:$8 sps:$4 sm:$0xff]  }
  0xb3   :  { %1346 = vmatprep.subr.bf16.mxu1 %v3307_v40  ;;  %v3285_v40 = vld [vmem:[#allocation7 + $0x3f4] ss:$8 sps:$4 sm:$0xff]  }
  0xb4   :  { %996 = vmatpush1.bf16.msra.mxu0 %v3145_v42  ;;  %v3216_v42 = vld [vmem:[#allocation7 + $0x284] ss:$8 sps:$4 sm:$0xff]  }
  0xb5   :  { %997 = vmatprep.subr.bf16.mxu0 %v3150_v43  ;;  %v3309_v43 = vld [vmem:[#allocation8 + $0x70] ss:$8 sps:$4 sm:$0xff]  }
  0xb6   :  { %1347 = vmatpush1.bf16.msra.mxu1 %v3309_v43  ;;  %v3327_v43 = vld [vmem:[#allocation8 + $0xd0] ss:$8 sps:$4 sm:$0xff]  }
  0xb8   :  { %998 = vmatpush1.bf16.msra.mxu0 %v3148_v44  ;;  %v3310_v44 = vld [vmem:[#allocation8 + $0x84] ss:$8 sps:$4 sm:$0xff]  }
  0xb9   :  { %999 = vmatprep.subr.bf16.mxu0 %v3153_v45  ;;  %v3214_v45 = vld [vmem:[#allocation7 + $0x280] ss:$8 sps:$4 sm:$0xff]   ;;  %1348 = vmatprep.subr.bf16.mxu1 %v3310_v44  ;;  %v3328_v44 = vld [vmem:[#allocation8 + $0xe4] ss:$8 sps:$4 sm:$0xff]  }
  0xbc   :  { %1000 = vmatpush1.bf16.msra.mxu0 %v3151_v46  ;;  %v3219_v46 = vld [vmem:[#allocation7 + $0x294] ss:$8 sps:$4 sm:$0xff]  }
  0xbd   :  { %1001 = vmatprep.subr.bf16.mxu0 %v3156_v47  ;;  %v3312_v47 = vld [vmem:[#allocation8 + $0x80] ss:$8 sps:$4 sm:$0xff]  }
  0xbe   :  { %1349 = vmatpush1.bf16.msra.mxu1 %v3312_v47  ;;  %v3333_v47 = vld [vmem:[#allocation8 + $0xf0] ss:$8 sps:$4 sm:$0xff]  }
  0xc0   :  { %1002 = vmatpush1.bf16.msra.mxu0 %v3154_v48  ;;  %v3313_v48 = vld [vmem:[#allocation8 + $0x94] ss:$8 sps:$4 sm:$0xff]  }
  0xc1   :  { %1003 = vmatprep.subr.bf16.mxu0 %v3159_v49  ;;  %v3217_v49 = vld [vmem:[#allocation7 + $0x290] ss:$8 sps:$4 sm:$0xff]   ;;  %1350 = vmatprep.subr.bf16.mxu1 %v3313_v48  ;;  %v3336_v48 = vld [vmem:[#allocation10 + $0x4] ss:$8 sps:$4 sm:$0xff]  }
  0xc4   :  { %1004 = vmatpush1.bf16.msra.mxu0 %v3157_v50  ;;  %v3222_v50 = vld [vmem:[#allocation7 + $0x2a4] ss:$8 sps:$4 sm:$0xff]  }
  0xc5   :  { %1005 = vmatprep.subr.bf16.mxu0 %v3162_v51  ;;  %v3315_v51 = vld [vmem:[#allocation8 + $0x90] ss:$8 sps:$4 sm:$0xff]  }
  0xc6   :  { %1351 = vmatpush1.bf16.msra.mxu1 %v3315_v51 }
  0xc8   :  { %1006 = vmatpush1.bf16.msra.mxu0 %v3160_v52  ;;  %v3316_v52 = vld [vmem:[#allocation8 + $0xa4] ss:$8 sps:$4 sm:$0xff]  }
  0xc9   :  { %1007 = vmatprep.subr.bf16.mxu0 %v3165_v53  ;;  %v3220_v53 = vld [vmem:[#allocation7 + $0x2a0] ss:$8 sps:$4 sm:$0xff]   ;;  %1352 = vmatprep.subr.bf16.mxu1 %v3316_v52  ;;  %v258_v52 = vld [vmem:[%s3900_s3] sm:$0x3] }
  0xcc   :  { %1008 = vmatpush1.bf16.msra.mxu0 %v3163_v54  ;;  %v3225_v54 = vld [vmem:[#allocation7 + $0x2b4] ss:$8 sps:$4 sm:$0xff]  }
  0xcd   :  { %1009 = vmatprep.subr.bf16.mxu0 %v3168_v55  ;;  %v3318_v55 = vld [vmem:[#allocation8 + $0xa0] ss:$8 sps:$4 sm:$0xff]  }
  0xce   :  { %1353 = vmatpush1.bf16.msra.mxu1 %v3318_v55 }
  0xd0   :  { %1010 = vmatpush1.bf16.msra.mxu0 %v3166_v56  ;;  %v3319_v56 = vld [vmem:[#allocation8 + $0xb4] ss:$8 sps:$4 sm:$0xff]  }
  0xd1   :  { %1011 = vmatprep.subr.bf16.mxu0 %v3171_v57  ;;  %v3223_v57 = vld [vmem:[#allocation7 + $0x2b0] ss:$8 sps:$4 sm:$0xff]   ;;  %1354 = vmatprep.subr.bf16.mxu1 %v3319_v56 }
  0xd4   :  { %1012 = vmatpush1.bf16.msra.mxu0 %v3169_v58  ;;  %v3228_v58 = vld [vmem:[#allocation7 + $0x2c4] ss:$8 sps:$4 sm:$0xff]  }
  0xd5   :  { %1013 = vmatprep.subr.bf16.mxu0 %v3174_v59  ;;  %v3321_v59 = vld [vmem:[#allocation8 + $0xb0] ss:$8 sps:$4 sm:$0xff]  }
  0xd6   :  { %1355 = vmatpush1.bf16.msra.mxu1 %v3321_v59 }
  0xd8   :  { %1014 = vmatpush1.bf16.msra.mxu0 %v3172_v60  ;;  %v3322_v60 = vld [vmem:[#allocation8 + $0xc4] ss:$8 sps:$4 sm:$0xff]  }
  0xd9   :  { %1015 = vmatprep.subr.bf16.mxu0 %v3177_v61  ;;  %v3226_v61 = vld [vmem:[#allocation7 + $0x2c0] ss:$8 sps:$4 sm:$0xff]   ;;  %1356 = vmatprep.subr.bf16.mxu1 %v3322_v60 }
  0xdc   :  { %1016 = vmatpush1.bf16.msra.mxu0 %v3175_v62  ;;  %v3231_v62 = vld [vmem:[#allocation7 + $0x2d4] ss:$8 sps:$4 sm:$0xff]  }
  0xdd   :  { %1017 = vmatprep.subr.bf16.mxu0 %v3180_v63  ;;  %v3324_v63 = vld [vmem:[#allocation8 + $0xc0] ss:$8 sps:$4 sm:$0xff]  }
  0xde   :  { %1357 = vmatpush1.bf16.msra.mxu1 %v3324_v63 }
  0xe0   :  { %1018 = vmatpush1.bf16.msra.mxu0 %v3178_v0  ;;  %v3325_v0 = vld [vmem:[#allocation8 + $0xd4] ss:$8 sps:$4 sm:$0xff]  }
  0xe1   :  { %1019 = vmatprep.subr.bf16.mxu0 %v3183_v1  ;;  %v3229_v1 = vld [vmem:[#allocation7 + $0x2d0] ss:$8 sps:$4 sm:$0xff]   ;;  %1358 = vmatprep.subr.bf16.mxu1 %v3325_v0 }
  0xe2   :  { %1359 = vmatpush1.bf16.msra.mxu1 %v3327_v43  ;;  %v1584_v43 = vld [vmem:[#allocation11 + $0x138] sm:$0xff] }
  0xe3   :  { %1360 = vmatprep.subr.bf16.mxu1 %v3328_v44 }
  0xe4   :  { %1020 = vmatpush1.bf16.msra.mxu0 %v3181_v2  ;;  %v3234_v2 = vld [vmem:[#allocation7 + $0x2e4] ss:$8 sps:$4 sm:$0xff]  }
  0xe5   :  { %1021 = vmatprep.subr.bf16.mxu0 %v3186_v3  ;;  %v3232_v3 = vld [vmem:[#allocation7 + $0x2e0] ss:$8 sps:$4 sm:$0xff]  }
  0xe8   :  { %1022 = vmatpush1.bf16.msra.mxu0 %v3184_v4  ;;  %v3237_v4 = vld [vmem:[#allocation7 + $0x2f4] ss:$8 sps:$4 sm:$0xff]  }
  0xe9   :  { %1023 = vmatprep.subr.bf16.mxu0 %v3189_v5  ;;  %v3235_v5 = vld [vmem:[#allocation7 + $0x2f0] ss:$8 sps:$4 sm:$0xff]  }
  0xec   :  { %1024 = vmatpush1.bf16.msra.mxu0 %v3187_v6  ;;  %v3240_v6 = vld [vmem:[#allocation7 + $0x304] ss:$8 sps:$4 sm:$0xff]  }
  0xed   :  { %1036 = vmatprep.subr.bf16.mxu0 %v3192_v7  ;;  %v3793_v7 = vld [vmem:[#allocation2 + $0x18] sm:$0xff] }
  0xef   :  { %1026 = vmatmul.mubr.bf16.vlgmr.msra.gmra.mrb[0].mxu0 %v2721_v10  ;;  %v3795_v10 = vld [vmem:[#allocation2 + $0x38] sm:$0xff] }
  0xf0   :  { %1037 = vmatpush1.bf16.msra.mxu0 %v3190_v11  ;;  %1068 = vmatprep.mubr.bf16.mxu0 %v2724_v12  ;;  %v2723_v11 = vcombine.low %v3785_v8, %v3787_v9  ;;  %v3238_v12 = vld [vmem:[#allocation7 + $0x300] ss:$8 sps:$4 sm:$0xff]   ;;  %v3252_v8 = vld [vmem:[#allocation7 + $0x344] ss:$8 sps:$4 sm:$0xff]  }
  0xf1   :  { %1038 = vmatprep.subr.bf16.mxu0 %v3195_v13  ;;  %v2726_v13 = vcombine.high %v3793_v7, %v3795_v10  ;;  %v3250_v9 = vld [vmem:[#allocation7 + $0x340] ss:$8 sps:$4 sm:$0xff]  }
  0xf4   :  { %1039 = vmatpush1.bf16.msra.mxu0 %v3193_v17  ;;  %v3244_v17 = vld [vmem:[#allocation7 + $0x320] ss:$8 sps:$4 sm:$0xff]  }
  0xf5   :  { %1040 = vmatprep.subr.bf16.mxu0 %v3198_v18  ;;  %v3249_v18 = vld [vmem:[#allocation7 + $0x334] ss:$8 sps:$4 sm:$0xff]  }
  0xf8   :  { %1041 = vmatpush1.bf16.msra.mxu0 %v3196_v21  ;;  %v3253_v21 = vld [vmem:[#allocation7 + $0x350] ss:$8 sps:$4 sm:$0xff]  }
  0xf9   :  { %1042 = vmatprep.subr.bf16.mxu0 %v3201_v22  ;;  %v3258_v22 = vld [vmem:[#allocation7 + $0x364] ss:$8 sps:$4 sm:$0xff]  }
  0xfc   :  { %1043 = vmatpush1.bf16.msra.mxu0 %v3199_v25  ;;  %v3259_v25 = vld [vmem:[#allocation7 + $0x370] ss:$8 sps:$4 sm:$0xff]  }
  0xfd   :  { %1044 = vmatprep.subr.bf16.mxu0 %v3204_v26  ;;  %v3264_v26 = vld [vmem:[#allocation7 + $0x384] ss:$8 sps:$4 sm:$0xff]  }
 0x100   :  { %1045 = vmatpush1.bf16.msra.mxu0 %v3202_v29  ;;  %v3265_v29 = vld [vmem:[#allocation7 + $0x390] ss:$8 sps:$4 sm:$0xff]  }
 0x101   :  { %1046 = vmatprep.subr.bf16.mxu0 %v3207_v30  ;;  %v3270_v30 = vld [vmem:[#allocation7 + $0x3a4] ss:$8 sps:$4 sm:$0xff]  }
 0x104   :  { %1047 = vmatpush1.bf16.msra.mxu0 %v3205_v33  ;;  %v3271_v33 = vld [vmem:[#allocation7 + $0x3b0] ss:$8 sps:$4 sm:$0xff]  }
 0x105   :  { %1048 = vmatprep.subr.bf16.mxu0 %v3210_v34  ;;  %v3276_v34 = vld [vmem:[#allocation7 + $0x3c4] ss:$8 sps:$4 sm:$0xff]  }
 0x108   :  { %1049 = vmatpush1.bf16.msra.mxu0 %v3208_v37  ;;  %v3277_v37 = vld [vmem:[#allocation7 + $0x3d0] ss:$8 sps:$4 sm:$0xff]  }
 0x109   :  { %1050 = vmatprep.subr.bf16.mxu0 %v3213_v38  ;;  %v3282_v38 = vld [vmem:[#allocation7 + $0x3e4] ss:$8 sps:$4 sm:$0xff]  }
 0x10c   :  { %1051 = vmatpush1.bf16.msra.mxu0 %v3211_v41  ;;  %v3283_v41 = vld [vmem:[#allocation7 + $0x3f0] ss:$8 sps:$4 sm:$0xff]  }
 0x10d   :  { %1052 = vmatprep.subr.bf16.mxu0 %v3216_v42  ;;  %v2725_v42 = vcombine.low %v3793_v7, %v3795_v10  ;;  %v3339_v7 = vld [vmem:[#allocation10 + $0x14] ss:$8 sps:$4 sm:$0xff]   ;;  %v3337_v10 = vld [vmem:[#allocation10 + $0x10] ss:$8 sps:$4 sm:$0xff]  }
 0x110   :  { %1053 = vmatpush1.bf16.msra.mxu0 %v3214_v45  ;;  %v3330_v45 = vld [vmem:[#allocation8 + $0xe0] ss:$8 sps:$4 sm:$0xff]  }
 0x111   :  { %1054 = vmatprep.subr.bf16.mxu0 %v3219_v46  ;;  %1361 = vmatpush1.bf16.msra.mxu1 %v3330_v45  ;;  %v3331_v46 = vld [vmem:[#allocation8 + $0xf4] ss:$8 sps:$4 sm:$0xff]  }
 0x112   :  { %1362 = vmatprep.subr.bf16.mxu1 %v3331_v46  ;;  %v1588_v46 = vld [vmem:[#allocation11 + $0x158] sm:$0xff] }
 0x114   :  { %1055 = vmatpush1.bf16.msra.mxu0 %v3217_v49  ;;  %v260_v49 = vlaneseq }
 0x115   :  { %1056 = vmatprep.subr.bf16.mxu0 %v3222_v50  ;;  %1363 = vmatpush1.bf16.msra.mxu1 %v3333_v47  ;;  %v1592_v47 = vld [vmem:[#allocation11 + $0x178] sm:$0xff] }
 0x116   :  { %1496 = vmatprep.subr.bf16.mxu1 %v3336_v48  ;;  %v3803_v50 = vshrl.u32 %v260_v49, 7  ;;  %v2949_v48 = vcombine.low %v1588_v46, %v1592_v47  ;;  %v2950_v49 = vcombine.high %v1588_v46, %v1592_v47  ;;  %v1553_v46 = vld [vmem:[#allocation11 + $0x40] sm:$0xff] }
 0x117   :  { %v1557_v47 = vld [vmem:[#allocation11 + $0x60] sm:$0xff] }
 0x118   :  { %1057 = vmatpush1.bf16.msra.mxu0 %v3220_v53  ;;  %v3806_v51 = vsub.s32 0, %v3803_v50  ;;  %v3812_v53 = vsub.s32 1, %v3803_v50 }
 0x119   :  { %1058 = vmatprep.subr.bf16.mxu0 %v3225_v54 }
 0x11a   :  { %v263_v54 = vrot.slane %v258_v52, %v3806_v51  ;;  %v267_v55 = vrot.slane %v258_v52, %v3812_v53  ;;  %v1596_v52 = vld [vmem:[#allocation11 + $0x198] sm:$0xff] }
 0x11c   :  { %1059 = vmatpush1.bf16.msra.mxu0 %v3223_v57 }
 0x11d   :  { %1060 = vmatprep.subr.bf16.mxu0 %v3228_v58 }
 0x120   :  { %1061 = vmatpush1.bf16.msra.mxu0 %v3226_v61 }
 0x121   :  { %1062 = vmatprep.subr.bf16.mxu0 %v3231_v62 }
 0x124   :  { %1063 = vmatpush1.bf16.msra.mxu0 %v3229_v1 }
 0x125   :  { %1064 = vmatprep.subr.bf16.mxu0 %v3234_v2 }
 0x128   :  { %1065 = vmatpush1.bf16.msra.mxu0 %v3232_v3 }
 0x129   :  { %1066 = vmatprep.subr.bf16.mxu0 %v3237_v4 }
 0x12c   :  { %1067 = vmatpush1.bf16.msra.mxu0 %v3235_v5 }
 0x12d   :  { %1079 = vmatprep.subr.bf16.mxu0 %v3240_v6  ;;  %v3334_v6 = vld [vmem:[#allocation10] ss:$8 sps:$4 sm:$0xff]  }
 0x12f   :  { %1069 = vmatmul.mubr.bf16.vlgmr.msra.gmra.mrb[0].mxu0 %v2723_v11  ;;  %v3342_v11 = vld [vmem:[#allocation10 + $0x24] ss:$8 sps:$4 sm:$0xff]  }
 0x130   :  { %1080 = vmatpush1.bf16.msra.mxu0 %v3238_v12  ;;  %1111 = vmatprep.mubr.bf16.mxu0 %v2726_v13  ;;  %v3340_v12 = vld [vmem:[#allocation10 + $0x20] ss:$8 sps:$4 sm:$0xff]   ;;  %v3345_v13 = vld [vmem:[#allocation10 + $0x34] ss:$8 sps:$4 sm:$0xff]  }
 0x131   :  { %1081 = vmatprep.subr.bf16.mxu0 %v3243_v14  ;;  %v3343_v14 = vld [vmem:[#allocation10 + $0x30] ss:$8 sps:$4 sm:$0xff]  }
 0x134   :  { %1082 = vmatpush1.bf16.msra.mxu0 %v3241_v15  ;;  %v3348_v15 = vld [vmem:[#allocation10 + $0x44] ss:$8 sps:$4 sm:$0xff]  }
 0x135   :  { %1083 = vmatprep.subr.bf16.mxu0 %v3246_v16  ;;  %v3346_v16 = vld [vmem:[#allocation10 + $0x40] ss:$8 sps:$4 sm:$0xff]  }
 0x138   :  { %1084 = vmatpush1.bf16.msra.mxu0 %v3244_v17  ;;  %v3351_v17 = vld [vmem:[#allocation10 + $0x54] ss:$8 sps:$4 sm:$0xff]  }
 0x139   :  { %1085 = vmatprep.subr.bf16.mxu0 %v3249_v18  ;;  %v3349_v18 = vld [vmem:[#allocation10 + $0x50] ss:$8 sps:$4 sm:$0xff]  }
 0x13c   :  { %1086 = vmatpush1.bf16.msra.mxu0 %v3247_v19  ;;  %v3354_v19 = vld [vmem:[#allocation10 + $0x64] ss:$8 sps:$4 sm:$0xff]  }
 0x13d   :  { %1087 = vmatprep.subr.bf16.mxu0 %v3252_v8  ;;  %v3624_v8 = vmov 0  }
 0x140   :  { %1088 = vmatpush1.bf16.msra.mxu0 %v3250_v9  ;;  %v3352_v9 = vld [vmem:[#allocation10 + $0x60] ss:$8 sps:$4 sm:$0xff]  }
 0x141   :  { %1089 = vmatprep.subr.bf16.mxu0 %v3255_v20  ;;  %v3357_v20 = vld [vmem:[#allocation10 + $0x74] ss:$8 sps:$4 sm:$0xff]  }
 0x144   :  { %1090 = vmatpush1.bf16.msra.mxu0 %v3253_v21  ;;  %v3355_v21 = vld [vmem:[#allocation10 + $0x70] ss:$8 sps:$4 sm:$0xff]  }
 0x145   :  { %1091 = vmatprep.subr.bf16.mxu0 %v3258_v22  ;;  %v3816_v22 = vld [vmem:[#allocation11] sm:$0xff] }
 0x148   :  { %1092 = vmatpush1.bf16.msra.mxu0 %v3256_v23  ;;  %v3818_v23 = vld [vmem:[#allocation11 + $0x20] sm:$0xff] }
 0x149   :  { %1093 = vmatprep.subr.bf16.mxu0 %v3261_v24  ;;  %v2903_v24 = vcombine.low %v3816_v22, %v3818_v23 }
 0x14c   :  { %1094 = vmatpush1.bf16.msra.mxu0 %v3259_v25  ;;  %v2904_v25 = vcombine.high %v3816_v22, %v3818_v23 }
 0x14d   :  { %1095 = vmatprep.subr.bf16.mxu0 %v3264_v26  ;;  %v1548_v26 = vld [vmem:[#allocation11 + $0x18] sm:$0xff] }
 0x150   :  { %1096 = vmatpush1.bf16.msra.mxu0 %v3262_v27  ;;  %v1552_v27 = vld [vmem:[#allocation11 + $0x38] sm:$0xff] }
 0x151   :  { %1097 = vmatprep.subr.bf16.mxu0 %v3267_v28  ;;  %v2909_v28 = vcombine.low %v1548_v26, %v1552_v27 }
 0x154   :  { %1098 = vmatpush1.bf16.msra.mxu0 %v3265_v29  ;;  %v2910_v29 = vcombine.high %v1548_v26, %v1552_v27 }
 0x155   :  { %1099 = vmatprep.subr.bf16.mxu0 %v3270_v30  ;;  %v1556_v30 = vld [vmem:[#allocation11 + $0x58] sm:$0xff] }
 0x158   :  { %1100 = vmatpush1.bf16.msra.mxu0 %v3268_v31  ;;  %v1560_v31 = vld [vmem:[#allocation11 + $0x78] sm:$0xff] }
 0x159   :  { %1101 = vmatprep.subr.bf16.mxu0 %v3273_v32  ;;  %v2917_v32 = vcombine.low %v1556_v30, %v1560_v31 }
 0x15c   :  { %1102 = vmatpush1.bf16.msra.mxu0 %v3271_v33  ;;  %v2918_v33 = vcombine.high %v1556_v30, %v1560_v31 }
 0x15d   :  { %1103 = vmatprep.subr.bf16.mxu0 %v3276_v34  ;;  %v1564_v34 = vld [vmem:[#allocation11 + $0x98] sm:$0xff] }
 0x160   :  { %1104 = vmatpush1.bf16.msra.mxu0 %v3274_v35  ;;  %v1568_v35 = vld [vmem:[#allocation11 + $0xb8] sm:$0xff] }
 0x161   :  { %1105 = vmatprep.subr.bf16.mxu0 %v3279_v36  ;;  %v2925_v36 = vcombine.low %v1564_v34, %v1568_v35 }
 0x164   :  { %1106 = vmatpush1.bf16.msra.mxu0 %v3277_v37  ;;  %v2926_v37 = vcombine.high %v1564_v34, %v1568_v35 }
 0x165   :  { %1107 = vmatprep.subr.bf16.mxu0 %v3282_v38  ;;  %v1572_v38 = vld [vmem:[#allocation11 + $0xd8] sm:$0xff] }
 0x168   :  { %1108 = vmatpush1.bf16.msra.mxu0 %v3280_v39  ;;  %v1576_v39 = vld [vmem:[#allocation11 + $0xf8] sm:$0xff] }
 0x169   :  { %1109 = vmatprep.subr.bf16.mxu0 %v3285_v40  ;;  %v2933_v40 = vcombine.low %v1572_v38, %v1576_v39 }
 0x16c   :  { %1110 = vmatpush1.bf16.msra.mxu0 %v3283_v41  ;;  %v2934_v41 = vcombine.high %v1572_v38, %v1576_v39  ;;  %v1381_v39 = vld [vmem:[#allocation5] sm:$0xff] }
 0x16d   :  { %2484 = vmatprep.subr.bf16.mxu0 %v2910_v29 }
 0x16f   :  { %1112 = vmatmul.mubr.bf16.vlgmr.msra.gmra.mrb[0].mxu0 %v2725_v42  ;;  %v1580_v42 = vld [vmem:[#allocation11 + $0x118] sm:$0xff] }
 0x170   :  { %2485 = vmatpush1.bf16.msra.mxu0 %v2909_v28  ;;  %v2941_v44 = vcombine.low %v1580_v42, %v1584_v43  ;;  %v2942_v45 = vcombine.high %v1580_v42, %v1584_v43 }
 0x171   :  { %2486 = vmatprep.subr.bf16.mxu0 %v2918_v33 }
 0x174   :  { %2487 = vmatpush1.bf16.msra.mxu0 %v2917_v32 }
 0x175   :  { %2488 = vmatprep.subr.bf16.mxu0 %v2926_v37 }
 0x178   :  { %2489 = vmatpush1.bf16.msra.mxu0 %v2925_v36 }
 0x179   :  { %2490 = vmatprep.subr.bf16.mxu0 %v2934_v41  ;;  %v1382_v41 = vld [vmem:[#allocation5 + $0x8] sm:$0xff] }
 0x17c   :  { %2491 = vmatpush1.bf16.msra.mxu0 %v2933_v40 }
 0x17d   :  { %2492 = vmatprep.subr.bf16.mxu0 %v2942_v45 }
 0x180   :  { %2493 = vmatpush1.bf16.msra.mxu0 %v2941_v44 }
 0x181   :  { %2494 = vmatprep.subr.bf16.mxu0 %v2950_v49 }
 0x184   :  { %2495 = vmatpush1.bf16.msra.mxu0 %v2949_v48 }
 0x242   :  { %v1113_v56 = vpop.f32.mrb[0].mxu0 }
 0x243   :  { %v3063_v57 = vadd.f32 %v1113_v56, %v263_v54  ;;  %v1115_v58 = vpop.f32.mrb[1].mxu0 }
 0x244   :  { %v3064_v59 = vadd.f32 %v1115_v58, %v267_v55  ;;  %v1117_v60 = vpop.f32.mrb[2].mxu0  ;;  %v1608_v58 = vld [vmem:[#allocation11 + $0x1f8] sm:$0xff] }
 0x245   :  { %v3065_v61 = vadd.f32 %v1117_v60, %v263_v54  ;;  %v1119_v62 = vpop.f32.mrb[3].mxu0  ;;  %v1122_v0 = vmax.f32 %v3063_v57, 0.0  ;;  %v1600_v54 = vld [vmem:[#allocation11 + $0x1b8] sm:$0xff] }
 0x246   :  { %v3066_v63 = vadd.f32 %v1119_v62, %v267_v55  ;;  %v1123_v2 = vmax.f32 %v3064_v59, 0.0  ;;  %v2957_v55 = vcombine.low %v1596_v52, %v1600_v54  ;;  %v2958_v56 = vcombine.high %v1596_v52, %v1600_v54  ;;  %v1604_v57 = vld [vmem:[#allocation11 + $0x1d8] sm:$0xff]  ;;  %v1561_v54 = vld [vmem:[#allocation11 + $0x80] sm:$0xff] }
 0x247   :  { %v1124_v1 = vmax.f32 %v3065_v61, 0.0  ;;  %v2965_v59 = vcombine.low %v1604_v57, %v1608_v58  ;;  %v2966_v60 = vcombine.high %v1604_v57, %v1608_v58  ;;  %v1612_v61 = vld [vmem:[#allocation11 + $0x218] sm:$0xff]  ;;  %v2912_v52 = vcombine.high %v1553_v46, %v1557_v47  ;;  %v1569_v58 = vld [vmem:[#allocation11 + $0xc0] sm:$0xff] }
 0x248   :  { %v1125_v3 = vmax.f32 %v3066_v63, 0.0  ;;  %2496 = vmatprep.subr.bf16.mxu0 %v2958_v56  ;;  %v1616_v62 = vld [vmem:[#allocation11 + $0x238] sm:$0xff]  ;;  %v2911_v56 = vcombine.low %v1553_v46, %v1557_v47  ;;  %v1665_v47 = vld [vmem:[#allocation11 + $0x3c0] sm:$0xff] }
 0x249   :  { %v1126_v4 = vpack.c.bf16 %v1124_v1, %v1122_v0  ;;  %2497 = vmatpush1.bf16.msra.mxu0 %v2957_v55  ;;  %v2973_v63 = vcombine.low %v1612_v61, %v1616_v62  ;;  %v2974_v0 = vcombine.high %v1612_v61, %v1616_v62  ;;  %v1620_v1 = vld [vmem:[#allocation11 + $0x258] sm:$0xff]  ;;  %v1565_v55 = vld [vmem:[#allocation11 + $0xa0] sm:$0xff] }
 0x24a   :  { %v1127_v5 = vpack.c.bf16 %v1125_v3, %v1123_v2  ;;  %2498 = vmatprep.subr.bf16.mxu0 %v2966_v60  ;;  %v1624_v2 = vld [vmem:[#allocation11 + $0x278] sm:$0xff]  ;;  %v2920_v57 = vcombine.high %v1561_v54, %v1565_v55  ;;  %v2919_v60 = vcombine.low %v1561_v54, %v1565_v55  ;;  %v1577_v62 = vld [vmem:[#allocation11 + $0x100] sm:$0xff] }
 0x24b   :  { %v2981_v3 = vcombine.low %v1620_v1, %v1624_v2  ;;  %v1672_v54 = vld [vmem:[#allocation11 + $0x3f8] sm:$0xff] }
 0x24c   :  { %1364 = vmatprep.mubr.bf16.mxu1 %v1127_v5  ;;  %v1628_v5 = vld [vmem:[#allocation11 + $0x298] sm:$0xff] }
 0x24d   :  { %1365 = vmatmul.mubr.bf16.vlgmr.msra.gmra.mrb[0].mxu1 %v1126_v4  ;;  %2499 = vmatpush1.bf16.msra.mxu0 %v2965_v59  ;;  %v2982_v4 = vcombine.high %v1620_v1, %v1624_v2  ;;  %v1573_v59 = vld [vmem:[#allocation11 + $0xe0] sm:$0xff] }
 0x24e   :  { %1497 = vmatpush1.bf16.msra.mxu1 %v3334_v6  ;;  %1528 = vmatprep.mubr.bf16.mxu1 %v3624_v8  ;;  %v1632_v6 = vld [vmem:[#allocation11 + $0x2b8] sm:$0xff]  ;;  %v2928_v61 = vcombine.high %v1569_v58, %v1573_v59  ;;  %v1585_v2 = vld [vmem:[#allocation11 + $0x140] sm:$0xff] }
 0x24f   :  { %1498 = vmatprep.subr.bf16.mxu1 %v3339_v7  ;;  %2500 = vmatprep.subr.bf16.mxu0 %v2974_v0  ;;  %v2989_v7 = vcombine.low %v1628_v5, %v1632_v6  ;;  %v1656_v8 = vld [vmem:[#allocation11 + $0x378] sm:$0xff]  ;;  %v2927_v0 = vcombine.low %v1569_v58, %v1573_v59  ;;  %v1546_v58 = vld [vmem:[#allocation11 + $0x8] sm:$0xff] }
 0x250   :  { %v1550_v59 = vld [vmem:[#allocation11 + $0x28] sm:$0xff] }
 0x251   :  { %2501 = vmatpush1.bf16.msra.mxu0 %v2973_v63  ;;  %v1581_v63 = vld [vmem:[#allocation11 + $0x120] sm:$0xff] }
 0x252   :  { %1499 = vmatpush1.bf16.msra.mxu1 %v3337_v10  ;;  %2502 = vmatprep.subr.bf16.mxu0 %v2982_v4  ;;  %v2990_v10 = vcombine.high %v1628_v5, %v1632_v6  ;;  %v2936_v1 = vcombine.high %v1577_v62, %v1581_v63  ;;  %v2935_v22 = vcombine.low %v1577_v62, %v1581_v63  ;;  %v1597_v4 = vld [vmem:[#allocation11 + $0x1a0] sm:$0xff]  ;;  %v1404_v62 = vld [vmem:[%s3904_s7] sm:$0x3] }
 0x253   :  { %1500 = vmatprep.subr.bf16.mxu1 %v3342_v11  ;;  %v1636_v11 = vld [vmem:[#allocation11 + $0x2d8] sm:$0xff]  ;;  %v1409_v63 = vrot.slane %v1404_v62, %v3806_v51 }
 0x255   :  { %2503 = vmatpush1.bf16.msra.mxu0 %v2981_v3  ;;  %v1589_v3 = vld [vmem:[#allocation11 + $0x160] sm:$0xff] }
 0x256   :  { %1501 = vmatpush1.bf16.msra.mxu1 %v3340_v12  ;;  %2504 = vmatprep.subr.bf16.mxu0 %v2990_v10  ;;  %v1640_v12 = vld [vmem:[#allocation11 + $0x2f8] sm:$0xff]  ;;  %v2944_v23 = vcombine.high %v1585_v2, %v1589_v3  ;;  %v2943_v5 = vcombine.low %v1585_v2, %v1589_v3  ;;  %v1605_v10 = vld [vmem:[#allocation11 + $0x1e0] sm:$0xff] }
 0x257   :  { %1502 = vmatprep.subr.bf16.mxu1 %v3345_v13  ;;  %v2997_v13 = vcombine.low %v1636_v11, %v1640_v12 }
 0x259   :  { %2505 = vmatpush1.bf16.msra.mxu0 %v2989_v7  ;;  %v1601_v7 = vld [vmem:[#allocation11 + $0x1c0] sm:$0xff] }
 0x25a   :  { %1503 = vmatpush1.bf16.msra.mxu1 %v3343_v14  ;;  %v2998_v14 = vcombine.high %v1636_v11, %v1640_v12  ;;  %v2960_v12 = vcombine.high %v1601_v7, %v1605_v10 }
 0x25b   :  { %1504 = vmatprep.subr.bf16.mxu1 %v3348_v15  ;;  %v1644_v15 = vld [vmem:[#allocation11 + $0x318] sm:$0xff] }
 0x25c   :  { %2506 = vmatprep.subr.bf16.mxu0 %v2998_v14  ;;  %v1613_v14 = vld [vmem:[#allocation11 + $0x220] sm:$0xff] }
 0x25d   :  { %2507 = vmatpush1.bf16.msra.mxu0 %v2997_v13  ;;  %v1609_v13 = vld [vmem:[#allocation11 + $0x200] sm:$0xff] }
 0x25e   :  { %1505 = vmatpush1.bf16.msra.mxu1 %v3346_v16  ;;  %v1648_v16 = vld [vmem:[#allocation11 + $0x338] sm:$0xff] }
 0x25f   :  { %1506 = vmatprep.subr.bf16.mxu1 %v3351_v17  ;;  %v3005_v17 = vcombine.low %v1644_v15, %v1648_v16 }
 0x262   :  { %1507 = vmatpush1.bf16.msra.mxu1 %v3349_v18  ;;  %v3006_v18 = vcombine.high %v1644_v15, %v1648_v16  ;;  %v2959_v15 = vcombine.low %v1601_v7, %v1605_v10  ;;  %v2968_v16 = vcombine.high %v1609_v13, %v1613_v14 }
 0x263   :  { %1508 = vmatprep.subr.bf16.mxu1 %v3354_v19  ;;  %v1652_v19 = vld [vmem:[#allocation11 + $0x358] sm:$0xff] }
 0x264   :  { %2508 = vmatprep.subr.bf16.mxu0 %v3006_v18  ;;  %v1621_v18 = vld [vmem:[#allocation11 + $0x260] sm:$0xff] }
 0x265   :  { %2509 = vmatpush1.bf16.msra.mxu0 %v3005_v17  ;;  %v1617_v17 = vld [vmem:[#allocation11 + $0x240] sm:$0xff] }
 0x266   :  { %1509 = vmatpush1.bf16.msra.mxu1 %v3352_v9  ;;  %v3013_v9 = vcombine.low %v1652_v19, %v1656_v8 }
 0x267   :  { %1510 = vmatprep.subr.bf16.mxu1 %v3357_v20  ;;  %v3014_v20 = vcombine.high %v1652_v19, %v1656_v8  ;;  %v2967_v19 = vcombine.low %v1609_v13, %v1613_v14  ;;  %v2976_v8 = vcombine.high %v1617_v17, %v1621_v18  ;;  %v1558_v13 = vld [vmem:[#allocation11 + $0x68] sm:$0xff] }
 0x269   :  { %2510 = vmatprep.subr.bf16.mxu0 %v3014_v20  ;;  %v1629_v20 = vld [vmem:[#allocation11 + $0x2a0] sm:$0xff] }
 0x26a   :  { %1511 = vmatpush1.bf16.msra.mxu1 %v3355_v21  ;;  %2511 = vmatpush1.bf16.msra.mxu0 %v3013_v9  ;;  %v1160_v21 = vld [vmem:[%s3902_s5] sm:$0x3]  ;;  %v1625_v9 = vld [vmem:[#allocation11 + $0x280] sm:$0xff] }
 0x26b   :  { %2355 = vmatprep.subr.bf16.mxu1 %v2904_v25  ;;  %v1165_v25 = vrot.slane %v1160_v21, %v3806_v51  ;;  %v1169_v26 = vrot.slane %v1160_v21, %v3812_v53  ;;  %v2975_v21 = vcombine.low %v1617_v17, %v1621_v18  ;;  %v1562_v17 = vld [vmem:[#allocation11 + $0x88] sm:$0xff] }
 0x26c   :  { %v1566_v18 = vld [vmem:[#allocation11 + $0xa8] sm:$0xff] }
 0x320   :  { %v1366_v27 = vpop.f32.mrb[0].mxu1 }
 0x321   :  { %v1367_v28 = vadd.f32 %v1366_v27, %v1165_v25  ;;  %v1368_v29 = vpop.f32.mrb[1].mxu1  ;;  %v1637_v27 = vld [vmem:[#allocation11 + $0x2e0] sm:$0xff] }
 0x322   :  { %v1369_v30 = vadd.f32 %v1368_v29, %v1169_v26  ;;  %v1370_v31 = vpop.f32.mrb[2].mxu1 }
 0x323   :  { %2679 = vst [vmem:[#allocation14] sm:$0xff] %v1367_v28  ;;  %v1371_v32 = vadd.f32 %v1370_v31, %v1165_v25  ;;  %v1372_v33 = vpop.f32.mrb[3].mxu1  ;;  %v2984_v25 = vcombine.high %v1625_v9, %v1629_v20  ;;  %v1645_v31 = vld [vmem:[#allocation11 + $0x320] sm:$0xff] }
 0x324   :  { %v1375_v34 = vmul.f32 0.5, %v1369_v30  ;;  %2680 = vst [vmem:[#allocation14 + $0x8] sm:$0xff] %v1369_v30  ;;  %v1373_v35 = vadd.f32 %v1372_v33, %v1169_v26  ;;  %v1633_v26 = vld [vmem:[#allocation11 + $0x2c0] sm:$0xff] }
 0x325   :  { %2681 = vst [vmem:[#allocation14 + $0x10] sm:$0xff] %v1371_v32  ;;  %v2992_v29 = vcombine.high %v1633_v26, %v1637_v27  ;;  %v1641_v30 = vld [vmem:[#allocation11 + $0x300] sm:$0xff] }
 0x326   :  { %v1377_v36 = vmul.f32 1.442695, %v1375_v34  ;;  %v1376_v37 = vmul.f32 0.5, %v1373_v35  ;;  %2682 = vst [vmem:[#allocation14 + $0x18] sm:$0xff] %v1373_v35  ;;  %v3000_v33 = vcombine.high %v1641_v30, %v1645_v31  ;;  %v1649_v34 = vld [vmem:[#allocation11 + $0x340] sm:$0xff] }
 0x327   :  { %v1653_v35 = vld [vmem:[#allocation11 + $0x360] sm:$0xff] }
 0x328   :  { %3358 = vpow2.f32 %v1377_v36  ;;  %v1379_v38 = vmul.f32 1.442695, %v1376_v37  ;;  %v2999_v36 = vcombine.low %v1641_v30, %v1645_v31  ;;  %v3008_v37 = vcombine.high %v1649_v34, %v1653_v35  ;;  %v1586_v30 = vld [vmem:[#allocation11 + $0x148] sm:$0xff] }
 0x329   :  { %v1590_v31 = vld [vmem:[#allocation11 + $0x168] sm:$0xff] }
 0x32a   :  { %3360 = vpow2.f32 %v1379_v38  ;;  %v3007_v38 = vcombine.low %v1649_v34, %v1653_v35  ;;  %v1594_v34 = vld [vmem:[#allocation11 + $0x188] sm:$0xff] }
 0x32b   :  { %v1598_v35 = vld [vmem:[#allocation11 + $0x1a8] sm:$0xff] }
 0x332   :  { %v3359_v40 = vpop.eup %3358 }
 0x333   :  { %v1383_v42 = vmul.f32 %v3359_v40, %v1381_v39  ;;  %v1657_v39 = vld [vmem:[#allocation11 + $0x380] sm:$0xff] }
 0x334   :  { %v3361_v43 = vpop.eup %3360  ;;  %v1661_v40 = vld [vmem:[#allocation11 + $0x3a0] sm:$0xff] }
 0x335   :  { %v1384_v44 = vmul.f32 %v3361_v43, %v1382_v41  ;;  %v1385_v45 = vadd.f32 %v1383_v42, %v1367_v28  ;;  %v2983_v28 = vcombine.low %v1625_v9, %v1629_v20  ;;  %v3016_v41 = vcombine.high %v1657_v39, %v1661_v40  ;;  %v1660_v42 = vld [vmem:[#allocation11 + $0x398] sm:$0xff]  ;;  %v1570_v9 = vld [vmem:[#allocation11 + $0xc8] sm:$0xff] }
 0x336   :  { %v1664_v43 = vld [vmem:[#allocation11 + $0x3b8] sm:$0xff]  ;;  %v1574_v20 = vld [vmem:[#allocation11 + $0xe8] sm:$0xff] }
 0x337   :  { %v1386_v48 = vadd.f32 %v1384_v44, %v1371_v32  ;;  %v2991_v32 = vcombine.low %v1633_v26, %v1637_v27  ;;  %v3015_v44 = vcombine.low %v1657_v39, %v1661_v40  ;;  %v3021_v46 = vcombine.low %v1660_v42, %v1664_v43  ;;  %v1578_v26 = vld [vmem:[#allocation11 + $0x108] sm:$0xff] }
 0x338   :  { %v1582_v27 = vld [vmem:[#allocation11 + $0x128] sm:$0xff]  ;;  %v2953_v40 = vcombine.low %v1594_v34, %v1598_v35 }
 0x339   :  { %v1387_v49 = vpack.c.bf16 %v1386_v48, %v1385_v45  ;;  %v3022_v45 = vcombine.high %v1660_v42, %v1664_v43  ;;  %v1669_v48 = vld [vmem:[#allocation11 + $0x3e0] sm:$0xff]  ;;  %v1606_v39 = vld [vmem:[#allocation11 + $0x1e8] sm:$0xff] }
 0x33a   :  { %v3023_v55 = vcombine.low %v1665_v47, %v1669_v48  ;;  %v1610_v42 = vld [vmem:[#allocation11 + $0x208] sm:$0xff] }
 0x33b   :  { %1529 = vmatmul.mubr.bf16.vlgmr.msra.gmra.mrb[4].mxu1 %v1387_v49  ;;  %2512 = vmatprep.subr.bf16.mxu0 %v3022_v45  ;;  %v3024_v49 = vcombine.high %v1665_v47, %v1669_v48  ;;  %v1614_v43 = vld [vmem:[#allocation11 + $0x228] sm:$0xff] }
 0x33c   :  { %2356 = vmatpush1.bf16.msra.mxu1 %v2903_v24  ;;  %v1593_v24 = vld [vmem:[#allocation11 + $0x180] sm:$0xff]  ;;  %2513 = vmatpush1.bf16.msra.mxu0 %v3021_v46  ;;  %v2970_v45 = vcombine.high %v1610_v42, %v1614_v43  ;;  %v1618_v46 = vld [vmem:[#allocation11 + $0x248] sm:$0xff]  ;;  %v2969_v48 = vcombine.low %v1610_v42, %v1614_v43  ;;  %v1603_v42 = vld [vmem:[#allocation11 + $0x1d0] sm:$0xff] }
 0x33d   :  { %2357 = vmatprep.subr.bf16.mxu1 %v2912_v52  ;;  %v2952_v6 = vcombine.high %v1593_v24, %v1597_v4  ;;  %v2951_v11 = vcombine.low %v1593_v24, %v1597_v4  ;;  %v1668_v52 = vld [vmem:[#allocation11 + $0x3d8] sm:$0xff]  ;;  %v1622_v47 = vld [vmem:[#allocation11 + $0x268] sm:$0xff]  ;;  %v1607_v43 = vld [vmem:[#allocation11 + $0x1f0] sm:$0xff] }
 0x340   :  { %2358 = vmatpush1.bf16.msra.mxu1 %v2911_v56  ;;  %v3030_v56 = vcombine.high %v1668_v52, %v1672_v54 }
 0x341   :  { %2359 = vmatprep.subr.bf16.mxu1 %v2920_v57  ;;  %v3029_v57 = vcombine.low %v1668_v52, %v1672_v54  ;;  %v1626_v52 = vld [vmem:[#allocation11 + $0x288] sm:$0xff] }
 0x342   :  { %2514 = vmatprep.subr.bf16.mxu0 %v3030_v56  ;;  %v1630_v54 = vld [vmem:[#allocation11 + $0x2a8] sm:$0xff] }
 0x343   :  { %2515 = vmatpush1.bf16.msra.mxu0 %v3029_v57  ;;  %v2986_v56 = vcombine.high %v1626_v52, %v1630_v54  ;;  %v1634_v57 = vld [vmem:[#allocation11 + $0x2c8] sm:$0xff] }
 0x344   :  { %2360 = vmatpush1.bf16.msra.mxu1 %v2919_v60  ;;  %v2906_v60 = vcombine.high %v1546_v58, %v1550_v59 }
 0x345   :  { %2361 = vmatprep.subr.bf16.mxu1 %v2928_v61  ;;  %v2905_v61 = vcombine.low %v1546_v58, %v1550_v59  ;;  %v1638_v58 = vld [vmem:[#allocation11 + $0x2e8] sm:$0xff]  ;;  %v2985_v59 = vcombine.low %v1626_v52, %v1630_v54  ;;  %v1619_v52 = vld [vmem:[#allocation11 + $0x250] sm:$0xff] }
 0x346   :  { %v1623_v54 = vld [vmem:[#allocation11 + $0x270] sm:$0xff] }
 0x348   :  { %2362 = vmatpush1.bf16.msra.mxu1 %v2927_v0  ;;  %v1413_v0 = vrot.slane %v1404_v62, %v3812_v53  ;;  %v1646_v62 = vld [vmem:[#allocation11 + $0x328] sm:$0xff] }
 0x349   :  { %2363 = vmatprep.subr.bf16.mxu1 %v2936_v1 }
 0x34c   :  { %2364 = vmatpush1.bf16.msra.mxu1 %v2935_v22 }
 0x34d   :  { %2365 = vmatprep.subr.bf16.mxu1 %v2944_v23 }
 0x350   :  { %2366 = vmatpush1.bf16.msra.mxu1 %v2943_v5 }
 0x351   :  { %2367 = vmatprep.subr.bf16.mxu1 %v2952_v6 }
 0x354   :  { %2368 = vmatpush1.bf16.msra.mxu1 %v2951_v11 }
 0x355   :  { %2369 = vmatprep.subr.bf16.mxu1 %v2960_v12  ;;  %v1554_v12 = vld [vmem:[#allocation11 + $0x48] sm:$0xff] }
 0x358   :  { %2370 = vmatpush1.bf16.msra.mxu1 %v2959_v15 }
 0x359   :  { %2371 = vmatprep.subr.bf16.mxu1 %v2968_v16  ;;  %v2914_v16 = vcombine.high %v1554_v12, %v1558_v13 }
 0x35c   :  { %2372 = vmatpush1.bf16.msra.mxu1 %v2967_v19  ;;  %v2913_v19 = vcombine.low %v1554_v12, %v1558_v13  ;;  %v1547_v12 = vld [vmem:[#allocation11 + $0x10] sm:$0xff] }
 0x35d   :  { %2373 = vmatprep.subr.bf16.mxu1 %v2976_v8  ;;  %v2922_v8 = vcombine.high %v1562_v17, %v1566_v18  ;;  %v1551_v13 = vld [vmem:[#allocation11 + $0x30] sm:$0xff] }
 0x360   :  { %2374 = vmatpush1.bf16.msra.mxu1 %v2975_v21  ;;  %v2921_v21 = vcombine.low %v1562_v17, %v1566_v18  ;;  %v2908_v17 = vcombine.high %v1547_v12, %v1551_v13  ;;  %v1555_v18 = vld [vmem:[#allocation11 + $0x50] sm:$0xff] }
 0x361   :  { %2375 = vmatprep.subr.bf16.mxu1 %v2984_v25  ;;  %v2930_v25 = vcombine.high %v1570_v9, %v1574_v20 }
 0x364   :  { %2376 = vmatpush1.bf16.msra.mxu1 %v2983_v28  ;;  %v2929_v28 = vcombine.low %v1570_v9, %v1574_v20  ;;  %v1563_v20 = vld [vmem:[#allocation11 + $0x90] sm:$0xff] }
 0x365   :  { %2377 = vmatprep.subr.bf16.mxu1 %v2992_v29  ;;  %v2938_v29 = vcombine.high %v1578_v26, %v1582_v27 }
 0x368   :  { %2378 = vmatpush1.bf16.msra.mxu1 %v2991_v32  ;;  %v2937_v32 = vcombine.low %v1578_v26, %v1582_v27  ;;  %v1571_v27 = vld [vmem:[#allocation11 + $0xd0] sm:$0xff] }
 0x369   :  { %2379 = vmatprep.subr.bf16.mxu1 %v3000_v33  ;;  %v2946_v33 = vcombine.high %v1586_v30, %v1590_v31 }
 0x36c   :  { %2380 = vmatpush1.bf16.msra.mxu1 %v2999_v36  ;;  %v2945_v36 = vcombine.low %v1586_v30, %v1590_v31  ;;  %v1579_v31 = vld [vmem:[#allocation11 + $0x110] sm:$0xff] }
 0x36d   :  { %2381 = vmatprep.subr.bf16.mxu1 %v3008_v37  ;;  %v2954_v37 = vcombine.high %v1594_v34, %v1598_v35  ;;  %v1587_v35 = vld [vmem:[#allocation11 + $0x150] sm:$0xff] }
 0x370   :  { %2382 = vmatpush1.bf16.msra.mxu1 %v3007_v38  ;;  %v1602_v38 = vld [vmem:[#allocation11 + $0x1c8] sm:$0xff] }
 0x371   :  { %2383 = vmatprep.subr.bf16.mxu1 %v3016_v41  ;;  %v2962_v41 = vcombine.high %v1602_v38, %v1606_v39 }
 0x374   :  { %2384 = vmatpush1.bf16.msra.mxu1 %v3015_v44  ;;  %v2961_v44 = vcombine.low %v1602_v38, %v1606_v39  ;;  %v1595_v38 = vld [vmem:[#allocation11 + $0x190] sm:$0xff] }
 0x375   :  { %2385 = vmatprep.subr.bf16.mxu1 %v3024_v49  ;;  %v2978_v49 = vcombine.high %v1618_v46, %v1622_v47  ;;  %v1599_v39 = vld [vmem:[#allocation11 + $0x1b0] sm:$0xff] }
 0x378   :  { %2386 = vmatpush1.bf16.msra.mxu1 %v3023_v55  ;;  %v2977_v55 = vcombine.low %v1618_v46, %v1622_v47  ;;  %v1611_v46 = vld [vmem:[#allocation11 + $0x210] sm:$0xff] }
 0x379   :  { %2398 = vmatprep.subr.bf16.mxu1 %v2906_v60  ;;  %v2994_v60 = vcombine.high %v1634_v57, %v1638_v58  ;;  %v1615_v47 = vld [vmem:[#allocation11 + $0x230] sm:$0xff] }
 0x40e   :  { %v1530_v1 = vpop.f32.mrb[4].mxu1 }
 0x40f   :  { %v1531_v2 = vadd.f32 %v1530_v1, %v1409_v63  ;;  %v1532_v3 = vpop.f32.mrb[5].mxu1  ;;  %v1650_v1 = vld [vmem:[#allocation11 + $0x348] sm:$0xff] }
 0x410   :  { %v1533_v22 = vadd.f32 %v1532_v3, %v1413_v0  ;;  %v1534_v23 = vpop.f32.mrb[6].mxu1 }
 0x411   :  { %v1535_v24 = vadd.f32 %v1534_v23, %v1409_v63  ;;  %v1536_v4 = vpop.f32.mrb[7].mxu1  ;;  %v1539_v6 = vmax.f32 %v1531_v2, 0.0  ;;  %v2993_v63 = vcombine.low %v1634_v57, %v1638_v58  ;;  %v1654_v2 = vld [vmem:[#allocation11 + $0x368] sm:$0xff]  ;;  %v1627_v57 = vld [vmem:[#allocation11 + $0x290] sm:$0xff] }
 0x412   :  { %v1537_v5 = vadd.f32 %v1536_v4, %v1413_v0  ;;  %v1540_v10 = vmax.f32 %v1533_v22, 0.0  ;;  %v3010_v22 = vcombine.high %v1650_v1, %v1654_v2  ;;  %v1658_v23 = vld [vmem:[#allocation11 + $0x388] sm:$0xff]  ;;  %v3009_v4 = vcombine.low %v1650_v1, %v1654_v2  ;;  %v1631_v58 = vld [vmem:[#allocation11 + $0x2b0] sm:$0xff] }
 0x413   :  { %v1541_v7 = vmax.f32 %v1535_v24, 0.0  ;;  %v1662_v24 = vld [vmem:[#allocation11 + $0x3a8] sm:$0xff]  ;;  %v1643_v1 = vld [vmem:[#allocation11 + $0x310] sm:$0xff] }
 0x414   :  { %v1542_v11 = vmax.f32 %v1537_v5, 0.0  ;;  %v3018_v5 = vcombine.high %v1658_v23, %v1662_v24  ;;  %v1647_v2 = vld [vmem:[#allocation11 + $0x330] sm:$0xff] }
 0x415   :  { %v3837_v14 = vpack.c.bf16 %v1541_v7, %v1539_v6  ;;  %v1666_v6 = vld [vmem:[#allocation11 + $0x3c8] sm:$0xff] }
 0x416   :  { %v3839_v15 = vpack.c.bf16 %v1542_v11, %v1540_v10  ;;  %v1670_v7 = vld [vmem:[#allocation11 + $0x3e8] sm:$0xff]  ;;  %v3017_v10 = vcombine.low %v1658_v23, %v1662_v24  ;;  %v1651_v23 = vld [vmem:[#allocation11 + $0x350] sm:$0xff] }
 0x417   :  { %v3026_v11 = vcombine.high %v1666_v6, %v1670_v7  ;;  %v1655_v24 = vld [vmem:[#allocation11 + $0x370] sm:$0xff] }
 0x418   :  { %2387 = vmatprep.mubr.bf16.mxu1 %v3839_v15  ;;  %2516 = vmatprep.mubr.bf16.mxu0 %v3839_v15 }
 0x419   :  { %2388 = vmatmul.mubr.bf16.vlgmr.msra.gmra.mrb[8].mxu1 %v3837_v14  ;;  %2517 = vmatmul.mubr.bf16.vlgmr.msra.gmra.mrb[4].mxu0 %v3837_v14 }
 0x41a   :  { %2399 = vmatpush1.bf16.msra.mxu1 %v2905_v61  ;;  %2430 = vmatprep.mubr.bf16.mxu1 %v3839_v15  ;;  %v1642_v61 = vld [vmem:[#allocation11 + $0x308] sm:$0xff] }
 0x41b   :  { %2400 = vmatprep.subr.bf16.mxu1 %v2914_v16  ;;  %v3002_v0 = vcombine.high %v1642_v61, %v1646_v62  ;;  %v3001_v3 = vcombine.low %v1642_v61, %v1646_v62  ;;  %v3025_v16 = vcombine.low %v1666_v6, %v1670_v7  ;;  %v1635_v61 = vld [vmem:[#allocation11 + $0x2d0] sm:$0xff] }
 0x41c   :  { %v1639_v62 = vld [vmem:[#allocation11 + $0x2f0] sm:$0xff] }
 0x41d   :  { %v1659_v6 = vld [vmem:[#allocation11 + $0x390] sm:$0xff] }
 0x41e   :  { %2401 = vmatpush1.bf16.msra.mxu1 %v2913_v19  ;;  %v1559_v19 = vld [vmem:[#allocation11 + $0x70] sm:$0xff] }
 0x41f   :  { %2402 = vmatprep.subr.bf16.mxu1 %v2922_v8  ;;  %v2907_v8 = vcombine.low %v1547_v12, %v1551_v13  ;;  %v2916_v9 = vcombine.high %v1555_v18, %v1559_v19  ;;  %v1663_v7 = vld [vmem:[#allocation11 + $0x3b0] sm:$0xff] }
 0x420   :  { %v1667_v12 = vld [vmem:[#allocation11 + $0x3d0] sm:$0xff] }
 0x421   :  { %v1671_v13 = vld [vmem:[#allocation11 + $0x3f0] sm:$0xff] }
 0x422   :  { %2403 = vmatpush1.bf16.msra.mxu1 %v2921_v21  ;;  %v1567_v21 = vld [vmem:[#allocation11 + $0xb0] sm:$0xff] }
 0x423   :  { %2404 = vmatprep.subr.bf16.mxu1 %v2930_v25  ;;  %v2915_v25 = vcombine.low %v1555_v18, %v1559_v19  ;;  %v2924_v26 = vcombine.high %v1563_v20, %v1567_v21  ;;  %v3027_v18 = vcombine.low %v1667_v12, %v1671_v13  ;;  %v1701_v19 = vsub.s32 6, %v3803_v50 }
 0x426   :  { %2405 = vmatpush1.bf16.msra.mxu1 %v2929_v28  ;;  %v1575_v28 = vld [vmem:[#allocation11 + $0xf0] sm:$0xff] }
 0x427   :  { %2406 = vmatprep.subr.bf16.mxu1 %v2938_v29  ;;  %v2923_v29 = vcombine.low %v1563_v20, %v1567_v21  ;;  %v2932_v30 = vcombine.high %v1571_v27, %v1575_v28 }
 0x42a   :  { %2407 = vmatpush1.bf16.msra.mxu1 %v2937_v32  ;;  %v1583_v32 = vld [vmem:[#allocation11 + $0x130] sm:$0xff] }
 0x42b   :  { %2408 = vmatprep.subr.bf16.mxu1 %v2946_v33  ;;  %v2931_v33 = vcombine.low %v1571_v27, %v1575_v28  ;;  %v2940_v34 = vcombine.high %v1579_v31, %v1583_v32 }
 0x42e   :  { %2409 = vmatpush1.bf16.msra.mxu1 %v2945_v36  ;;  %v1591_v36 = vld [vmem:[#allocation11 + $0x170] sm:$0xff] }
 0x42f   :  { %2410 = vmatprep.subr.bf16.mxu1 %v2954_v37  ;;  %v2939_v37 = vcombine.low %v1579_v31, %v1583_v32 }
 0x432   :  { %2411 = vmatpush1.bf16.msra.mxu1 %v2953_v40  ;;  %v2947_v40 = vcombine.low %v1587_v35, %v1591_v36 }
 0x433   :  { %2412 = vmatprep.subr.bf16.mxu1 %v2962_v41  ;;  %v2956_v41 = vcombine.high %v1595_v38, %v1599_v39 }
 0x436   :  { %2413 = vmatpush1.bf16.msra.mxu1 %v2961_v44  ;;  %v2955_v44 = vcombine.low %v1595_v38, %v1599_v39 }
 0x437   :  { %2414 = vmatprep.subr.bf16.mxu1 %v2970_v45  ;;  %v2964_v45 = vcombine.high %v1603_v42, %v1607_v43 }
 0x43a   :  { %2415 = vmatpush1.bf16.msra.mxu1 %v2969_v48  ;;  %v2963_v48 = vcombine.low %v1603_v42, %v1607_v43 }
 0x43b   :  { %2416 = vmatprep.subr.bf16.mxu1 %v2978_v49  ;;  %v2972_v49 = vcombine.high %v1611_v46, %v1615_v47 }
 0x43e   :  { %2417 = vmatpush1.bf16.msra.mxu1 %v2977_v55  ;;  %v2971_v55 = vcombine.low %v1611_v46, %v1615_v47 }
 0x43f   :  { %2418 = vmatprep.subr.bf16.mxu1 %v2986_v56  ;;  %v2980_v56 = vcombine.high %v1619_v52, %v1623_v54 }
 0x442   :  { %2419 = vmatpush1.bf16.msra.mxu1 %v2985_v59  ;;  %v2979_v59 = vcombine.low %v1619_v52, %v1623_v54 }
 0x443   :  { %2420 = vmatprep.subr.bf16.mxu1 %v2994_v60  ;;  %v2988_v60 = vcombine.high %v1627_v57, %v1631_v58 }
 0x446   :  { %2421 = vmatpush1.bf16.msra.mxu1 %v2993_v63  ;;  %v2987_v63 = vcombine.low %v1627_v57, %v1631_v58 }
 0x447   :  { %2422 = vmatprep.subr.bf16.mxu1 %v3002_v0  ;;  %v2996_v0 = vcombine.high %v1635_v61, %v1639_v62 }
 0x44a   :  { %2423 = vmatpush1.bf16.msra.mxu1 %v3001_v3  ;;  %v2995_v3 = vcombine.low %v1635_v61, %v1639_v62 }
 0x44b   :  { %2424 = vmatprep.subr.bf16.mxu1 %v3010_v22  ;;  %v3004_v22 = vcombine.high %v1643_v1, %v1647_v2 }
 0x44e   :  { %2425 = vmatpush1.bf16.msra.mxu1 %v3009_v4  ;;  %v3003_v4 = vcombine.low %v1643_v1, %v1647_v2 }
 0x44f   :  { %2426 = vmatprep.subr.bf16.mxu1 %v3018_v5  ;;  %v3012_v5 = vcombine.high %v1651_v23, %v1655_v24 }
 0x452   :  { %2427 = vmatpush1.bf16.msra.mxu1 %v3017_v10  ;;  %v3011_v10 = vcombine.low %v1651_v23, %v1655_v24 }
 0x453   :  { %2428 = vmatprep.subr.bf16.mxu1 %v3026_v11  ;;  %v3020_v11 = vcombine.high %v1659_v6, %v1663_v7 }
 0x456   :  { %2429 = vmatpush1.bf16.msra.mxu1 %v3025_v16  ;;  %v3019_v16 = vcombine.low %v1659_v6, %v1663_v7 }
 0x457   :  { %2441 = vmatprep.subr.bf16.mxu1 %v2908_v17  ;;  %v3028_v17 = vcombine.high %v1667_v12, %v1671_v13 }
 0x459   :  { %2431 = vmatmul.mubr.bf16.vlgmr.msra.gmra.mrb[12].mxu1 %v3837_v14 }
 0x45a   :  { %2442 = vmatpush1.bf16.msra.mxu1 %v2907_v8  ;;  %2473 = vmatprep.mubr.bf16.mxu1 %v3839_v15  ;;  %v2948_v15 = vcombine.high %v1587_v35, %v1591_v36  ;;  %v3853_v8 = vld [vmem:[%s3906_s9] sm:$0xff]  ;;  %s3625_s9 = smov [#allocation14]  }
 0x45b   :  { %2443 = vmatprep.subr.bf16.mxu1 %v2916_v9  ;;  %v1705_v9 = vsub.s32 7, %v3803_v50  ;;  %v1678_v20 = vrot.slane %v3853_v8, %v3806_v51  ;;  %v1702_v21 = vrot.slane %v3853_v8, %v1701_v19  ;;  %s2700_s21 = sshll.u32 %s3625_s9, 4  ;;  %s2701_s21 = int_to_ptr.vmem [resolvable:$true] %s2700_s21 }
 0x45c   :  { %s3558_s23 = scalar_lea.vmem %s2701_s21, 512  ;;  %p3563_p7 = scmp.lt.s32.totalorder %s2701_s21, %s2701_s21 }
 0x45d   :  { %p3559_p6 = scmp.ne.s32.totalorder %s2701_s21, %s3558_s23  ;;  %p3564_p8 = scmp.lt.s32.totalorder %s3558_s23, %s3558_s23 }
 0x45e   :  { %2444 = vmatpush1.bf16.msra.mxu1 %v2915_v25  ;;  %v1682_v25 = vrot.slane %v3853_v8, %v3812_v53 }
 0x45f   :  { %2445 = vmatprep.subr.bf16.mxu1 %v2924_v26  ;;  %v1706_v26 = vrot.slane %v3853_v8, %v1705_v9  ;;  %p3565_p9 = por %p3564_p8, %p3563_p7 }
 0x461   :  { %p3566_p10 = pnand %p3565_p9, %p3559_p6 }
 0x462   :  { %2446 = vmatpush1.bf16.msra.mxu1 %v2923_v29 }
 0x463   :  { %2447 = vmatprep.subr.bf16.mxu1 %v2932_v30 }
 0x466   :  { %2448 = vmatpush1.bf16.msra.mxu1 %v2931_v33 }
 0x467   :  { %2449 = vmatprep.subr.bf16.mxu1 %v2940_v34 }
 0x46a   :  { %2450 = vmatpush1.bf16.msra.mxu1 %v2939_v37 }
 0x46b   :  { %2451 = vmatprep.subr.bf16.mxu1 %v2948_v15 }
 0x46e   :  { %2452 = vmatpush1.bf16.msra.mxu1 %v2947_v40 }
 0x46f   :  { %2453 = vmatprep.subr.bf16.mxu1 %v2956_v41 }
 0x472   :  { %2454 = vmatpush1.bf16.msra.mxu1 %v2955_v44 }
 0x473   :  { %2455 = vmatprep.subr.bf16.mxu1 %v2964_v45 }
 0x476   :  { %2456 = vmatpush1.bf16.msra.mxu1 %v2963_v48 }
 0x477   :  { %2457 = vmatprep.subr.bf16.mxu1 %v2972_v49 }
 0x47a   :  { %2458 = vmatpush1.bf16.msra.mxu1 %v2971_v55 }
 0x47b   :  { %2459 = vmatprep.subr.bf16.mxu1 %v2980_v56 }
 0x47e   :  { %2460 = vmatpush1.bf16.msra.mxu1 %v2979_v59 }
 0x47f   :  { %2461 = vmatprep.subr.bf16.mxu1 %v2988_v60 }
 0x482   :  { %2462 = vmatpush1.bf16.msra.mxu1 %v2987_v63 }
 0x483   :  { %2463 = vmatprep.subr.bf16.mxu1 %v2996_v0 }
 0x486   :  { %2464 = vmatpush1.bf16.msra.mxu1 %v2995_v3 }
 0x487   :  { %2465 = vmatprep.subr.bf16.mxu1 %v3004_v22 }
 0x48a   :  { %2466 = vmatpush1.bf16.msra.mxu1 %v3003_v4 }
 0x48b   :  { %2467 = vmatprep.subr.bf16.mxu1 %v3012_v5 }
 0x48e   :  { %2468 = vmatpush1.bf16.msra.mxu1 %v3011_v10 }
 0x48f   :  { %2469 = vmatprep.subr.bf16.mxu1 %v3020_v11 }
 0x492   :  { %2470 = vmatpush1.bf16.msra.mxu1 %v3019_v16 }
 0x493   :  { %2471 = vmatprep.subr.bf16.mxu1 %v3028_v17 }
 0x496   :  { %2472 = vmatpush1.bf16.msra.mxu1 %v3027_v18 }
 0x499   :  { %2474 = vmatmul.mubr.bf16.vlgmr.msra.gmra.mrb[16].mxu1 %v3837_v14 }
 0x4ec   :  { %v2389_v14 = vpop.f32.mrb[8].mxu1  ;;  %v2518_v27 = vpop.f32.mrb[4].mxu0 }
 0x4ed   :  { %v2390_v28 = vadd.f32 %v2389_v14, %v1678_v20  ;;  %v2519_v29 = vadd.f32 %v2518_v27, %v1702_v21  ;;  %v2391_v30 = vpop.f32.mrb[9].mxu1  ;;  %v2520_v31 = vpop.f32.mrb[5].mxu0 }
 0x4ee   :  { %v2392_v32 = vadd.f32 %v2391_v30, %v1682_v25  ;;  %v2521_v33 = vadd.f32 %v2520_v31, %v1706_v26  ;;  %v2393_v34 = vpop.f32.mrb[10].mxu1  ;;  %v2522_v35 = vpop.f32.mrb[6].mxu0 }
 0x4ef   :  { %v3031_v36 = vmul.f32 -1.442695, %v2390_v28  ;;  %v3037_v37 = vmul.f32 -1.442695, %v2519_v29  ;;  %v2394_v51 = vadd.f32 %v2393_v34, %v1678_v20  ;;  %v2523_v15 = vadd.f32 %v2522_v35, %v1702_v21  ;;  %v2395_v38 = vpop.f32.mrb[11].mxu1  ;;  %v2524_v39 = vpop.f32.mrb[7].mxu0 }
 0x4f0   :  { %v3032_v40 = vmul.f32 -1.442695, %v2392_v32  ;;  %v3038_v53 = vmul.f32 -1.442695, %v2521_v33  ;;  %v2396_v41 = vadd.f32 %v2395_v38, %v1682_v25  ;;  %v2525_v42 = vadd.f32 %v2524_v39, %v1706_v26 }
 0x4f1   :  { %3362 = vpow2.f32 %v3031_v36  ;;  %v3039_v43 = vmul.f32 -1.442695, %v2394_v51  ;;  %v3045_v44 = vmul.f32 -1.442695, %v2523_v15 }
 0x4f2   :  { %3364 = vpow2.f32 %v3037_v37  ;;  %v3040_v45 = vmul.f32 -1.442695, %v2396_v41  ;;  %v3046_v46 = vmul.f32 -1.442695, %v2525_v42 }
 0x4f3   :  { %3366 = vpow2.f32 %v3032_v40 }
 0x4f4   :  { %3368 = vpow2.f32 %v3038_v53 }
 0x4f5   :  { %3370 = vpow2.f32 %v3039_v43 }
 0x4f6   :  { %3372 = vpow2.f32 %v3045_v44 }
 0x4f7   :  { %3374 = vpow2.f32 %v3040_v45 }
 0x4f8   :  { %3376 = vpow2.f32 %v3046_v46 }
 0x4fb   :  { %v3363_v47 = vpop.eup %3362 }
 0x4fc   :  { %v3365_v48 = vpop.eup %3364  ;;  %v2575_v49 = vadd.f32 1.0, %v3363_v47 }
 0x4fd   :  { %v3367_v52 = vpop.eup %3366  ;;  %v2581_v54 = vadd.f32 1.0, %v3365_v48 }
 0x4fe   :  { %v3369_v55 = vpop.eup %3368  ;;  %3378 = vrcp.f32 %v2575_v49  ;;  %v2576_v56 = vadd.f32 1.0, %v3367_v52 }
 0x4ff   :  { %v3371_v57 = vpop.eup %3370  ;;  %3380 = vrcp.f32 %v2581_v54  ;;  %v2582_v58 = vadd.f32 1.0, %v3369_v55 }
 0x500   :  { %v3373_v59 = vpop.eup %3372  ;;  %3382 = vrcp.f32 %v2576_v56  ;;  %v2583_v60 = vadd.f32 1.0, %v3371_v57 }
 0x501   :  { %v3375_v61 = vpop.eup %3374  ;;  %3384 = vrcp.f32 %v2582_v58  ;;  %v2589_v62 = vadd.f32 1.0, %v3373_v59 }
 0x502   :  { %v3377_v63 = vpop.eup %3376  ;;  %3386 = vrcp.f32 %v2583_v60  ;;  %v2584_v0 = vadd.f32 1.0, %v3375_v61 }
 0x503   :  { %3388 = vrcp.f32 %v2589_v62  ;;  %v2590_v1 = vadd.f32 1.0, %v3377_v63 }
 0x504   :  { %3390 = vrcp.f32 %v2584_v0 }
 0x505   :  { %3392 = vrcp.f32 %v2590_v1 }
 0x508   :  { %v3379_v2 = vpop.eup %3378 }
 0x509   :  { %v3381_v3 = vpop.eup %3380 }
 0x50a   :  { %v3383_v22 = vpop.eup %3382 }
 0x50b   :  { %v3385_v23 = vpop.eup %3384  ;;  %v3055_v24 = vpack.c.bf16 %v3383_v22, %v3379_v2 }
 0x50c   :  { %v3387_v4 = vpop.eup %3386  ;;  %v3058_v5 = vpack.c.bf16 %v3385_v23, %v3381_v3 }
 0x50d   :  { %v3389_v6 = vpop.eup %3388  ;;  %2671 = vst [vmem:[#allocation13] sm:$0xff] %v3055_v24 }
 0x50e   :  { %v3391_v7 = vpop.eup %3390  ;;  %2674 = vst [vmem:[#allocation13 + $0x18] sm:$0xff] %v3058_v5 }
 0x50f   :  { %v3393_v10 = vpop.eup %3392  ;;  %v3059_v11 = vpack.c.bf16 %v3391_v7, %v3387_v4 }
 0x510   :  { %v3062_v12 = vpack.c.bf16 %v3393_v10, %v3389_v6 }
 0x511   :  { %2675 = vst [vmem:[#allocation13 + $0x20] sm:$0xff] %v3059_v11 }
 0x512   :  { %2678 = vst [vmem:[#allocation13 + $0x38] sm:$0xff] %v3062_v12 }
 0x513   :  { %3569 = shalt.err (!%p3566_p10)
}
 0x514   :  { %s3570_s2 = scalar_lea.hbm %s3908_s11, 512 }
 0x515   :  { %p3571_p11 = scmp.ne.s32.totalorder %s3908_s11, %s3570_s2  ;;  %p3574_p12 = scmp.lt.u32.totalorder %s3570_s2, %s3908_s11 }
 0x517   :  { %p3576_p13 = pnand %p3574_p12, %p3571_p11 }
 0x519   :  { %3579 = shalt.err (!%p3576_p13)
}
 0x51a   :  { %s3626_s30 = smov 256   ;;  %s3627_s12 = smov 16   ;;  %v1685_v13 = vsub.s32 2, %v3803_v50  ;;  %v1689_v16 = vsub.s32 3, %v3803_v50  ;;  %v1693_v43 = vsub.s32 4, %v3803_v50  ;;  %v1697_v44 = vsub.s32 5, %v3803_v50 }
 0x51b   :  { %2706 = dma.vmem_to_hbm [thread:$0]  %s2701_s21, 512, %s3908_s11, [#allocation15], %s3626_s30, %s3626_s30, %s3627_s12  }
 0x51c   :  { %v1686_v17 = vrot.slane %v3853_v8, %v1685_v13  ;;  %v1690_v18 = vrot.slane %v3853_v8, %v1689_v16  ;;  %v1694_v45 = vrot.slane %v3853_v8, %v1693_v43  ;;  %v1698_v46 = vrot.slane %v3853_v8, %v1697_v44  ;;  %s3628_s11 = smov [#allocation13]  }
 0x51d   :  { %s2688_s14 = sshll.u32 %s3628_s11, 4  ;;  %s2689_s14 = int_to_ptr.vmem [resolvable:$true] %s2688_s14 }
 0x51e   :  { %s3580_s16 = scalar_lea.vmem %s2689_s14, 1024  ;;  %p3585_p1 = scmp.lt.s32.totalorder %s2689_s14, %s2689_s14 }
 0x51f   :  { %p3581_p0 = scmp.ne.s32.totalorder %s2689_s14, %s3580_s16  ;;  %p3586_p2 = scmp.lt.s32.totalorder %s3580_s16, %s3580_s16 }
 0x521   :  { %p3587_p3 = por %p3586_p2, %p3585_p1 }
 0x523   :  { %p3588_p4 = pnand %p3587_p3, %p3581_p0 }
 0x52c   :  { %v2432_v19 = vpop.f32.mrb[12].mxu1 }
 0x52d   :  { %v2433_v9 = vadd.f32 %v2432_v19, %v1686_v17  ;;  %v2434_v20 = vpop.f32.mrb[13].mxu1 }
 0x52e   :  { %v2435_v21 = vadd.f32 %v2434_v20, %v1690_v18  ;;  %v2436_v25 = vpop.f32.mrb[14].mxu1 }
 0x52f   :  { %v3033_v26 = vmul.f32 -1.442695, %v2433_v9  ;;  %v2437_v14 = vadd.f32 %v2436_v25, %v1686_v17  ;;  %v2438_v27 = vpop.f32.mrb[15].mxu1 }
 0x530   :  { %v3034_v28 = vmul.f32 -1.442695, %v2435_v21  ;;  %v2439_v29 = vadd.f32 %v2438_v27, %v1690_v18 }
 0x531   :  { %3394 = vpow2.f32 %v3033_v26  ;;  %v3041_v30 = vmul.f32 -1.442695, %v2437_v14 }
 0x532   :  { %3396 = vpow2.f32 %v3034_v28  ;;  %v3042_v31 = vmul.f32 -1.442695, %v2439_v29 }
 0x533   :  { %3398 = vpow2.f32 %v3041_v30 }
 0x534   :  { %3400 = vpow2.f32 %v3042_v31 }
 0x53b   :  { %v3395_v32 = vpop.eup %3394 }
 0x53c   :  { %v3397_v33 = vpop.eup %3396  ;;  %v2577_v34 = vadd.f32 1.0, %v3395_v32 }
 0x53d   :  { %v3399_v35 = vpop.eup %3398  ;;  %v2578_v36 = vadd.f32 1.0, %v3397_v33 }
 0x53e   :  { %v3401_v37 = vpop.eup %3400  ;;  %3402 = vrcp.f32 %v2577_v34  ;;  %v2585_v51 = vadd.f32 1.0, %v3399_v35 }
 0x53f   :  { %3404 = vrcp.f32 %v2578_v36  ;;  %v2586_v15 = vadd.f32 1.0, %v3401_v37 }
 0x540   :  { %3406 = vrcp.f32 %v2585_v51 }
 0x541   :  { %3408 = vrcp.f32 %v2586_v15 }
 0x548   :  { %v3403_v38 = vpop.eup %3402 }
 0x549   :  { %v3405_v39 = vpop.eup %3404 }
 0x54a   :  { %v3407_v40 = vpop.eup %3406  ;;  %v3056_v53 = vpack.c.bf16 %v3405_v39, %v3403_v38 }
 0x54b   :  { %v3409_v41 = vpop.eup %3408 }
 0x54c   :  { %2672 = vst [vmem:[#allocation13 + $0x8] sm:$0xff] %v3056_v53  ;;  %v3060_v42 = vpack.c.bf16 %v3409_v41, %v3407_v40 }
 0x54e   :  { %2676 = vst [vmem:[#allocation13 + $0x28] sm:$0xff] %v3060_v42 }
 0x56c   :  { %v2475_v47 = vpop.f32.mrb[16].mxu1 }
 0x56d   :  { %v2476_v48 = vadd.f32 %v2475_v47, %v1694_v45  ;;  %v2477_v49 = vpop.f32.mrb[17].mxu1 }
 0x56e   :  { %v2478_v52 = vadd.f32 %v2477_v49, %v1698_v46  ;;  %v2479_v54 = vpop.f32.mrb[18].mxu1 }
 0x56f   :  { %v3035_v55 = vmul.f32 -1.442695, %v2476_v48  ;;  %v2480_v56 = vadd.f32 %v2479_v54, %v1694_v45  ;;  %v2481_v57 = vpop.f32.mrb[19].mxu1 }
 0x570   :  { %v3036_v58 = vmul.f32 -1.442695, %v2478_v52  ;;  %v2482_v59 = vadd.f32 %v2481_v57, %v1698_v46 }
 0x571   :  { %3410 = vpow2.f32 %v3035_v55  ;;  %v3043_v60 = vmul.f32 -1.442695, %v2480_v56 }
 0x572   :  { %3412 = vpow2.f32 %v3036_v58  ;;  %v3044_v61 = vmul.f32 -1.442695, %v2482_v59 }
 0x573   :  { %3414 = vpow2.f32 %v3043_v60 }
 0x574   :  { %3416 = vpow2.f32 %v3044_v61 }
 0x57b   :  { %v3411_v50 = vpop.eup %3410 }
 0x57c   :  { %v3413_v62 = vpop.eup %3412  ;;  %v2579_v63 = vadd.f32 1.0, %v3411_v50 }
 0x57d   :  { %v3415_v8 = vpop.eup %3414  ;;  %v2580_v0 = vadd.f32 1.0, %v3413_v62 }
 0x57e   :  { %v3417_v1 = vpop.eup %3416  ;;  %3418 = vrcp.f32 %v2579_v63  ;;  %v2587_v2 = vadd.f32 1.0, %v3415_v8 }
 0x57f   :  { %3420 = vrcp.f32 %v2580_v0  ;;  %v2588_v3 = vadd.f32 1.0, %v3417_v1 }
 0x580   :  { %3422 = vrcp.f32 %v2587_v2 }
 0x581   :  { %3424 = vrcp.f32 %v2588_v3 }
 0x588   :  { %v3419_v22 = vpop.eup %3418 }
 0x589   :  { %v3421_v23 = vpop.eup %3420 }
 0x58a   :  { %v3423_v24 = vpop.eup %3422  ;;  %v3057_v4 = vpack.c.bf16 %v3421_v23, %v3419_v22 }
 0x58b   :  { %v3425_v5 = vpop.eup %3424 }
 0x58c   :  { %2673 = vst [vmem:[#allocation13 + $0x10] sm:$0xff] %v3057_v4  ;;  %v3061_v6 = vpack.c.bf16 %v3425_v5, %v3423_v24 }
 0x58e   :  { %2677 = vst [vmem:[#allocation13 + $0x30] sm:$0xff] %v3061_v6 }
 0x58f   :  { %3591 = shalt.err (!%p3588_p4)
}
 0x590   :  { %s3592_s27 = scalar_lea.hbm %s3907_s10, 1024 }
 0x591   :  { %p3593_p5 = scmp.ne.s32.totalorder %s3907_s10, %s3592_s27  ;;  %p3596_p6 = scmp.lt.u32.totalorder %s3592_s27, %s3907_s10 }
 0x593   :  { %p3598_p7 = pnand %p3596_p6, %p3593_p5 }
 0x595   :  { %3601 = shalt.err (!%p3598_p7)
}
 0x596   :  { %2694 = dma.vmem_to_hbm [thread:$0]  %s2689_s14, 1024, %s3907_s10, [#allocation4], %s3619_s4, %s3619_s4, %s3620_s13  }
 0x597   :  { %3610 = dma.done.wait [#allocation4], 1024  }
 0x598   :  { %3611 = vsyncadd [#allocation4], 4294966272 }
 0x599   :  { %3612 = dma.done.wait [#allocation15], 512  }
 0x59a   :  { %3613 = vsyncadd [#allocation15], 4294966784 }
 0x59b   :  { %2713 = vsyncpa [#allocation3], 1 }
 0x59c   :  { %2714 = vsyncpa [#allocation6], 1 }
 0x59d   :  { %2715 = vsyncpa [#allocation9], 1 }
 0x59e   :  { %2716 = vsyncpa [#allocation12], 1 }
 0x59f   :  { %2717 = vsyncpa [#allocation4], 1 }
 0x5a0   :  { %2718 = vsyncpa [#allocation15], 1 }

</bundles_post_ra>
